<compile_context>
chip_gen: v5e
topology: v5e:2x2
jax: 0.10.0
libtpu: 0.0.40
codegen_flags: <defaults>
</compile_context>

<pallas_src>
import functools
import math

import jax
import jax.numpy as jnp
from jax.experimental import pallas as pl
from jax.experimental.pallas import tpu as pltpu


# ----------------------------- shared math --------------------------------

def _layer_norm(x, gamma, beta, eps=1e-5):
    # gamma / beta broadcast over the leading dims; biased variance like PyTorch.
    mu = jnp.mean(x, axis=-1, keepdims=True)
    xc = x - mu
    var = jnp.mean(xc * xc, axis=-1, keepdims=True)
    return xc * jax.lax.rsqrt(var + eps) * gamma + beta


def _gelu(x):
    # tanh-form GELU: the transcendental runs on the EUP slot.
    # TODO(synk): torch.nn.GELU() default is the exact erf form; the tanh
    # approximation deviates by ~1e-3 worst case.
    c = math.sqrt(2.0 / math.pi)
    return 0.5 * x * (1.0 + jnp.tanh(c * (x + 0.044715 * x * x * x)))


# Batched "NN" matmul: contract lhs dim 2 with rhs dim 1, batch over dim 0.
_BATCH_NN = (((2,), (1,)), ((0,), (0,)))


def _mha(xn, wq_h, kT, v, wo_h, bo):
    """Multi-head attention with pre-computed K/V.

    xn:   (tT, D) f32 query source (already LayerNormed).
    wq_h: (H, D, hd) bf16, pre-scaled by 1/sqrt(hd).
    kT:   (H, hd, Tk) bf16 pre-transposed keys.
    v:    (H, Tk, hd) bf16 values.
    wo_h: (H, hd, D) bf16 output projection split per head.
    bo:   (1, D) f32 output projection bias.
    """
    tT, D = xn.shape
    H = wq_h.shape[0]

    xb = jnp.broadcast_to(xn.astype(jnp.bfloat16)[None], (H, tT, D))
    q = jax.lax.dot_general(xb, wq_h, _BATCH_NN,
                            preferred_element_type=jnp.float32)    # (H, tT, hd)
    s = jax.lax.dot_general(q.astype(jnp.bfloat16), kT, _BATCH_NN,
                            preferred_element_type=jnp.float32)    # (H, tT, Tk)
    s = s - jnp.max(s, axis=-1, keepdims=True)
    e = jnp.exp(s)
    denom = jnp.sum(e, axis=-1, keepdims=True)                     # (H, tT, 1)
    o = jax.lax.dot_general(e.astype(jnp.bfloat16), v, _BATCH_NN,
                            preferred_element_type=jnp.float32)    # (H, tT, hd)
    # Softmax normalization deferred past p@v; exact reciprocal on a tiny tile.
    o = o * (1.0 / denom)
    out_h = jax.lax.dot_general(o.astype(jnp.bfloat16), wo_h, _BATCH_NN,
                                preferred_element_type=jnp.float32)  # (H, tT, D)
    return jnp.sum(out_h, axis=0) + bo                               # (tT, D)


def _ffn(xn, w1, b1, w2, b2):
    h = jnp.dot(xn.astype(jnp.bfloat16), w1,
                preferred_element_type=jnp.float32) + b1            # (tT, 4D)
    h = _gelu(h)
    # TODO(synk): nn.Dropout(0.1) is identity here (inference semantics).
    return jnp.dot(h.astype(jnp.bfloat16), w2,
                   preferred_element_type=jnp.float32) + b2


# --------------------------------- kernel ---------------------------------

def transformer_block_kernel(*refs, num_heads, use_self_attention,
                             use_cross_attention):
    del num_heads  # head count is encoded in the weight/KV shapes
    out_ref = refs[-1]
    it = iter(refs[:-1])

    xt_ref = next(it)
    x = xt_ref[0].astype(jnp.float32)                    # (tT, D) residual tile

    if use_self_attention:
        ksT_ref, vs_ref = next(it), next(it)
        wq_ref, wo_ref, wob_ref = next(it), next(it), next(it)
        n1g, n1b, n2g, n2b = next(it), next(it), next(it), next(it)
        f1w1, f1b1, f1w2, f1b2 = next(it), next(it), next(it), next(it)

        xn = _layer_norm(x, n1g[...], n1b[...])
        x = _mha(xn, wq_ref[...], ksT_ref[0], vs_ref[0],
                 wo_ref[...], wob_ref[...]) + x
        xn = _layer_norm(x, n2g[...], n2b[...])
        x = _ffn(xn, f1w1[...], f1b1[...], f1w2[...], f1b2[...]) + x

    if use_cross_attention:
        kcT_ref, vc_ref = next(it), next(it)
        wq_ref, wo_ref, wob_ref = next(it), next(it), next(it)
        n3g, n3b, n4g, n4b = next(it), next(it), next(it), next(it)
        f2w1, f2b1, f2w2, f2b2 = next(it), next(it), next(it), next(it)

        xn = _layer_norm(x, n3g[...], n3b[...])
        x = _mha(xn, wq_ref[...], kcT_ref[0], vc_ref[0],
                 wo_ref[...], wob_ref[...]) + x
        xn = _layer_norm(x, n4g[...], n4b[...])
        x = _ffn(xn, f2w1[...], f2b1[...], f2w2[...], f2b2[...]) + x

    out_ref[0] = x.astype(out_ref.dtype)


# -------------------------------- wrapper ---------------------------------

def _vmem_limit_bytes():
    # ~75% of physical VMEM: ~48 MiB on v7x (64 MiB/TC), ~96 MiB on v5e/v6e.
    cap = 64 * 1024 * 1024
    try:
        cap = int(pltpu.get_tpu_info().vmem_capacity_bytes)
    except Exception:
        pass
    return min(cap * 3 // 4, 100 * 1024 * 1024)


def transformer_block(x, context, params, *, num_heads,
                      use_self_attention=True, use_cross_attention=True,
                      seq_tile=256):
    B, T, D = x.shape
    assert D % num_heads == 0
    H = num_heads
    hd = D // H
    scale = 1.0 / math.sqrt(hd)

    tT = min(seq_tile, T)
    assert T % tT == 0, "sequence length must be divisible by the seq tile"

    bf16, f32 = jnp.bfloat16, jnp.float32

    def split_out(w):   # (in, H*hd) -> (H, in, hd)   split the output dim per head
        return jnp.transpose(w.reshape(w.shape[0], H, hd), (1, 0, 2))

    def split_in(w):    # (H*hd, out) -> (H, hd, out)  split the input dim per head
        return w.reshape(H, hd, w.shape[1])

    inputs = [x]
    in_specs = [pl.BlockSpec((1, tT, D), lambda b, t: (b, t, 0))]

    def add_const(arr):
        inputs.append(arr)
        nd = arr.ndim
        in_specs.append(
            pl.BlockSpec(arr.shape, lambda b, t, _nd=nd: (0,) * _nd))

    def add_per_batch(arr):
        inputs.append(arr)
        nd = arr.ndim
        in_specs.append(
            pl.BlockSpec((1,) + arr.shape[1:],
                         lambda b, t, _nd=nd: (b,) + (0,) * (_nd - 1)))

    # ---- hoisted per-batch K/V (computed once, not once per seq tile) ----
    if use_self_attention:
        n1g = params["n1_g"].astype(f32)
        n1b = params["n1_b"].astype(f32)
        xn1 = _layer_norm(x.astype(f32), n1g, n1b).astype(bf16)        # (B, T, D)
        wk_h = split_out(params["sa_k"]).astype(bf16)                  # (H, D, hd)
        wv_h = split_out(params["sa_v"]).astype(bf16)
        k_self_T = jnp.einsum("btd,hdk->bhkt", xn1, wk_h,
                              preferred_element_type=f32).astype(bf16)  # (B,H,hd,T)
        v_self = jnp.einsum("btd,hdk->bhtk", xn1, wv_h,
                            preferred_element_type=f32).astype(bf16)    # (B,H,T,hd)

        add_per_batch(k_self_T)
        add_per_batch(v_self)
        add_const((split_out(params["sa_q"]) * scale).astype(bf16))     # (H, D, hd)
        add_const(split_in(params["sa_o"]).astype(bf16))                # (H, hd, D)
        add_const(params["sa_ob"].astype(f32))                          # (1, D)
        add_const(n1g); add_const(n1b)
        add_const(params["n2_g"].astype(f32)); add_const(params["n2_b"].astype(f32))
        add_const(params["f1_w1"].astype(bf16)); add_const(params["f1_b1"].astype(f32))
        add_const(params["f1_w2"].astype(bf16)); add_const(params["f1_b2"].astype(f32))

    if use_cross_attention:
        _, Tc, C = context.shape
        ck_h = split_out(params["ca_k"]).astype(bf16)                   # (H, C, hd)
        cv_h = split_out(params["ca_v"]).astype(bf16)
        ctxb = context.astype(bf16)
        k_cross_T = jnp.einsum("btc,hck->bhkt", ctxb, ck_h,
                               preferred_element_type=f32).astype(bf16)  # (B,H,hd,Tc)
        v_cross = jnp.einsum("btc,hck->bhtk", ctxb, cv_h,
                             preferred_element_type=f32).astype(bf16)    # (B,H,Tc,hd)

        add_per_batch(k_cross_T)
        add_per_batch(v_cross)
        add_const((split_out(params["ca_q"]) * scale).astype(bf16))
        add_const(split_in(params["ca_o"]).astype(bf16))
        add_const(params["ca_ob"].astype(f32))
        add_const(params["n3_g"].astype(f32)); add_const(params["n3_b"].astype(f32))
        add_const(params["n4_g"].astype(f32)); add_const(params["n4_b"].astype(f32))
        add_const(params["f2_w1"].astype(bf16)); add_const(params["f2_b1"].astype(f32))
        add_const(params["f2_w2"].astype(bf16)); add_const(params["f2_b2"].astype(f32))

    # ---- advisory cost estimate so XLA can overlap the hoisted K/V matmuls ----
    d_ff = 4 * D
    flops = 0
    transc = 0
    if use_self_attention:
        flops += 2 * B * T * D * D * 2          # Q proj + out proj
        flops += 2 * B * T * T * D * 2          # scores + p@v (summed over heads)
        flops += 2 * B * T * D * d_ff * 2       # FFN1
        transc += B * H * T * T + B * T * d_ff
    if use_cross_attention:
        _, Tc, _ = context.shape
        flops += 2 * B * T * D * D * 2
        flops += 2 * B * T * Tc * D * 2
        flops += 2 * B * T * D * d_ff * 2
        transc += B * H * T * Tc + B * T * d_ff
    bytes_accessed = (sum(int(a.size) * a.dtype.itemsize for a in inputs)
                      + B * T * D * x.dtype.itemsize)
    cost = pl.CostEstimate(flops=int(flops), transcendentals=int(transc),
                           bytes_accessed=int(bytes_accessed))

    kernel = functools.partial(
        transformer_block_kernel,
        num_heads=num_heads,
        use_self_attention=use_self_attention,
        use_cross_attention=use_cross_attention,
    )

    return pl.pallas_call(
        kernel,
        out_shape=jax.ShapeDtypeStruct((B, T, D), x.dtype),
        grid=(B, T // tT),
        in_specs=in_specs,
        out_specs=pl.BlockSpec((1, tT, D), lambda b, t: (b, t, 0)),
        compiler_params=pltpu.CompilerParams(
            dimension_semantics=("parallel", "parallel"),
            vmem_limit_bytes=_vmem_limit_bytes()),
        cost_estimate=cost,
    )(*inputs)


# ---------------------------- parameter setup -----------------------------

def init_params(key, hidden_dim, context_dim):
    D, C = hidden_dim, context_dim
    ks = jax.random.split(key, 20)
    std = 0.05

    def lin(k, shape):  # weights stored as (in, out), i.e. already transposed
        return (std * jax.random.normal(k, shape)).astype(jnp.float32)

    return {
        # self attention (embed_dim == hidden_dim == D); Q/K/V bias-free
        "sa_q": lin(ks[0], (D, D)),
        "sa_k": lin(ks[1], (D, D)),
        "sa_v": lin(ks[2], (D, D)),
        "sa_o": lin(ks[3], (D, D)),
        "sa_ob": lin(ks[4], (1, D)),
        # cross attention: K/V project from context_dim C
        "ca_q": lin(ks[5], (D, D)),
        "ca_k": lin(ks[6], (C, D)),
        "ca_v": lin(ks[7], (C, D)),
        "ca_o": lin(ks[8], (D, D)),
        "ca_ob": lin(ks[9], (1, D)),
        # layer norms (PyTorch default init: gamma=1, beta=0)
        "n1_g": jnp.ones((1, D), jnp.float32), "n1_b": jnp.zeros((1, D), jnp.float32),
        "n2_g": jnp.ones((1, D), jnp.float32), "n2_b": jnp.zeros((1, D), jnp.float32),
        "n3_g": jnp.ones((1, D), jnp.float32), "n3_b": jnp.zeros((1, D), jnp.float32),
        "n4_g": jnp.ones((1, D), jnp.float32), "n4_b": jnp.zeros((1, D), jnp.float32),
        # feed-forward blocks: D -> 4D -> D
        "f1_w1": lin(ks[10], (D, 4 * D)), "f1_b1": lin(ks[11], (1, 4 * D)),
        "f1_w2": lin(ks[12], (4 * D, D)), "f1_b2": lin(ks[13], (1, D)),
        "f2_w1": lin(ks[14], (D, 4 * D)), "f2_b1": lin(ks[15], (1, 4 * D)),
        "f2_w2": lin(ks[16], (4 * D, D)), "f2_b2": lin(ks[17], (1, D)),
    }


# ---------------------------------- main -----------------------------------

if __name__ == "__main__":
    B, T, D = 2, 32, 128        # batch, tokens, hidden_dim (lane-dense D)
    Tc, C = 16, 64              # context length, context_dim
    num_heads = 4               # head_dim = 32

    root = jax.random.PRNGKey(0)
    kx, kc, kp = jax.random.split(root, 3)

    x = jax.random.normal(kx, (B, T, D), dtype=jnp.float32)
    context = jax.random.normal(kc, (B, Tc, C), dtype=jnp.float32)
    params = init_params(kp, D, C)

    out = transformer_block(
        x, context, params,
        num_heads=num_heads,
        use_self_attention=True,
        use_cross_attention=True,
    )
    jax.block_until_ready(out)

    assert out.shape == (B, T, D) and out.dtype == jnp.float32
    assert bool(jnp.all(jnp.isfinite(out)))
    print("KERNEL_OK")
</pallas_src>

<mosaic_0001>
module attributes {stable_mosaic.version = 11 : i64} {
  func.func @transformer_block_kernel(%arg0: i32, %arg1: i32, %arg2: memref<1x32x128xf32, #tpu.memory_space<vmem>>, %arg3: memref<1x4x32x32xbf16, #tpu.memory_space<vmem>>, %arg4: memref<1x4x32x32xbf16, #tpu.memory_space<vmem>>, %arg5: memref<4x128x32xbf16, #tpu.memory_space<vmem>>, %arg6: memref<4x32x128xbf16, #tpu.memory_space<vmem>>, %arg7: memref<1x128xf32, #tpu.memory_space<vmem>>, %arg8: memref<1x128xf32, #tpu.memory_space<vmem>>, %arg9: memref<1x128xf32, #tpu.memory_space<vmem>>, %arg10: memref<1x128xf32, #tpu.memory_space<vmem>>, %arg11: memref<1x128xf32, #tpu.memory_space<vmem>>, %arg12: memref<128x512xbf16, #tpu.memory_space<vmem>>, %arg13: memref<1x512xf32, #tpu.memory_space<vmem>>, %arg14: memref<512x128xbf16, #tpu.memory_space<vmem>>, %arg15: memref<1x128xf32, #tpu.memory_space<vmem>>, %arg16: memref<1x4x32x16xbf16, #tpu.memory_space<vmem>>, %arg17: memref<1x4x16x32xbf16, #tpu.memory_space<vmem>>, %arg18: memref<4x128x32xbf16, #tpu.memory_space<vmem>>, %arg19: memref<4x32x128xbf16, #tpu.memory_space<vmem>>, %arg20: memref<1x128xf32, #tpu.memory_space<vmem>>, %arg21: memref<1x128xf32, #tpu.memory_space<vmem>>, %arg22: memref<1x128xf32, #tpu.memory_space<vmem>>, %arg23: memref<1x128xf32, #tpu.memory_space<vmem>>, %arg24: memref<1x128xf32, #tpu.memory_space<vmem>>, %arg25: memref<128x512xbf16, #tpu.memory_space<vmem>>, %arg26: memref<1x512xf32, #tpu.memory_space<vmem>>, %arg27: memref<512x128xbf16, #tpu.memory_space<vmem>>, %arg28: memref<1x128xf32, #tpu.memory_space<vmem>>, %arg29: memref<1x32x128xf32, #tpu.memory_space<vmem>>) attributes {dimension_semantics = [#tpu.dimension_semantics<parallel>, #tpu.dimension_semantics<parallel>], iteration_bounds = array<i64: 2, 1>, scalar_prefetch = 0 : i64, scratch_operands = 0 : i64, tpu.core_type = #tpu.core_type<tc>, window_params = [{transform_indices = @transform_0, window_bounds = array<i64: 1, 32, 128>}, {transform_indices = @transform_1, window_bounds = array<i64: 1, 4, 32, 32>}, {transform_indices = @transform_2, window_bounds = array<i64: 1, 4, 32, 32>}, {pipeline_mode = #tpu.pipeline_mode<synchronous>, transform_indices = @transform_3, window_bounds = array<i64: 4, 128, 32>}, {pipeline_mode = #tpu.pipeline_mode<synchronous>, transform_indices = @transform_4, window_bounds = array<i64: 4, 32, 128>}, {pipeline_mode = #tpu.pipeline_mode<synchronous>, transform_indices = @transform_5, window_bounds = array<i64: 1, 128>}, {pipeline_mode = #tpu.pipeline_mode<synchronous>, transform_indices = @transform_6, window_bounds = array<i64: 1, 128>}, {pipeline_mode = #tpu.pipeline_mode<synchronous>, transform_indices = @transform_7, window_bounds = array<i64: 1, 128>}, {pipeline_mode = #tpu.pipeline_mode<synchronous>, transform_indices = @transform_8, window_bounds = array<i64: 1, 128>}, {pipeline_mode = #tpu.pipeline_mode<synchronous>, transform_indices = @transform_9, window_bounds = array<i64: 1, 128>}, {pipeline_mode = #tpu.pipeline_mode<synchronous>, transform_indices = @transform_10, window_bounds = array<i64: 128, 512>}, {pipeline_mode = #tpu.pipeline_mode<synchronous>, transform_indices = @transform_11, window_bounds = array<i64: 1, 512>}, {pipeline_mode = #tpu.pipeline_mode<synchronous>, transform_indices = @transform_12, window_bounds = array<i64: 512, 128>}, {pipeline_mode = #tpu.pipeline_mode<synchronous>, transform_indices = @transform_13, window_bounds = array<i64: 1, 128>}, {transform_indices = @transform_14, window_bounds = array<i64: 1, 4, 32, 16>}, {transform_indices = @transform_15, window_bounds = array<i64: 1, 4, 16, 32>}, {pipeline_mode = #tpu.pipeline_mode<synchronous>, transform_indices = @transform_16, window_bounds = array<i64: 4, 128, 32>}, {pipeline_mode = #tpu.pipeline_mode<synchronous>, transform_indices = @transform_17, window_bounds = array<i64: 4, 32, 128>}, {pipeline_mode = #tpu.pipeline_mode<synchronous>, transform_indices = @transform_18, window_bounds = array<i64: 1, 128>}, {pipeline_mode = #tpu.pipeline_mode<synchronous>, transform_indices = @transform_19, window_bounds = array<i64: 1, 128>}, {pipeline_mode = #tpu.pipeline_mode<synchronous>, transform_indices = @transform_20, window_bounds = array<i64: 1, 128>}, {pipeline_mode = #tpu.pipeline_mode<synchronous>, transform_indices = @transform_21, window_bounds = array<i64: 1, 128>}, {pipeline_mode = #tpu.pipeline_mode<synchronous>, transform_indices = @transform_22, window_bounds = array<i64: 1, 128>}, {pipeline_mode = #tpu.pipeline_mode<synchronous>, transform_indices = @transform_23, window_bounds = array<i64: 128, 512>}, {pipeline_mode = #tpu.pipeline_mode<synchronous>, transform_indices = @transform_24, window_bounds = array<i64: 1, 512>}, {pipeline_mode = #tpu.pipeline_mode<synchronous>, transform_indices = @transform_25, window_bounds = array<i64: 512, 128>}, {pipeline_mode = #tpu.pipeline_mode<synchronous>, transform_indices = @transform_26, window_bounds = array<i64: 1, 128>}, {transform_indices = @transform_27, window_bounds = array<i64: 1, 32, 128>}]} {
    %c0 = arith.constant 0 : index
    %c0_0 = arith.constant 0 : index
    %c0_1 = arith.constant 0 : index
    %0 = vector.load %arg2[%c0, %c0_0, %c0_1] : memref<1x32x128xf32, #tpu.memory_space<vmem>>, vector<1x32x128xf32>
    %1 = vector.shape_cast %0 : vector<1x32x128xf32> to vector<32x128xf32>
    %c0_2 = arith.constant 0 : index
    %c0_3 = arith.constant 0 : index
    %2 = vector.load %arg8[%c0_2, %c0_3] : memref<1x128xf32, #tpu.memory_space<vmem>>, vector<1x128xf32>
    %c0_4 = arith.constant 0 : index
    %c0_5 = arith.constant 0 : index
    %3 = vector.load %arg9[%c0_4, %c0_5] : memref<1x128xf32, #tpu.memory_space<vmem>>, vector<1x128xf32>
    %cst = arith.constant dense<0.000000e+00> : vector<32xf32>
    %4 = vector.multi_reduction <add>, %1, %cst [1] : vector<32x128xf32> to vector<32xf32>
    %5 = vector.shape_cast %4 : vector<32xf32> to vector<32x1xf32>
    %cst_6 = arith.constant 1.280000e+02 : f32
    %6 = vector.broadcast %cst_6 : f32 to vector<32x1xf32>
    %7 = arith.divf %5, %6 : vector<32x1xf32>
    %8 = vector.broadcast %7 : vector<32x1xf32> to vector<32x128xf32>
    %9 = arith.subf %1, %8 : vector<32x128xf32>
    %10 = arith.mulf %9, %9 : vector<32x128xf32>
    %cst_7 = arith.constant dense<0.000000e+00> : vector<32xf32>
    %11 = vector.multi_reduction <add>, %10, %cst_7 [1] : vector<32x128xf32> to vector<32xf32>
    %12 = vector.shape_cast %11 : vector<32xf32> to vector<32x1xf32>
    %cst_8 = arith.constant 1.280000e+02 : f32
    %13 = vector.broadcast %cst_8 : f32 to vector<32x1xf32>
    %14 = arith.divf %12, %13 : vector<32x1xf32>
    %cst_9 = arith.constant 9.99999974E-6 : f32
    %15 = vector.broadcast %cst_9 : f32 to vector<32x1xf32>
    %16 = arith.addf %14, %15 : vector<32x1xf32>
    %17 = math.rsqrt %16 : vector<32x1xf32>
    %18 = vector.broadcast %17 : vector<32x1xf32> to vector<32x128xf32>
    %19 = arith.mulf %9, %18 : vector<32x128xf32>
    %20 = vector.broadcast %2 : vector<1x128xf32> to vector<32x128xf32>
    %21 = arith.mulf %19, %20 : vector<32x128xf32>
    %22 = vector.broadcast %3 : vector<1x128xf32> to vector<32x128xf32>
    %23 = arith.addf %21, %22 : vector<32x128xf32>
    %c0_10 = arith.constant 0 : index
    %c0_11 = arith.constant 0 : index
    %c0_12 = arith.constant 0 : index
    %24 = vector.load %arg5[%c0_10, %c0_11, %c0_12] : memref<4x128x32xbf16, #tpu.memory_space<vmem>>, vector<4x128x32xbf16>
    %c0_13 = arith.constant 0 : index
    %c0_14 = arith.constant 0 : index
    %c0_15 = arith.constant 0 : index
    %c0_16 = arith.constant 0 : index
    %25 = vector.load %arg3[%c0_13, %c0_14, %c0_15, %c0_16] : memref<1x4x32x32xbf16, #tpu.memory_space<vmem>>, vector<1x4x32x32xbf16>
    %26 = vector.shape_cast %25 : vector<1x4x32x32xbf16> to vector<4x32x32xbf16>
    %c0_17 = arith.constant 0 : index
    %c0_18 = arith.constant 0 : index
    %c0_19 = arith.constant 0 : index
    %c0_20 = arith.constant 0 : index
    %27 = vector.load %arg4[%c0_17, %c0_18, %c0_19, %c0_20] : memref<1x4x32x32xbf16, #tpu.memory_space<vmem>>, vector<1x4x32x32xbf16>
    %28 = vector.shape_cast %27 : vector<1x4x32x32xbf16> to vector<4x32x32xbf16>
    %c0_21 = arith.constant 0 : index
    %c0_22 = arith.constant 0 : index
    %c0_23 = arith.constant 0 : index
    %29 = vector.load %arg6[%c0_21, %c0_22, %c0_23] : memref<4x32x128xbf16, #tpu.memory_space<vmem>>, vector<4x32x128xbf16>
    %c0_24 = arith.constant 0 : index
    %c0_25 = arith.constant 0 : index
    %30 = vector.load %arg7[%c0_24, %c0_25] : memref<1x128xf32, #tpu.memory_space<vmem>>, vector<1x128xf32>
    %31 = arith.truncf %23 : vector<32x128xf32> to vector<32x128xbf16>
    %32 = vector.shape_cast %31 : vector<32x128xbf16> to vector<1x32x128xbf16>
    %33 = vector.shape_cast %32 : vector<1x32x128xbf16> to vector<1x32x128xbf16>
    %34 = vector.broadcast %33 : vector<1x32x128xbf16> to vector<4x32x128xbf16>
    %cst_26 = arith.constant dense<0.000000e+00> : vector<4x32x32xf32>
    %35 = tpu.matmul %34, %24, %cst_26 {dimension_numbers = #tpu.dot_dimension_numbers<[2], [1], [1], [2], [0, 0, 0, 1, 1, 2], [0], [0]>} : vector<4x32x128xbf16>, vector<4x128x32xbf16>, vector<4x32x32xf32> -> vector<4x32x32xf32>
    %36 = arith.truncf %35 : vector<4x32x32xf32> to vector<4x32x32xbf16>
    %cst_27 = arith.constant dense<0.000000e+00> : vector<4x32x32xf32>
    %37 = tpu.matmul %36, %26, %cst_27 {dimension_numbers = #tpu.dot_dimension_numbers<[2], [1], [1], [2], [0, 0, 0, 1, 1, 2], [0], [0]>} : vector<4x32x32xbf16>, vector<4x32x32xbf16>, vector<4x32x32xf32> -> vector<4x32x32xf32>
    %cst_28 = arith.constant dense<0xFF800000> : vector<4x32xf32>
    %38 = vector.multi_reduction <maximumf>, %37, %cst_28 [2] : vector<4x32x32xf32> to vector<4x32xf32>
    %39 = vector.shape_cast %38 : vector<4x32xf32> to vector<4x32x1xf32>
    %40 = vector.broadcast %39 : vector<4x32x1xf32> to vector<4x32x32xf32>
    %41 = arith.subf %37, %40 : vector<4x32x32xf32>
    %42 = math.exp %41 : vector<4x32x32xf32>
    %cst_29 = arith.constant dense<0.000000e+00> : vector<4x32xf32>
    %43 = vector.multi_reduction <add>, %42, %cst_29 [2] : vector<4x32x32xf32> to vector<4x32xf32>
    %44 = vector.shape_cast %43 : vector<4x32xf32> to vector<4x32x1xf32>
    %45 = arith.truncf %42 : vector<4x32x32xf32> to vector<4x32x32xbf16>
    %cst_30 = arith.constant dense<0.000000e+00> : vector<4x32x32xf32>
    %46 = tpu.matmul %45, %28, %cst_30 {dimension_numbers = #tpu.dot_dimension_numbers<[2], [1], [1], [2], [0, 0, 0, 1, 1, 2], [0], [0]>} : vector<4x32x32xbf16>, vector<4x32x32xbf16>, vector<4x32x32xf32> -> vector<4x32x32xf32>
    %cst_31 = arith.constant 1.000000e+00 : f32
    %47 = vector.broadcast %cst_31 : f32 to vector<4x32x1xf32>
    %48 = arith.divf %47, %44 : vector<4x32x1xf32>
    %49 = vector.broadcast %48 : vector<4x32x1xf32> to vector<4x32x32xf32>
    %50 = arith.mulf %46, %49 : vector<4x32x32xf32>
    %51 = arith.truncf %50 : vector<4x32x32xf32> to vector<4x32x32xbf16>
    %cst_32 = arith.constant dense<0.000000e+00> : vector<4x32x128xf32>
    %52 = tpu.matmul %51, %29, %cst_32 {dimension_numbers = #tpu.dot_dimension_numbers<[2], [1], [1], [2], [0, 0, 0, 1, 1, 2], [0], [0]>} : vector<4x32x32xbf16>, vector<4x32x128xbf16>, vector<4x32x128xf32> -> vector<4x32x128xf32>
    %cst_33 = arith.constant dense<0.000000e+00> : vector<32x128xf32>
    %53 = vector.multi_reduction <add>, %52, %cst_33 [0] : vector<4x32x128xf32> to vector<32x128xf32>
    %54 = vector.broadcast %30 : vector<1x128xf32> to vector<32x128xf32>
    %55 = arith.addf %53, %54 : vector<32x128xf32>
    %56 = arith.addf %55, %1 : vector<32x128xf32>
    %c0_34 = arith.constant 0 : index
    %c0_35 = arith.constant 0 : index
    %57 = vector.load %arg10[%c0_34, %c0_35] : memref<1x128xf32, #tpu.memory_space<vmem>>, vector<1x128xf32>
    %c0_36 = arith.constant 0 : index
    %c0_37 = arith.constant 0 : index
    %58 = vector.load %arg11[%c0_36, %c0_37] : memref<1x128xf32, #tpu.memory_space<vmem>>, vector<1x128xf32>
    %cst_38 = arith.constant dense<0.000000e+00> : vector<32xf32>
    %59 = vector.multi_reduction <add>, %56, %cst_38 [1] : vector<32x128xf32> to vector<32xf32>
    %60 = vector.shape_cast %59 : vector<32xf32> to vector<32x1xf32>
    %cst_39 = arith.constant 1.280000e+02 : f32
    %61 = vector.broadcast %cst_39 : f32 to vector<32x1xf32>
    %62 = arith.divf %60, %61 : vector<32x1xf32>
    %63 = vector.broadcast %62 : vector<32x1xf32> to vector<32x128xf32>
    %64 = arith.subf %56, %63 : vector<32x128xf32>
    %65 = arith.mulf %64, %64 : vector<32x128xf32>
    %cst_40 = arith.constant dense<0.000000e+00> : vector<32xf32>
    %66 = vector.multi_reduction <add>, %65, %cst_40 [1] : vector<32x128xf32> to vector<32xf32>
    %67 = vector.shape_cast %66 : vector<32xf32> to vector<32x1xf32>
    %cst_41 = arith.constant 1.280000e+02 : f32
    %68 = vector.broadcast %cst_41 : f32 to vector<32x1xf32>
    %69 = arith.divf %67, %68 : vector<32x1xf32>
    %cst_42 = arith.constant 9.99999974E-6 : f32
    %70 = vector.broadcast %cst_42 : f32 to vector<32x1xf32>
    %71 = arith.addf %69, %70 : vector<32x1xf32>
    %72 = math.rsqrt %71 : vector<32x1xf32>
    %73 = vector.broadcast %72 : vector<32x1xf32> to vector<32x128xf32>
    %74 = arith.mulf %64, %73 : vector<32x128xf32>
    %75 = vector.broadcast %57 : vector<1x128xf32> to vector<32x128xf32>
    %76 = arith.mulf %74, %75 : vector<32x128xf32>
    %77 = vector.broadcast %58 : vector<1x128xf32> to vector<32x128xf32>
    %78 = arith.addf %76, %77 : vector<32x128xf32>
    %c0_43 = arith.constant 0 : index
    %c0_44 = arith.constant 0 : index
    %79 = vector.load %arg12[%c0_43, %c0_44] : memref<128x512xbf16, #tpu.memory_space<vmem>>, vector<128x512xbf16>
    %c0_45 = arith.constant 0 : index
    %c0_46 = arith.constant 0 : index
    %80 = vector.load %arg13[%c0_45, %c0_46] : memref<1x512xf32, #tpu.memory_space<vmem>>, vector<1x512xf32>
    %c0_47 = arith.constant 0 : index
    %c0_48 = arith.constant 0 : index
    %81 = vector.load %arg14[%c0_47, %c0_48] : memref<512x128xbf16, #tpu.memory_space<vmem>>, vector<512x128xbf16>
    %c0_49 = arith.constant 0 : index
    %c0_50 = arith.constant 0 : index
    %82 = vector.load %arg15[%c0_49, %c0_50] : memref<1x128xf32, #tpu.memory_space<vmem>>, vector<1x128xf32>
    %83 = arith.truncf %78 : vector<32x128xf32> to vector<32x128xbf16>
    %cst_51 = arith.constant dense<0.000000e+00> : vector<32x512xf32>
    %84 = tpu.matmul %83, %79, %cst_51 {dimension_numbers = #tpu.dot_dimension_numbers<[1], [0], [0], [1], [0, 0, 1, 1], [], []>} : vector<32x128xbf16>, vector<128x512xbf16>, vector<32x512xf32> -> vector<32x512xf32>
    %85 = vector.broadcast %80 : vector<1x512xf32> to vector<32x512xf32>
    %86 = arith.addf %84, %85 : vector<32x512xf32>
    %cst_52 = arith.constant 5.000000e-01 : f32
    %87 = vector.broadcast %cst_52 : f32 to vector<32x512xf32>
    %88 = arith.mulf %87, %86 : vector<32x512xf32>
    %cst_53 = arith.constant 4.471500e-02 : f32
    %89 = vector.broadcast %cst_53 : f32 to vector<32x512xf32>
    %90 = arith.mulf %89, %86 : vector<32x512xf32>
    %91 = arith.mulf %90, %86 : vector<32x512xf32>
    %92 = arith.mulf %91, %86 : vector<32x512xf32>
    %93 = arith.addf %86, %92 : vector<32x512xf32>
    %cst_54 = arith.constant 0.797884583 : f32
    %94 = vector.broadcast %cst_54 : f32 to vector<32x512xf32>
    %95 = arith.mulf %94, %93 : vector<32x512xf32>
    %96 = math.tanh %95 : vector<32x512xf32>
    %cst_55 = arith.constant 1.000000e+00 : f32
    %97 = vector.broadcast %cst_55 : f32 to vector<32x512xf32>
    %98 = arith.addf %97, %96 : vector<32x512xf32>
    %99 = arith.mulf %88, %98 : vector<32x512xf32>
    %100 = arith.truncf %99 : vector<32x512xf32> to vector<32x512xbf16>
    %cst_56 = arith.constant dense<0.000000e+00> : vector<32x128xf32>
    %101 = tpu.matmul %100, %81, %cst_56 {dimension_numbers = #tpu.dot_dimension_numbers<[1], [0], [0], [1], [0, 0, 1, 1], [], []>} : vector<32x512xbf16>, vector<512x128xbf16>, vector<32x128xf32> -> vector<32x128xf32>
    %102 = vector.broadcast %82 : vector<1x128xf32> to vector<32x128xf32>
    %103 = arith.addf %101, %102 : vector<32x128xf32>
    %104 = arith.addf %103, %56 : vector<32x128xf32>
    %c0_57 = arith.constant 0 : index
    %c0_58 = arith.constant 0 : index
    %105 = vector.load %arg21[%c0_57, %c0_58] : memref<1x128xf32, #tpu.memory_space<vmem>>, vector<1x128xf32>
    %c0_59 = arith.constant 0 : index
    %c0_60 = arith.constant 0 : index
    %106 = vector.load %arg22[%c0_59, %c0_60] : memref<1x128xf32, #tpu.memory_space<vmem>>, vector<1x128xf32>
    %cst_61 = arith.constant dense<0.000000e+00> : vector<32xf32>
    %107 = vector.multi_reduction <add>, %104, %cst_61 [1] : vector<32x128xf32> to vector<32xf32>
    %108 = vector.shape_cast %107 : vector<32xf32> to vector<32x1xf32>
    %cst_62 = arith.constant 1.280000e+02 : f32
    %109 = vector.broadcast %cst_62 : f32 to vector<32x1xf32>
    %110 = arith.divf %108, %109 : vector<32x1xf32>
    %111 = vector.broadcast %110 : vector<32x1xf32> to vector<32x128xf32>
    %112 = arith.subf %104, %111 : vector<32x128xf32>
    %113 = arith.mulf %112, %112 : vector<32x128xf32>
    %cst_63 = arith.constant dense<0.000000e+00> : vector<32xf32>
    %114 = vector.multi_reduction <add>, %113, %cst_63 [1] : vector<32x128xf32> to vector<32xf32>
    %115 = vector.shape_cast %114 : vector<32xf32> to vector<32x1xf32>
    %cst_64 = arith.constant 1.280000e+02 : f32
    %116 = vector.broadcast %cst_64 : f32 to vector<32x1xf32>
    %117 = arith.divf %115, %116 : vector<32x1xf32>
    %cst_65 = arith.constant 9.99999974E-6 : f32
    %118 = vector.broadcast %cst_65 : f32 to vector<32x1xf32>
    %119 = arith.addf %117, %118 : vector<32x1xf32>
    %120 = math.rsqrt %119 : vector<32x1xf32>
    %121 = vector.broadcast %120 : vector<32x1xf32> to vector<32x128xf32>
    %122 = arith.mulf %112, %121 : vector<32x128xf32>
    %123 = vector.broadcast %105 : vector<1x128xf32> to vector<32x128xf32>
    %124 = arith.mulf %122, %123 : vector<32x128xf32>
    %125 = vector.broadcast %106 : vector<1x128xf32> to vector<32x128xf32>
    %126 = arith.addf %124, %125 : vector<32x128xf32>
    %c0_66 = arith.constant 0 : index
    %c0_67 = arith.constant 0 : index
    %c0_68 = arith.constant 0 : index
    %127 = vector.load %arg18[%c0_66, %c0_67, %c0_68] : memref<4x128x32xbf16, #tpu.memory_space<vmem>>, vector<4x128x32xbf16>
    %c0_69 = arith.constant 0 : index
    %c0_70 = arith.constant 0 : index
    %c0_71 = arith.constant 0 : index
    %c0_72 = arith.constant 0 : index
    %128 = vector.load %arg16[%c0_69, %c0_70, %c0_71, %c0_72] : memref<1x4x32x16xbf16, #tpu.memory_space<vmem>>, vector<1x4x32x16xbf16>
    %129 = vector.shape_cast %128 : vector<1x4x32x16xbf16> to vector<4x32x16xbf16>
    %c0_73 = arith.constant 0 : index
    %c0_74 = arith.constant 0 : index
    %c0_75 = arith.constant 0 : index
    %c0_76 = arith.constant 0 : index
    %130 = vector.load %arg17[%c0_73, %c0_74, %c0_75, %c0_76] : memref<1x4x16x32xbf16, #tpu.memory_space<vmem>>, vector<1x4x16x32xbf16>
    %131 = vector.shape_cast %130 : vector<1x4x16x32xbf16> to vector<4x16x32xbf16>
    %c0_77 = arith.constant 0 : index
    %c0_78 = arith.constant 0 : index
    %c0_79 = arith.constant 0 : index
    %132 = vector.load %arg19[%c0_77, %c0_78, %c0_79] : memref<4x32x128xbf16, #tpu.memory_space<vmem>>, vector<4x32x128xbf16>
    %c0_80 = arith.constant 0 : index
    %c0_81 = arith.constant 0 : index
    %133 = vector.load %arg20[%c0_80, %c0_81] : memref<1x128xf32, #tpu.memory_space<vmem>>, vector<1x128xf32>
    %134 = arith.truncf %126 : vector<32x128xf32> to vector<32x128xbf16>
    %135 = vector.shape_cast %134 : vector<32x128xbf16> to vector<1x32x128xbf16>
    %136 = vector.shape_cast %135 : vector<1x32x128xbf16> to vector<1x32x128xbf16>
    %137 = vector.broadcast %136 : vector<1x32x128xbf16> to vector<4x32x128xbf16>
    %cst_82 = arith.constant dense<0.000000e+00> : vector<4x32x32xf32>
    %138 = tpu.matmul %137, %127, %cst_82 {dimension_numbers = #tpu.dot_dimension_numbers<[2], [1], [1], [2], [0, 0, 0, 1, 1, 2], [0], [0]>} : vector<4x32x128xbf16>, vector<4x128x32xbf16>, vector<4x32x32xf32> -> vector<4x32x32xf32>
    %139 = arith.truncf %138 : vector<4x32x32xf32> to vector<4x32x32xbf16>
    %cst_83 = arith.constant dense<0.000000e+00> : vector<4x32x16xf32>
    %140 = tpu.matmul %139, %129, %cst_83 {dimension_numbers = #tpu.dot_dimension_numbers<[2], [1], [1], [2], [0, 0, 0, 1, 1, 2], [0], [0]>} : vector<4x32x32xbf16>, vector<4x32x16xbf16>, vector<4x32x16xf32> -> vector<4x32x16xf32>
    %cst_84 = arith.constant dense<0xFF800000> : vector<4x32xf32>
    %141 = vector.multi_reduction <maximumf>, %140, %cst_84 [2] : vector<4x32x16xf32> to vector<4x32xf32>
    %142 = vector.shape_cast %141 : vector<4x32xf32> to vector<4x32x1xf32>
    %143 = vector.broadcast %142 : vector<4x32x1xf32> to vector<4x32x16xf32>
    %144 = arith.subf %140, %143 : vector<4x32x16xf32>
    %145 = math.exp %144 : vector<4x32x16xf32>
    %cst_85 = arith.constant dense<0.000000e+00> : vector<4x32xf32>
    %146 = vector.multi_reduction <add>, %145, %cst_85 [2] : vector<4x32x16xf32> to vector<4x32xf32>
    %147 = vector.shape_cast %146 : vector<4x32xf32> to vector<4x32x1xf32>
    %148 = arith.truncf %145 : vector<4x32x16xf32> to vector<4x32x16xbf16>
    %cst_86 = arith.constant dense<0.000000e+00> : vector<4x32x32xf32>
    %149 = tpu.matmul %148, %131, %cst_86 {dimension_numbers = #tpu.dot_dimension_numbers<[2], [1], [1], [2], [0, 0, 0, 1, 1, 2], [0], [0]>} : vector<4x32x16xbf16>, vector<4x16x32xbf16>, vector<4x32x32xf32> -> vector<4x32x32xf32>
    %cst_87 = arith.constant 1.000000e+00 : f32
    %150 = vector.broadcast %cst_87 : f32 to vector<4x32x1xf32>
    %151 = arith.divf %150, %147 : vector<4x32x1xf32>
    %152 = vector.broadcast %151 : vector<4x32x1xf32> to vector<4x32x32xf32>
    %153 = arith.mulf %149, %152 : vector<4x32x32xf32>
    %154 = arith.truncf %153 : vector<4x32x32xf32> to vector<4x32x32xbf16>
    %cst_88 = arith.constant dense<0.000000e+00> : vector<4x32x128xf32>
    %155 = tpu.matmul %154, %132, %cst_88 {dimension_numbers = #tpu.dot_dimension_numbers<[2], [1], [1], [2], [0, 0, 0, 1, 1, 2], [0], [0]>} : vector<4x32x32xbf16>, vector<4x32x128xbf16>, vector<4x32x128xf32> -> vector<4x32x128xf32>
    %cst_89 = arith.constant dense<0.000000e+00> : vector<32x128xf32>
    %156 = vector.multi_reduction <add>, %155, %cst_89 [0] : vector<4x32x128xf32> to vector<32x128xf32>
    %157 = vector.broadcast %133 : vector<1x128xf32> to vector<32x128xf32>
    %158 = arith.addf %156, %157 : vector<32x128xf32>
    %159 = arith.addf %158, %104 : vector<32x128xf32>
    %c0_90 = arith.constant 0 : index
    %c0_91 = arith.constant 0 : index
    %160 = vector.load %arg23[%c0_90, %c0_91] : memref<1x128xf32, #tpu.memory_space<vmem>>, vector<1x128xf32>
    %c0_92 = arith.constant 0 : index
    %c0_93 = arith.constant 0 : index
    %161 = vector.load %arg24[%c0_92, %c0_93] : memref<1x128xf32, #tpu.memory_space<vmem>>, vector<1x128xf32>
    %cst_94 = arith.constant dense<0.000000e+00> : vector<32xf32>
    %162 = vector.multi_reduction <add>, %159, %cst_94 [1] : vector<32x128xf32> to vector<32xf32>
    %163 = vector.shape_cast %162 : vector<32xf32> to vector<32x1xf32>
    %cst_95 = arith.constant 1.280000e+02 : f32
    %164 = vector.broadcast %cst_95 : f32 to vector<32x1xf32>
    %165 = arith.divf %163, %164 : vector<32x1xf32>
    %166 = vector.broadcast %165 : vector<32x1xf32> to vector<32x128xf32>
    %167 = arith.subf %159, %166 : vector<32x128xf32>
    %168 = arith.mulf %167, %167 : vector<32x128xf32>
    %cst_96 = arith.constant dense<0.000000e+00> : vector<32xf32>
    %169 = vector.multi_reduction <add>, %168, %cst_96 [1] : vector<32x128xf32> to vector<32xf32>
    %170 = vector.shape_cast %169 : vector<32xf32> to vector<32x1xf32>
    %cst_97 = arith.constant 1.280000e+02 : f32
    %171 = vector.broadcast %cst_97 : f32 to vector<32x1xf32>
    %172 = arith.divf %170, %171 : vector<32x1xf32>
    %cst_98 = arith.constant 9.99999974E-6 : f32
    %173 = vector.broadcast %cst_98 : f32 to vector<32x1xf32>
    %174 = arith.addf %172, %173 : vector<32x1xf32>
    %175 = math.rsqrt %174 : vector<32x1xf32>
    %176 = vector.broadcast %175 : vector<32x1xf32> to vector<32x128xf32>
    %177 = arith.mulf %167, %176 : vector<32x128xf32>
    %178 = vector.broadcast %160 : vector<1x128xf32> to vector<32x128xf32>
    %179 = arith.mulf %177, %178 : vector<32x128xf32>
    %180 = vector.broadcast %161 : vector<1x128xf32> to vector<32x128xf32>
    %181 = arith.addf %179, %180 : vector<32x128xf32>
    %c0_99 = arith.constant 0 : index
    %c0_100 = arith.constant 0 : index
    %182 = vector.load %arg25[%c0_99, %c0_100] : memref<128x512xbf16, #tpu.memory_space<vmem>>, vector<128x512xbf16>
    %c0_101 = arith.constant 0 : index
    %c0_102 = arith.constant 0 : index
    %183 = vector.load %arg26[%c0_101, %c0_102] : memref<1x512xf32, #tpu.memory_space<vmem>>, vector<1x512xf32>
    %c0_103 = arith.constant 0 : index
    %c0_104 = arith.constant 0 : index
    %184 = vector.load %arg27[%c0_103, %c0_104] : memref<512x128xbf16, #tpu.memory_space<vmem>>, vector<512x128xbf16>
    %c0_105 = arith.constant 0 : index
    %c0_106 = arith.constant 0 : index
    %185 = vector.load %arg28[%c0_105, %c0_106] : memref<1x128xf32, #tpu.memory_space<vmem>>, vector<1x128xf32>
    %186 = arith.truncf %181 : vector<32x128xf32> to vector<32x128xbf16>
    %cst_107 = arith.constant dense<0.000000e+00> : vector<32x512xf32>
    %187 = tpu.matmul %186, %182, %cst_107 {dimension_numbers = #tpu.dot_dimension_numbers<[1], [0], [0], [1], [0, 0, 1, 1], [], []>} : vector<32x128xbf16>, vector<128x512xbf16>, vector<32x512xf32> -> vector<32x512xf32>
    %188 = vector.broadcast %183 : vector<1x512xf32> to vector<32x512xf32>
    %189 = arith.addf %187, %188 : vector<32x512xf32>
    %cst_108 = arith.constant 5.000000e-01 : f32
    %190 = vector.broadcast %cst_108 : f32 to vector<32x512xf32>
    %191 = arith.mulf %190, %189 : vector<32x512xf32>
    %cst_109 = arith.constant 4.471500e-02 : f32
    %192 = vector.broadcast %cst_109 : f32 to vector<32x512xf32>
    %193 = arith.mulf %192, %189 : vector<32x512xf32>
    %194 = arith.mulf %193, %189 : vector<32x512xf32>
    %195 = arith.mulf %194, %189 : vector<32x512xf32>
    %196 = arith.addf %189, %195 : vector<32x512xf32>
    %cst_110 = arith.constant 0.797884583 : f32
    %197 = vector.broadcast %cst_110 : f32 to vector<32x512xf32>
    %198 = arith.mulf %197, %196 : vector<32x512xf32>
    %199 = math.tanh %198 : vector<32x512xf32>
    %cst_111 = arith.constant 1.000000e+00 : f32
    %200 = vector.broadcast %cst_111 : f32 to vector<32x512xf32>
    %201 = arith.addf %200, %199 : vector<32x512xf32>
    %202 = arith.mulf %191, %201 : vector<32x512xf32>
    %203 = arith.truncf %202 : vector<32x512xf32> to vector<32x512xbf16>
    %cst_112 = arith.constant dense<0.000000e+00> : vector<32x128xf32>
    %204 = tpu.matmul %203, %184, %cst_112 {dimension_numbers = #tpu.dot_dimension_numbers<[1], [0], [0], [1], [0, 0, 1, 1], [], []>} : vector<32x512xbf16>, vector<512x128xbf16>, vector<32x128xf32> -> vector<32x128xf32>
    %205 = vector.broadcast %185 : vector<1x128xf32> to vector<32x128xf32>
    %206 = arith.addf %204, %205 : vector<32x128xf32>
    %207 = arith.addf %206, %159 : vector<32x128xf32>
    %c0_113 = arith.constant 0 : index
    %c0_114 = arith.constant 0 : index
    %c0_115 = arith.constant 0 : index
    %208 = vector.load %arg29[%c0_113, %c0_114, %c0_115] : memref<1x32x128xf32, #tpu.memory_space<vmem>>, vector<1x32x128xf32>
    %209 = vector.shape_cast %208 : vector<1x32x128xf32> to vector<32x128xf32>
    %210 = vector.shape_cast %207 : vector<32x128xf32> to vector<1x32x128xf32>
    tpu.vector_store %arg29[%c0_113, %c0_114, %c0_115], %210 {strides = array<i32>} : memref<1x32x128xf32, #tpu.memory_space<vmem>>, vector<1x32x128xf32>,
    return
  }
  func.func @transform_0(%arg0: i32, %arg1: i32) -> (i32, i32, i32) {
    %c0_i32 = arith.constant 0 : i32
    %c0_i32_0 = arith.constant 0 : i32
    return %arg0, %arg1, %c0_i32 : i32, i32, i32
  }
  func.func @transform_1(%arg0: i32, %arg1: i32) -> (i32, i32, i32, i32) {
    %c0_i32 = arith.constant 0 : i32
    %c0_i32_0 = arith.constant 0 : i32
    %c0_i32_1 = arith.constant 0 : i32
    %c0_i32_2 = arith.constant 0 : i32
    return %arg0, %c0_i32, %c0_i32_0, %c0_i32_1 : i32, i32, i32, i32
  }
  func.func @transform_2(%arg0: i32, %arg1: i32) -> (i32, i32, i32, i32) {
    %c0_i32 = arith.constant 0 : i32
    %c0_i32_0 = arith.constant 0 : i32
    %c0_i32_1 = arith.constant 0 : i32
    %c0_i32_2 = arith.constant 0 : i32
    return %arg0, %c0_i32, %c0_i32_0, %c0_i32_1 : i32, i32, i32, i32
  }
  func.func @transform_3(%arg0: i32, %arg1: i32) -> (i32, i32, i32) {
    %c0_i32 = arith.constant 0 : i32
    %c0_i32_0 = arith.constant 0 : i32
    %c0_i32_1 = arith.constant 0 : i32
    %c0_i32_2 = arith.constant 0 : i32
    return %c0_i32, %c0_i32_0, %c0_i32_1 : i32, i32, i32
  }
  func.func @transform_4(%arg0: i32, %arg1: i32) -> (i32, i32, i32) {
    %c0_i32 = arith.constant 0 : i32
    %c0_i32_0 = arith.constant 0 : i32
    %c0_i32_1 = arith.constant 0 : i32
    %c0_i32_2 = arith.constant 0 : i32
    return %c0_i32, %c0_i32_0, %c0_i32_1 : i32, i32, i32
  }
  func.func @transform_5(%arg0: i32, %arg1: i32) -> (i32, i32) {
    %c0_i32 = arith.constant 0 : i32
    %c0_i32_0 = arith.constant 0 : i32
    %c0_i32_1 = arith.constant 0 : i32
    return %c0_i32, %c0_i32_0 : i32, i32
  }
  func.func @transform_6(%arg0: i32, %arg1: i32) -> (i32, i32) {
    %c0_i32 = arith.constant 0 : i32
    %c0_i32_0 = arith.constant 0 : i32
    %c0_i32_1 = arith.constant 0 : i32
    return %c0_i32, %c0_i32_0 : i32, i32
  }
  func.func @transform_7(%arg0: i32, %arg1: i32) -> (i32, i32) {
    %c0_i32 = arith.constant 0 : i32
    %c0_i32_0 = arith.constant 0 : i32
    %c0_i32_1 = arith.constant 0 : i32
    return %c0_i32, %c0_i32_0 : i32, i32
  }
  func.func @transform_8(%arg0: i32, %arg1: i32) -> (i32, i32) {
    %c0_i32 = arith.constant 0 : i32
    %c0_i32_0 = arith.constant 0 : i32
    %c0_i32_1 = arith.constant 0 : i32
    return %c0_i32, %c0_i32_0 : i32, i32
  }
  func.func @transform_9(%arg0: i32, %arg1: i32) -> (i32, i32) {
    %c0_i32 = arith.constant 0 : i32
    %c0_i32_0 = arith.constant 0 : i32
    %c0_i32_1 = arith.constant 0 : i32
    return %c0_i32, %c0_i32_0 : i32, i32
  }
  func.func @transform_10(%arg0: i32, %arg1: i32) -> (i32, i32) {
    %c0_i32 = arith.constant 0 : i32
    %c0_i32_0 = arith.constant 0 : i32
    %c0_i32_1 = arith.constant 0 : i32
    return %c0_i32, %c0_i32_0 : i32, i32
  }
  func.func @transform_11(%arg0: i32, %arg1: i32) -> (i32, i32) {
    %c0_i32 = arith.constant 0 : i32
    %c0_i32_0 = arith.constant 0 : i32
    %c0_i32_1 = arith.constant 0 : i32
    return %c0_i32, %c0_i32_0 : i32, i32
  }
  func.func @transform_12(%arg0: i32, %arg1: i32) -> (i32, i32) {
    %c0_i32 = arith.constant 0 : i32
    %c0_i32_0 = arith.constant 0 : i32
    %c0_i32_1 = arith.constant 0 : i32
    return %c0_i32, %c0_i32_0 : i32, i32
  }
  func.func @transform_13(%arg0: i32, %arg1: i32) -> (i32, i32) {
    %c0_i32 = arith.constant 0 : i32
    %c0_i32_0 = arith.constant 0 : i32
    %c0_i32_1 = arith.constant 0 : i32
    return %c0_i32, %c0_i32_0 : i32, i32
  }
  func.func @transform_14(%arg0: i32, %arg1: i32) -> (i32, i32, i32, i32) {
    %c0_i32 = arith.constant 0 : i32
    %c0_i32_0 = arith.constant 0 : i32
    %c0_i32_1 = arith.constant 0 : i32
    %c0_i32_2 = arith.constant 0 : i32
    return %arg0, %c0_i32, %c0_i32_0, %c0_i32_1 : i32, i32, i32, i32
  }
  func.func @transform_15(%arg0: i32, %arg1: i32) -> (i32, i32, i32, i32) {
    %c0_i32 = arith.constant 0 : i32
    %c0_i32_0 = arith.constant 0 : i32
    %c0_i32_1 = arith.constant 0 : i32
    %c0_i32_2 = arith.constant 0 : i32
    return %arg0, %c0_i32, %c0_i32_0, %c0_i32_1 : i32, i32, i32, i32
  }
  func.func @transform_16(%arg0: i32, %arg1: i32) -> (i32, i32, i32) {
    %c0_i32 = arith.constant 0 : i32
    %c0_i32_0 = arith.constant 0 : i32
    %c0_i32_1 = arith.constant 0 : i32
    %c0_i32_2 = arith.constant 0 : i32
    return %c0_i32, %c0_i32_0, %c0_i32_1 : i32, i32, i32
  }
  func.func @transform_17(%arg0: i32, %arg1: i32) -> (i32, i32, i32) {
    %c0_i32 = arith.constant 0 : i32
    %c0_i32_0 = arith.constant 0 : i32
    %c0_i32_1 = arith.constant 0 : i32
    %c0_i32_2 = arith.constant 0 : i32
    return %c0_i32, %c0_i32_0, %c0_i32_1 : i32, i32, i32
  }
  func.func @transform_18(%arg0: i32, %arg1: i32) -> (i32, i32) {
    %c0_i32 = arith.constant 0 : i32
    %c0_i32_0 = arith.constant 0 : i32
    %c0_i32_1 = arith.constant 0 : i32
    return %c0_i32, %c0_i32_0 : i32, i32
  }
  func.func @transform_19(%arg0: i32, %arg1: i32) -> (i32, i32) {
    %c0_i32 = arith.constant 0 : i32
    %c0_i32_0 = arith.constant 0 : i32
    %c0_i32_1 = arith.constant 0 : i32
    return %c0_i32, %c0_i32_0 : i32, i32
  }
  func.func @transform_20(%arg0: i32, %arg1: i32) -> (i32, i32) {
    %c0_i32 = arith.constant 0 : i32
    %c0_i32_0 = arith.constant 0 : i32
    %c0_i32_1 = arith.constant 0 : i32
    return %c0_i32, %c0_i32_0 : i32, i32
  }
  func.func @transform_21(%arg0: i32, %arg1: i32) -> (i32, i32) {
    %c0_i32 = arith.constant 0 : i32
    %c0_i32_0 = arith.constant 0 : i32
    %c0_i32_1 = arith.constant 0 : i32
    return %c0_i32, %c0_i32_0 : i32, i32
  }
  func.func @transform_22(%arg0: i32, %arg1: i32) -> (i32, i32) {
    %c0_i32 = arith.constant 0 : i32
    %c0_i32_0 = arith.constant 0 : i32
    %c0_i32_1 = arith.constant 0 : i32
    return %c0_i32, %c0_i32_0 : i32, i32
  }
  func.func @transform_23(%arg0: i32, %arg1: i32) -> (i32, i32) {
    %c0_i32 = arith.constant 0 : i32
    %c0_i32_0 = arith.constant 0 : i32
    %c0_i32_1 = arith.constant 0 : i32
    return %c0_i32, %c0_i32_0 : i32, i32
  }
  func.func @transform_24(%arg0: i32, %arg1: i32) -> (i32, i32) {
    %c0_i32 = arith.constant 0 : i32
    %c0_i32_0 = arith.constant 0 : i32
    %c0_i32_1 = arith.constant 0 : i32
    return %c0_i32, %c0_i32_0 : i32, i32
  }
  func.func @transform_25(%arg0: i32, %arg1: i32) -> (i32, i32) {
    %c0_i32 = arith.constant 0 : i32
    %c0_i32_0 = arith.constant 0 : i32
    %c0_i32_1 = arith.constant 0 : i32
    return %c0_i32, %c0_i32_0 : i32, i32
  }
  func.func @transform_26(%arg0: i32, %arg1: i32) -> (i32, i32) {
    %c0_i32 = arith.constant 0 : i32
    %c0_i32_0 = arith.constant 0 : i32
    %c0_i32_1 = arith.constant 0 : i32
    return %c0_i32, %c0_i32_0 : i32, i32
  }
  func.func @transform_27(%arg0: i32, %arg1: i32) -> (i32, i32, i32) {
    %c0_i32 = arith.constant 0 : i32
    %c0_i32_0 = arith.constant 0 : i32
    return %arg0, %arg1, %c0_i32 : i32, i32, i32
  }
}

</mosaic_0001>

<bundles_post_ra>
// kernel: tpu_custom_call.1
= control target key start
LH: loop header
LB: loop body
LE: loop exit
PB: predicated region body
PF: predicated region fallthrough
CT: control target
= control target key end

     0   :  { %s11045_s0 = inlined_call_operand.vmem [shape: f32[2,32,128], index: 0, kind: input, shape index: {}]   ;;  %s11046_s1 = inlined_call_operand.hbm [shape: bf16[2,4,32,32], index: 1, kind: input, shape index: {}]   ;;  %s11047_s2 = inlined_call_operand.hbm [shape: bf16[2,4,32,32], index: 2, kind: input, shape index: {}]   ;;  %s11048_s3 = inlined_call_operand.vmem [shape: bf16[4,128,32], index: 3, kind: input, shape index: {}]   ;;  %s11049_s4 = inlined_call_operand.hbm [shape: bf16[4,32,128], index: 4, kind: input, shape index: {}]   ;;  %s11050_s5 = inlined_call_operand.hbm [shape: f32[1,128], index: 5, kind: input, shape index: {}]   ;;  %s11051_s6 = inlined_call_operand.hbm [shape: f32[1,128], index: 6, kind: input, shape index: {}]   ;;  %s11052_s7 = inlined_call_operand.hbm [shape: f32[1,128], index: 7, kind: input, shape index: {}]   ;;  %s11053_s8 = inlined_call_operand.hbm [shape: f32[1,128], index: 8, kind: input, shape index: {}]   ;;  %s11054_s9 = inlined_call_operand.hbm [shape: f32[1,128], index: 9, kind: input, shape index: {}]   ;;  %s11055_s10 = inlined_call_operand.vmem [shape: bf16[128,512], index: 10, kind: input, shape index: {}]   ;;  %s11056_s11 = inlined_call_operand.vmem [shape: f32[1,512], index: 11, kind: input, shape index: {}]   ;;  %s11057_s12 = inlined_call_operand.vmem [shape: bf16[512,128], index: 12, kind: input, shape index: {}]   ;;  %s11058_s13 = inlined_call_operand.hbm [shape: f32[1,128], index: 13, kind: input, shape index: {}]   ;;  %s11059_s14 = inlined_call_operand.vmem [shape: bf16[2,4,32,16], index: 14, kind: input, shape index: {}]   ;;  %s11060_s15 = inlined_call_operand.hbm [shape: bf16[2,4,16,32], index: 15, kind: input, shape index: {}]   ;;  %s11061_s16 = inlined_call_operand.vmem [shape: bf16[4,128,32], index: 16, kind: input, shape index: {}]   ;;  %s11062_s17 = inlined_call_operand.hbm [shape: bf16[4,32,128], index: 17, kind: input, shape index: {}]   ;;  %s11063_s18 = inlined_call_operand.vmem [shape: f32[1,128], index: 18, kind: input, shape index: {}]   ;;  %s11064_s19 = inlined_call_operand.vmem [shape: f32[1,128], index: 19, kind: input, shape index: {}]   ;;  %s11065_s20 = inlined_call_operand.vmem [shape: f32[1,128], index: 20, kind: input, shape index: {}]   ;;  %s11066_s21 = inlined_call_operand.vmem [shape: f32[1,128], index: 21, kind: input, shape index: {}]   ;;  %s11067_s22 = inlined_call_operand.vmem [shape: f32[1,128], index: 22, kind: input, shape index: {}]   ;;  %s11068_s23 = inlined_call_operand.vmem [shape: bf16[128,512], index: 23, kind: input, shape index: {}]   ;;  %s11069_s24 = inlined_call_operand.vmem [shape: f32[1,512], index: 24, kind: input, shape index: {}]   ;;  %s11070_s25 = inlined_call_operand.hbm [shape: bf16[512,128], index: 25, kind: input, shape index: {}]   ;;  %s11071_s26 = inlined_call_operand.vmem [shape: f32[1,128], index: 26, kind: input, shape index: {}]   ;;  %s11072_s27 = inlined_call_operand.hbm [shape: f32[2,32,128], index: 27, kind: output, shape index: {}]  }
   0x1   :  { %11085 = sst [smem:[#allocation36_spill]] %s11045_s0 }
   0x2   :  { %11086 = sst [smem:[#allocation37_spill]] %s11046_s1 }
   0x3   :  { %11087 = sst [smem:[#allocation38_spill]] %s11047_s2 }
   0x4   :  { %11088 = sst [smem:[#allocation39_spill]] %s11048_s3 }
   0x5   :  { %11089 = sst [smem:[#allocation40_spill]] %s11049_s4 }
   0x6   :  { %11090 = sst [smem:[#allocation41_spill]] %s11050_s5 }
   0x7   :  { %11091 = sst [smem:[#allocation42_spill]] %s11051_s6 }
   0x8   :  { %11092 = sst [smem:[#allocation43_spill]] %s11052_s7 }
   0x9   :  { %11093 = sst [smem:[#allocation44_spill]] %s11053_s8 }
   0xa   :  { %11094 = sst [smem:[#allocation45_spill]] %s11054_s9 }
   0xb   :  { %11095 = sst [smem:[#allocation46_spill]] %s11055_s10 }
   0xc   :  { %11096 = sst [smem:[#allocation47_spill]] %s11056_s11 }
   0xd   :  { %11097 = sst [smem:[#allocation48_spill]] %s11058_s13 }
   0xe   :  { %11098 = sst [smem:[#allocation49_spill]] %s11059_s14 }
   0xf   :  { %11099 = sst [smem:[#allocation50_spill]] %s11061_s16 }
  0x10   :  { %11100 = sst [smem:[#allocation51_spill]] %s11062_s17 }
  0x11   :  { %11101 = sst [smem:[#allocation52_spill]] %s11063_s18 }
  0x12   :  { %11102 = sst [smem:[#allocation53_spill]] %s11064_s19 }
  0x13   :  { %11103 = sst [smem:[#allocation54_spill]] %s11065_s20 }
  0x14   :  { %11104 = sst [smem:[#allocation55_spill]] %s11066_s21 }
  0x15   :  { %11105 = sst [smem:[#allocation56_spill]] %s11067_s22 }
  0x16   :  { %11106 = sst [smem:[#allocation57_spill]] %s11068_s23 }
  0x17   :  { %11107 = sst [smem:[#allocation58_spill]] %s11069_s24 }
  0x18   :  { %11108 = sst [smem:[#allocation59_spill]] %s11070_s25 }
  0x19   :  { %11109 = sst [smem:[#allocation60_spill]] %s11071_s26 }
  0x1a   :  { %11110 = sst [smem:[#allocation61_spill]] %s11072_s27 }
  0x1b   :  { %32 = vsyncpa [#allocation3], 0 }
  0x1c   :  { %34 = vsyncpa [#allocation3 + $0x1], 0 }
  0x1d   :  { %35 = vsyncpa [#allocation6], 0 }
  0x1e   :  { %37 = vsyncpa [#allocation6 + $0x1], 0 }
  0x1f   :  { %38 = vsyncpa [#allocation9], 0 }
  0x20   :  { %39 = vsyncpa [#allocation12], 0 }
  0x21   :  { %40 = vsyncpa [#allocation15], 0 }
  0x22   :  { %41 = vsyncpa [#allocation18], 0 }
  0x23   :  { %43 = vsyncpa [#allocation18 + $0x1], 0 }
  0x24   :  { %44 = vsyncpa [#allocation21], 0 }
  0x25   :  { %45 = vsyncpa [#allocation4], 0 }
  0x26   :  { %47 = vsyncpa [#allocation4 + $0x1], 0  ;;  %s8490_s7 = smov 0   ;;  %s8492_s4 = smov 0  }
  0x27   :  { %s8494_s8 = smov 0   ;;  %s8496_s30 = smov 0  }
  0x28   :  { %s8498_s9 = smov 0   ;;  %s8500_s5 = smov 0  }
  0x29 LB: > { %11111 = sst [smem:[#allocation33_spill]] %s8322_s8  ;;  %s8521_s28 = sadd.s32 4294967295, %s8334_s5   ;;  %s8334_s5 = sphi %s8500_s5, %s53_s5   ;;  %s8330_s9 = sphi %s8498_s9, %s11274_s9   ;;  %s8326_s30 = sphi %s8496_s30, %s11273_s30   ;;  %s8322_s8 = sphi %s8494_s8, %s11269_s8   ;;  %s8318_s4 = sphi %s8492_s4, %s11272_s4   ;;  %s8314_s7 = sphi %s8490_s7, %s11271_s7  }
  0x2a   : > { %p6173_p0 = scmp.ge.s32.totalorder %s8334_s5, 1  ;;  %p114_p1 = scmp.eq.s32.totalorder %s8521_s28, 0 }
  0x2b   : > { %p692_p2 = scmp.lt.s32.totalorder %s8334_s5, 3  ;;  %s11112_s29 = sld [smem:[#allocation40_spill]] }
  0x2c   : > { %s8336_s11 = smov [#allocation7]   ;;  %p6183_p6 = scmp.ge.s32.totalorder %s8334_s5, 2 }
  0x2d   : > { %p8529_p3 = pnand %p6173_p0, %p692_p2  ;;  %s708_s2 = sshll.u32 %s8336_s11, 4  ;;  %s709_s2 = int_to_ptr.vmem [resolvable:$true] %s708_s2 }
  0x2e   : > { %s11078_s26 = smov 64   ;;  %s11080_s24 = smov 4  }
  0x2f   : > { %p7494_p4 = pneg %p8529_p3  ;;  %s8339_s11 = smov [#allocation8]  }
  0x30   : > { %s723_s22 = sshll.u32 %s8339_s11, 4  ;;  %s11116_s18 = sld [smem:[#allocation43_spill]]  ;;  %s724_s22 = int_to_ptr.vmem [resolvable:$true] %s723_s22 }
  0x31   : > { %s706_s1 = sshll.u32 %s11112_s29, 4  ;;  %p8537_p5 = pnand %p7494_p4, %p114_p1  ;;  %s707_s1 = int_to_ptr.hbm [resolvable:$true] %s706_s1 }
  0x32   : > { %s11115_s29 = sld [smem:[#allocation41_spill]]  ;;  %s8340_s19 = smov [#allocation11]  }
  0x33   : > { %7497 = dma.hbm_to_vmem [thread:$0]  (!%p8537_p5), %s707_s1, 1024, %s709_s2, [#allocation6], %s11078_s26, %s11078_s26, %s11080_s24  }
  0x34   : > { %s747_s16 = sshll.u32 %s8340_s19, 4  ;;  %s8341_s1 = smov [#allocation14]   ;;  %s748_s16 = int_to_ptr.vmem [resolvable:$true] %s747_s16 }
  0x35   : > { %s771_s2 = sshll.u32 %s8341_s1, 4  ;;  %s11118_s17 = sld [smem:[#allocation51_spill]]  ;;  %s772_s2 = int_to_ptr.vmem [resolvable:$true] %s771_s2 }
  0x36   : > { %s745_s14 = sshll.u32 %s11116_s18, 4  ;;  %s11119_s11 = sld [smem:[#allocation42_spill]]  ;;  %s746_s14 = int_to_ptr.hbm [resolvable:$true] %s745_s14 }
  0x37   : > { %7506 = dma.hbm_to_vmem [thread:$0]  (!%p8537_p5), %s746_s14, 16, %s748_s16, [#allocation12]  }
  0x38   : > { %s721_s27 = sshll.u32 %s11115_s29, 4  ;;  %s11117_s29 = sld [smem:[#allocation45_spill]]  ;;  %s722_s27 = int_to_ptr.hbm [resolvable:$true] %s721_s27 }
  0x39   : > { %7500 = dma.hbm_to_vmem [thread:$0]  (!%p8537_p5), %s722_s27, 16, %s724_s22, [#allocation9]  }
  0x3a   : > { %s8342_s19 = smov [#allocation19]   ;;  %s8343_s14 = smov [#allocation10]  }
  0x3b   : > { %s804_s18 = sshll.u32 %s11118_s17, 4  ;;  %s806_s10 = sshll.u32 %s8342_s19, 4  ;;  %s805_s18 = int_to_ptr.hbm [resolvable:$true] %s804_s18  ;;  %s807_s10 = int_to_ptr.vmem [resolvable:$true] %s806_s10 }
  0x3c   : > { %s733_s0 = sshll.u32 %s11119_s11, 4  ;;  %s735_s16 = sshll.u32 %s8343_s14, 4  ;;  %s734_s0 = int_to_ptr.hbm [resolvable:$true] %s733_s0  ;;  %s736_s16 = int_to_ptr.vmem [resolvable:$true] %s735_s16 }
  0x3d   : > { %7518 = dma.hbm_to_vmem [thread:$0]  (!%p8537_p5), %s805_s18, 1024, %s807_s10, [#allocation18], %s11078_s26, %s11078_s26, %s11080_s24  }
  0x3e   : > { %s769_s20 = sshll.u32 %s11117_s29, 4  ;;  %s11120_s21 = sld [smem:[#allocation44_spill]]  ;;  %s770_s20 = int_to_ptr.hbm [resolvable:$true] %s769_s20 }
  0x3f   : > { %7512 = dma.hbm_to_vmem [thread:$0]  (!%p8537_p5), %s770_s20, 16, %s772_s2, [#allocation15]  }
  0x40   : > { %7503 = dma.hbm_to_vmem [thread:$0]  (!%p8537_p5), %s734_s0, 16, %s736_s16, [#allocation9]  }
  0x41   : > { %s11121_s13 = sld [smem:[#allocation48_spill]]  ;;  %s8344_s27 = smov [#allocation13]  }
  0x42   : > { %s759_s18 = sshll.u32 %s8344_s27, 4  ;;  %s8345_s11 = smov [#allocation16]   ;;  %s760_s18 = int_to_ptr.vmem [resolvable:$true] %s759_s18 }
  0x43   : > { %s792_s0 = sshll.u32 %s8345_s11, 4  ;;  %s11122_s25 = sld [smem:[#allocation59_spill]]  ;;  %s793_s0 = int_to_ptr.vmem [resolvable:$true] %s792_s0 }
  0x44   : > { %s757_s20 = sshll.u32 %s11120_s21, 4  ;;  %s8346_s16 = smov [#allocation20]   ;;  %s758_s20 = int_to_ptr.hbm [resolvable:$true] %s757_s20 }
  0x45   : > { %7509 = dma.hbm_to_vmem [thread:$0]  (!%p8537_p5), %s758_s20, 16, %s760_s18, [#allocation12]  }
  0x46   : > { %s841_s29 = sshll.u32 %s8346_s16, 4  ;;  %s6172_s1 = sadd.s32 4294967294, %s8334_s5   ;;  %s842_s29 = int_to_ptr.vmem [resolvable:$true] %s841_s29 }
  0x47   : > { %s790_s22 = sshll.u32 %s11121_s13, 4  ;;  %s65_s21 = sadd.s32 1, %s8330_s9  ;;  %s791_s22 = int_to_ptr.hbm [resolvable:$true] %s790_s22 }
  0x48   : > { %7515 = dma.hbm_to_vmem [thread:$0]  (!%p8537_p5), %s791_s22, 16, %s793_s0, [#allocation15]  }
  0x49   : > { %s839_s14 = sshll.u32 %s11122_s25, 4  ;;  %s100_s20 = sadd.s32 1, %s8322_s8  ;;  %s840_s14 = int_to_ptr.hbm [resolvable:$true] %s839_s14 }
  0x4a   : > { %7521 = dma.hbm_to_vmem [thread:$0]  (!%p8537_p5), %s840_s14, 4096, %s842_s29, [#allocation21], %s11078_s26, %s11078_s26, %s11080_s24  }
  0x4b   : > { %p67_p7 = scmp.ge.s32.totalorder %s65_s21, 2  ;;  %p107_p8 = scmp.ne.s32.totalorder %s8322_s8, %s8318_s4 }
  0x4c   : > { %p108_p9 = scmp.eq.s32.totalorder %s8334_s5, 0  ;;  %p113_p10 = scmp.ne.s32.totalorder %s8318_s4, %s8314_s7 }
  0x4d   : > { %s11276_s21 = smov (%p67_p7, %s65_s21), 0  ;;  %p679_p13 = scmp.eq.s32.totalorder %s8521_s28, 1 }
  0x4e   : > { %11123 = sst [smem:[#allocation34_spill]] %s11276_s21  ;;  %p8603_p11 = por %p108_p9, %p107_p8 }
  0x4f   : > { %p8609_p12 = por %p114_p1, %p113_p10  ;;  %s97_s23 = ssub.s32 %s8330_s9, %s11276_s21 }
  0x50   : > { %p98_p0 = scmp.eq.s32.totalorder %s97_s23, 0  ;;  %p685_p2 = scmp.eq.s32.totalorder %s6172_s1, 1 }
  0x51   : > { %p8616_p4 = por %p679_p13, %p107_p8  ;;  %p7545_p5 = scmp.lt.s32.totalorder %s8334_s5, 2 }
  0x52   : > { %s8622_s27 = scalar_select %p98_p0, %s8322_s8, %s100_s20  }
  0x53   : > { %p8624_p7 = por %p685_p2, %p113_p10  ;;  %s871_s11 = sand.u32 1, %s8322_s8  }
  0x54   : > { %11127 = sst [smem:[#allocation35_spill]] %s8622_s27  ;;  %s6184_s0 = sshll.u32 %s871_s11, 6 }
  0x55   : > { %s7208_s19 = sshll.u32 %s8330_s9, 6  ;;  %s11129_s16 = sld [smem:[#allocation37_spill]] }
  0x56   : > { %s875_s1 = scalar_lea.vmem [#allocation2], %s6184_s0  ;;  %p8635_p8 = pnand %p7545_p5, %p8603_p11 }
  0x57   : > { %s883_s23 = sshll.u32 %s875_s1, 4  ;;  %s11131_s17 = sld [smem:[#allocation38_spill]]  ;;  %s884_s23 = int_to_ptr.vmem [resolvable:$true] %s883_s23 }
  0x58   : > { %s872_s14 = scalar_lea.sflag [#allocation3], %s871_s11  ;;  %s11133_s1 = smov 64  }
  0x59   : > { %s897_s3 = scalar_lea.vmem [#allocation5], %s6184_s0  ;;  %s893_s21 = sand.u32 1, %s8334_s5  }
  0x5a   : > { %s894_s27 = scalar_lea.sflag [#allocation6], %s893_s21  ;;  %s6190_s13 = sshll.u32 %s871_s11, 5 }
  0x5b   : > { %s880_s29 = scalar_lea.hbm %s11129_s16, %s7208_s19  ;;  %s11132_s16 = smov 4  }
  0x5c   : > { %s881_s26 = sshll.u32 %s880_s29, 4  ;;  %s905_s29 = sshll.u32 %s897_s3, 4  ;;  %s882_s26 = int_to_ptr.hbm [resolvable:$true] %s881_s26  ;;  %s906_s29 = int_to_ptr.vmem [resolvable:$true] %s905_s29 }
  0x5d   : > { %s902_s25 = scalar_lea.hbm %s11131_s17, %s7208_s19  ;;  %s7210_s17 = sshll.u32 %s8330_s9, 5 }
  0x5e   : > { %s903_s10 = sshll.u32 %s902_s25, 4  ;;  %s932_s19 = scalar_lea.hbm %s11060_s15, %s7210_s17  ;;  %s904_s10 = int_to_ptr.hbm [resolvable:$true] %s903_s10 }
  0x5f   : > { %7525 = dma.hbm_to_vmem [thread:$0]  (!%p8635_p8), %s882_s26, 1024, %s884_s23, %s872_s14, %s11133_s1, %s11133_s1, %s11132_s16  }
  0x60   : > { %7528 = dma.hbm_to_vmem [thread:$0]  (!%p8635_p8), %s904_s10, 1024, %s906_s29, %s894_s27, %s11133_s1, %s11133_s1, %s11132_s16  }
  0x61   : > { %s933_s8 = sshll.u32 %s932_s19, 4  ;;  %s927_s26 = scalar_lea.vmem [#allocation17], %s6190_s13  ;;  %s934_s8 = int_to_ptr.hbm [resolvable:$true] %s933_s8 }
  0x62   : > { %s935_s23 = sshll.u32 %s927_s26, 4  ;;  %s924_s0 = scalar_lea.sflag [#allocation18], %s893_s21  ;;  %s936_s23 = int_to_ptr.vmem [resolvable:$true] %s935_s23 }
  0x63   : > { %7531 = dma.hbm_to_vmem [thread:$0]  (!%p8635_p8), %s934_s8, 512, %s936_s23, %s924_s0, %s11133_s1, %s11133_s1, %s11132_s16  }
  0x64   : > { %947 = sbr.rel (%p8529_p3) target bundleno = 3337 (0xd09), region = 128  ;;  %s8665_s27 = sand.u32 (!%p8529_p3), 1, %s8318_s4  }
  0x65   : > { %s6194_s11 = sshll.u32 (!%p8529_p3), %s8665_s27, 6  ;;  %s950_s10 = scalar_lea.sflag (!%p8529_p3), [#allocation3], %s8665_s27 }
  0x66   : > { %s8669_s14 = scalar_lea.vmem (!%p8529_p3), [#allocation2], %s6194_s11 }
  0x69   : > { %8273 = dma.done.wait (%p8609_p12), %s950_s10, 1024  }
  0x6a   : > { %8275 = vsyncadd (%p8609_p12), %s950_s10, 4294966272  ;;  %s959_s8 = sand.u32 1, %s8521_s28   ;;  %s8676_s21 = scalar_lea.vmem [#allocation5], %s6194_s11 }
  0x6b   : > { %s960_s6 = scalar_lea.sflag [#allocation6], %s959_s8 }
  0x6c   : > { %8277 = dma.done.wait (%p8609_p12), %s960_s6, 1024  }
  0x6d   : > { %8279 = vsyncadd (%p8609_p12), %s960_s6, 4294966272 }
  0x6e   : > { %8281 = dma.done.wait (%p114_p1), [#allocation6], 1024  }
  0x6f   : > { %8283 = vsyncadd (%p114_p1), [#allocation6], 4294966272 }
  0x70   : > { %8285 = dma.done.wait (%p114_p1), [#allocation9], 32  }
  0x71   : > { %8287 = vsyncadd (%p114_p1), [#allocation9], 4294967264 }
  0x72   : > { %8289 = dma.done.wait (%p114_p1), [#allocation12], 32  }
  0x73   : > { %8291 = vsyncadd (%p114_p1), [#allocation12], 4294967264 }
  0x74   : > { %8293 = dma.done.wait (%p114_p1), [#allocation15], 32  }
  0x75   : > { %8295 = vsyncadd (%p114_p1), [#allocation15], 4294967264  ;;  %s6203_s20 = sshll.u32 %s8665_s27, 5  ;;  %s1005_s16 = scalar_lea.sflag [#allocation18], %s959_s8 }
  0x76   : > { %s8701_s1 = scalar_lea.vmem [#allocation17], %s6203_s20 }
  0x77   : > { %8297 = dma.done.wait (%p8609_p12), %s1005_s16, 512  }
  0x78   : > { %8299 = vsyncadd (%p8609_p12), %s1005_s16, 4294966784 }
  0x79   : > { %8301 = dma.done.wait (%p114_p1), [#allocation18], 1024  }
  0x7a   : > { %8303 = vsyncadd (%p114_p1), [#allocation18], 4294966272 }
  0x7b   : > { %8305 = dma.done.wait (%p114_p1), [#allocation21], 4096  }
  0x7c   : > { %8307 = vsyncadd (%p114_p1), [#allocation21], 4294963200  ;;  %p1115_p3 = scmp.lt.s32.totalorder %s8326_s30, 1  ;;  %s11134_s17 = sld [smem:[#allocation36_spill]]  ;;  %v8347_v4 = vmov 128.0   ;;  %vm11084_vm13 = vcmask 261120  }
  0x7d   : > { %7630 = vrcp.f32 %v8347_v4  ;;  %s11135_s19 = sld [smem:[#allocation39_spill]] }
  0x7e   : > { %s8717_s3 = scalar_select %p1115_p3, %s8326_s30, 1 }
  0x7f   : > { %s11189_s26 = sld [smem:[#allocation47_spill]] }
  0x80   : > { %s7211_s2 = sshll.u32 %s8717_s3, 5  ;;  %s11190_s29 = sld [smem:[#allocation50_spill]] }
  0x81   : > { %s11191_s28 = sld [smem:[#allocation53_spill]]  ;;  %s7212_s13 = sshll.u32 %s8717_s3, 6 }
  0x82   : > { %s8723_s24 = scalar_lea.vmem %s11134_s17, %s7211_s2  ;;  %s11193_s11 = sld [smem:[#allocation49_spill]] }
  0x83   : > { %v1133_v0 = vld [vmem:[%s8723_s24 + $0x10] sm:$0xff]  ;;  %v1131_v1 = vld [vmem:[%s8723_s24] sm:$0xff]  ;;  %v1134_v2 = vld [vmem:[%s8723_s24 + $0x18] sm:$0xff]  ;;  %v7631_v5 = vpop.eup %7630  ;;  %s11257_s16 = sld [smem:[#allocation52_spill]] }
  0x84   : > { %1141 = vadd.xlane.f32.xlu1 %v1133_v0  ;;  %1137 = vadd.xlane.f32.xlu0 %v1131_v1  ;;  %v1132_v3 = vld [vmem:[%s8723_s24 + $0x8] sm:$0xff]  ;;  %v1146_v6 = vmul.f32 128.0, %v7631_v5  ;;  %vm1150_vm0 = vweird.f32 %v7631_v5  ;;  %v7220_v27 = vld [vmem:[%s11135_s19 + $0x38] sm:$0xff]  ;;  %v7219_v31 = vld [vmem:[%s11135_s19 + $0x30] sm:$0xff]  ;;  %s11258_s17 = sld [smem:[#allocation57_spill]] }
  0x85   : > { %v7228_v28 = vld [vmem:[%s11135_s19 + $0x78] sm:$0xff]  ;;  %1415 = vmatpush.bf16.msra.mxu0 %v7220_v27  ;;  %v7227_v32 = vld [vmem:[%s11135_s19 + $0x70] sm:$0xff]  ;;  %v7218_v35 = vld [vmem:[%s11135_s19 + $0x28] sm:$0xff] }
  0x86   : > { %v1147_v7 = vsub.f32 1.0, %v1146_v6  ;;  %v7236_v29 = vld [vmem:[%s11135_s19 + $0xb8] sm:$0xff]  ;;  %1482 = vmatpush.bf16.msra.mxu1 %v7228_v28  ;;  %v7235_v33 = vld [vmem:[%s11135_s19 + $0xb0] sm:$0xff]  ;;  %v7226_v36 = vld [vmem:[%s11135_s19 + $0x68] sm:$0xff] }
  0x87   : > { %v7244_v30 = vld [vmem:[%s11135_s19 + $0xf8] sm:$0xff]  ;;  %1549 = vmatpush.bf16.msra.mxu2 %v7236_v29  ;;  %v7243_v34 = vld [vmem:[%s11135_s19 + $0xf0] sm:$0xff]  ;;  %v7234_v37 = vld [vmem:[%s11135_s19 + $0xa8] sm:$0xff] }
  0x88   : > { %v1148_v8 = vmul.f32 %v7631_v5, %v1147_v7  ;;  %1616 = vmatpush.bf16.msra.mxu3 %v7244_v30  ;;  %v7242_v38 = vld [vmem:[%s11135_s19 + $0xe8] sm:$0xff]  ;;  %v7217_v39 = vld [vmem:[%s11135_s19 + $0x20] sm:$0xff]  ;;  %v7216_v43 = vld [vmem:[%s11135_s19 + $0x18] sm:$0xff]  ;;  %s10046_s3 = scalar_lea.vmem %s11193_s11, %s7212_s13 }
  0x89   : > { %1416 = vmatpush.bf16.msra.mxu0 %v7219_v31  ;;  %v7225_v40 = vld [vmem:[%s11135_s19 + $0x60] sm:$0xff]  ;;  %v7224_v44 = vld [vmem:[%s11135_s19 + $0x58] sm:$0xff]  ;;  %v7215_v47 = vld [vmem:[%s11135_s19 + $0x10] sm:$0xff] }
  0x8a   : > { %v1149_v9 = vadd.f32 %v7631_v5, %v1148_v8  ;;  %1483 = vmatpush.bf16.msra.mxu1 %v7227_v32  ;;  %v7233_v41 = vld [vmem:[%s11135_s19 + $0xa0] sm:$0xff]  ;;  %v7232_v45 = vld [vmem:[%s11135_s19 + $0x98] sm:$0xff]  ;;  %v7223_v48 = vld [vmem:[%s11135_s19 + $0x50] sm:$0xff] }
  0x8b   : > { %1550 = vmatpush.bf16.msra.mxu2 %v7235_v33  ;;  %v7241_v42 = vld [vmem:[%s11135_s19 + $0xe0] sm:$0xff]  ;;  %v7240_v46 = vld [vmem:[%s11135_s19 + $0xd8] sm:$0xff]  ;;  %v7231_v49 = vld [vmem:[%s11135_s19 + $0x90] sm:$0xff] }
  0x8c   : > { %1143 = vadd.xlane.f32.xlu1 %v1134_v2  ;;  %1139 = vadd.xlane.f32.xlu0 %v1132_v3  ;;  %v8729_v10 = vsel %vm1150_vm0, %v7631_v5, %v1149_v9  ;;  %v7239_v52 = vld [vmem:[%s11135_s19 + $0xd0] sm:$0xff]  ;;  %v7214_v55 = vld [vmem:[%s11135_s19 + $0x8] sm:$0xff]  ;;  %v7213_v61 = vld [vmem:[%s11135_s19] sm:$0xff] }
  0x8d   : > { %1617 = vmatpush.bf16.msra.mxu3 %v7243_v34  ;;  %1417 = vmatpush.bf16.msra.mxu0 %v7218_v35  ;;  %v7222_v56 = vld [vmem:[%s11135_s19 + $0x48] sm:$0xff]  ;;  %v7221_v62 = vld [vmem:[%s11135_s19 + $0x40] sm:$0xff] }
  0x8e   : > { %1484 = vmatpush.bf16.msra.mxu1 %v7226_v36  ;;  %v7230_v57 = vld [vmem:[%s11135_s19 + $0x88] sm:$0xff]  ;;  %v7229_v63 = vld [vmem:[%s11135_s19 + $0x80] sm:$0xff] }
  0x8f   : > { %1551 = vmatpush.bf16.msra.mxu2 %v7234_v37  ;;  %v7238_v59 = vld [vmem:[%s11135_s19 + $0xc8] sm:$0xff]  ;;  %v7618_v28 = vld [vmem:[#allocation10] ss:$0 sm:$0xff]  ;;  %v7619_v36 = vld [vmem:[#allocation11] ss:$0 sm:$0xff] }
  0x91   : > { %1618 = vmatpush.bf16.msra.mxu3 %v7242_v38  ;;  %1418 = vmatpush.bf16.msra.mxu0 %v7217_v39  ;;  %v7250_v39 = vld [vmem:[%s8669_s14 + $0x28] sm:$0xff] }
  0x92   : > { %1485 = vmatpush.bf16.msra.mxu1 %v7225_v40  ;;  %v7252_v40 = vld [vmem:[%s8669_s14 + $0x38] sm:$0xff] }
  0x93   : > { %1552 = vmatpush.bf16.msra.mxu2 %v7233_v41 }
  0x95   : > { %1619 = vmatpush.bf16.msra.mxu3 %v7241_v42  ;;  %1419 = vmatpush.bf16.msra.mxu0 %v7216_v43 }
  0x96   : > { %1486 = vmatpush.bf16.msra.mxu1 %v7224_v44 }
  0x97   : > { %1553 = vmatpush.bf16.msra.mxu2 %v7232_v45 }
  0x99   : > { %1620 = vmatpush.bf16.msra.mxu3 %v7240_v46  ;;  %1420 = vmatpush.bf16.msra.mxu0 %v7215_v47 }
  0x9a   : > { %1487 = vmatpush.bf16.msra.mxu1 %v7223_v48 }
  0x9b   : > { %1554 = vmatpush.bf16.msra.mxu2 %v7231_v49 }
  0x9d   : > { %1621 = vmatpush.bf16.msra.mxu3 %v7239_v52  ;;  %1421 = vmatpush.bf16.msra.mxu0 %v7214_v55 }
  0x9e   : > { %1488 = vmatpush.bf16.msra.mxu1 %v7222_v56 }
  0x9f   : > { %1555 = vmatpush.bf16.msra.mxu2 %v7230_v57 }
  0xa1   : > { %1622 = vmatpush.bf16.msra.mxu3 %v7238_v59  ;;  %1422 = vmatpush.bf16.msra.mxu0 %v7213_v61 }
  0xa2   : > { %1489 = vmatpush.bf16.msra.mxu1 %v7221_v62  ;;  %v7246_v62 = vld [vmem:[%s8669_s14 + $0x8] sm:$0xff] }
  0xa3   : > { %1556 = vmatpush.bf16.msra.mxu2 %v7229_v63  ;;  %v7248_v63 = vld [vmem:[%s8669_s14 + $0x18] sm:$0xff] }
  0xa5   : > { %1686 = vmatpush.bf16.msrb.mxu0 %v7246_v62 }
  0xa6   : > { %1733 = vmatpush.bf16.msrb.mxu1 %v7248_v63 }
  0xa7   : > { %1780 = vmatpush.bf16.msrb.mxu2 %v7250_v39 }
  0xf7   : > { %v1142_v11 = vpop.xlane.xlu1 %1141  ;;  %v1138_v12 = vpop.xlane.xlu0 %1137 }
  0xf8   : > { %v1154_v13 = vmul.f32 %v8729_v10, %v1142_v11  ;;  %v1152_v14 = vmul.f32 %v8729_v10, %v1138_v12 }
  0xfa   : > { %v8733_v15 = vsub.f32 %v1133_v0, %v1154_v13  ;;  %v8735_v16 = vsub.f32 %v1131_v1, %v1152_v14  ;;  %v7237_v0 = vld [vmem:[%s11135_s19 + $0xc0] sm:$0xff] }
  0xfb   : > { %1623 = vmatpush.bf16.msra.mxu3 %v7237_v0  ;;  %v7249_v0 = vld [vmem:[%s8669_s14 + $0x20] sm:$0xff] }
  0xfc   : > { %v1162_v17 = vmul.f32 %v8733_v15, %v8733_v15  ;;  %v1160_v18 = vmul.f32 %v8735_v16, %v8735_v16  ;;  %1781 = vmatpush.bf16.msrb.mxu2 %v7249_v0 }
  0xfe   : > { %1168 = vadd.xlane.f32.xlu0 %v1162_v17  ;;  %1164 = vadd.xlane.f32.xlu2 %v1160_v18 }
  0xff   : > { %v1144_v19 = vpop.xlane.xlu1 %1143  ;;  %v1140_v20 = vpop.xlane.xlu0 %1139  ;;  %1827 = vmatpush.bf16.msrb.mxu3 %v7252_v40 }
 0x100   : > { %v1155_v21 = vmul.f32 %v8729_v10, %v1144_v19  ;;  %v1153_v22 = vmul.f32 %v8729_v10, %v1140_v20 }
 0x102   : > { %v8743_v23 = vsub.f32 %v1134_v2, %v1155_v21  ;;  %v8745_v24 = vsub.f32 %v1132_v3, %v1153_v22 }
 0x104   : > { %v1163_v25 = vmul.f32 %v8743_v23, %v8743_v23  ;;  %v1161_v26 = vmul.f32 %v8745_v24, %v8745_v24 }
 0x106   : > { %1170 = vadd.xlane.f32.xlu1 %v1163_v25  ;;  %1166 = vadd.xlane.f32.xlu2 %v1161_v26 }
 0x171   : > { %v1165_v50 = vpop.xlane.xlu2 %1164  ;;  %v1169_v51 = vpop.xlane.xlu0 %1168 }
 0x172   : > { %v1172_v53 = vmul.f32 %v1165_v50, %v8729_v10  ;;  %v1174_v54 = vmul.f32 %v1169_v51, %v8729_v10 }
 0x174   : > { %v1176_v58 = vadd.f32 1e-05, %v1172_v53  ;;  %v8837_v60 = vadd.f32 1e-05, %v1174_v54 }
 0x176   : > { %7632 = vrsqrt.f32 %v1176_v58  ;;  %vm1186_vm2 = vweird.f32 %v1176_v58  ;;  %vm1206_vm9 = vweird.f32 %v8837_v60 }
 0x177   : > { %7634 = vrsqrt.f32 %v8837_v60 }
 0x179   : > { %v1171_v1 = vpop.xlane.xlu1 %1170  ;;  %v1167_v2 = vpop.xlane.xlu2 %1166 }
 0x17a   : > { %v1175_v3 = vmul.f32 %v1171_v1, %v8729_v10  ;;  %v1173_v4 = vmul.f32 %v1167_v2, %v8729_v10  ;;  %v7245_v1 = vld [vmem:[%s8669_s14] sm:$0xff]  ;;  %v7247_v2 = vld [vmem:[%s8669_s14 + $0x10] sm:$0xff] }
 0x17b   : > { %1687 = vmatpush.bf16.msrb.mxu0 %v7245_v1  ;;  %1734 = vmatpush.bf16.msrb.mxu1 %v7247_v2 }
 0x17c   : > { %v7633_v5 = vpop.eup %7632  ;;  %v1179_v6 = vadd.f32 1e-05, %v1175_v3  ;;  %v1177_v7 = vadd.f32 1e-05, %v1173_v4  ;;  %v7251_v3 = vld [vmem:[%s8669_s14 + $0x30] sm:$0xff]  ;;  %s11264_s14 = sld [smem:[#allocation56_spill]] }
 0x17d   : > { %v1181_v8 = vmul.f32 %v7633_v5, %v1176_v58  ;;  %v7635_v9 = vpop.eup %7634  ;;  %vm1187_vm1 = vweird.f32 %v7633_v5  ;;  %1828 = vmatpush.bf16.msrb.mxu3 %v7251_v3 }
 0x17e   : > { %7636 = vrsqrt.f32 %v1179_v6  ;;  %v1201_v13 = vmul.f32 %v7635_v9, %v8837_v60  ;;  %vm1188_vm3 = vmor %vm1186_vm2, %vm1187_vm1  ;;  %vm1216_vm5 = vweird.f32 %v1179_v6  ;;  %vm1196_vm7 = vweird.f32 %v1177_v7 }
 0x17f   : > { %v1182_v11 = vmul.f32 %v7633_v5, %v1181_v8  ;;  %7638 = vrsqrt.f32 %v1177_v7  ;;  %vm1207_vm10 = vweird.f32 %v7635_v9 }
 0x180   : > { %v1202_v21 = vmul.f32 %v7635_v9, %v1201_v13  ;;  %vm1208_vm12 = vmor %vm1206_vm9, %vm1207_vm10 }
 0x181   : > { %v1183_v12 = vmul.f32 0.5, %v1182_v11 }
 0x182   : > { %v1203_v31 = vmul.f32 0.5, %v1202_v21 }
 0x183   : > { %v1184_v14 = vsub.f32 1.5, %v1183_v12 }
 0x184   : > { %v7637_v17 = vpop.eup %7636  ;;  %v1204_v37 = vsub.f32 1.5, %v1203_v31 }
 0x185   : > { %v7639_v18 = vpop.eup %7638  ;;  %v1185_v19 = vmul.f32 %v7633_v5, %v1184_v14  ;;  %v1211_v20 = vmul.f32 %v7637_v17, %v1179_v6  ;;  %vm1217_vm6 = vweird.f32 %v7637_v17 }
 0x186   : > { %v1191_v22 = vmul.f32 %v7639_v18, %v1177_v7  ;;  %vm1197_vm4 = vweird.f32 %v7639_v18  ;;  %vm1218_vm11 = vmor %vm1216_vm5, %vm1217_vm6  ;;  %v1205_v44 = vmul.f32 %v7635_v9, %v1204_v37 }
 0x187   : > { %v1189_v25 = vsel %vm1188_vm3, %v7633_v5, %v1185_v19  ;;  %v1212_v26 = vmul.f32 %v7637_v17, %v1211_v20  ;;  %vm1198_vm8 = vmor %vm1196_vm7, %vm1197_vm4 }
 0x188   : > { %v1192_v27 = vmul.f32 %v7639_v18, %v1191_v22  ;;  %v1220_v29 = vmul.f32 %v1189_v25, %v8735_v16  ;;  %v1209_v49 = vsel %vm1208_vm12, %v7635_v9, %v1205_v44 }
 0x189   : > { %v1213_v30 = vmul.f32 0.5, %v1212_v26  ;;  %v1222_v52 = vmul.f32 %v1209_v49, %v8733_v15 }
 0x18a   : > { %v1193_v32 = vmul.f32 0.5, %v1192_v27  ;;  %v1227_v35 = vmul.f32 %v7618_v28, %v1220_v29 }
 0x18b   : > { %v1214_v33 = vsub.f32 1.5, %v1213_v30  ;;  %v1229_v57 = vmul.f32 %v7618_v28, %v1222_v52 }
 0x18c   : > { %v1194_v34 = vsub.f32 1.5, %v1193_v32  ;;  %v1234_v43 = vadd.f32 %v7619_v36, %v1227_v35 }
 0x18d   : > { %v1215_v16 = vmul.f32 %v7637_v17, %v1214_v33  ;;  %v1236_v58 = vadd.f32 %v7619_v36, %v1229_v57 }
 0x18e   : > { %v1195_v38 = vmul.f32 %v7639_v18, %v1194_v34  ;;  %v1351_v48 = vpack.c.bf16 %v1234_v43, %v1234_v43 }
 0x18f   : > { %v1219_v46 = vsel %vm1218_vm11, %v7637_v17, %v1215_v16 }
 0x190   : > { %v1199_v41 = vsel %vm1198_vm8, %v7639_v18, %v1195_v38  ;;  %v1223_v50 = vmul.f32 %v1219_v46, %v8743_v23  ;;  %v1359_v53 = vunpack.c.l.b16 %v1351_v48  ;;  %v1353_v23 = vpack.c.bf16 %v1236_v58, %v1236_v58 }
 0x191   : > { %v1221_v42 = vmul.f32 %v1199_v41, %v8745_v24 }
 0x192   : > { %v1230_v55 = vmul.f32 %v7618_v28, %v1223_v50  ;;  %v1361_v15 = vunpack.c.l.b16 %v1353_v23 }
 0x193   : > { %v1228_v45 = vmul.f32 %v7618_v28, %v1221_v42 }
 0x194   : > { %v1237_v24 = vadd.f32 %v7619_v36, %v1230_v55 }
 0x195   : > { %v1235_v47 = vadd.f32 %v7619_v36, %v1228_v45 }
 0x196   : > { %v1354_v59 = vpack.c.bf16 %v1237_v24, %v1237_v24 }
 0x197   : > { %v1352_v51 = vpack.c.bf16 %v1235_v47, %v1235_v47 }
 0x198   : > { %v1362_v60 = vunpack.c.l.b16 %v1354_v59 }
 0x199   : > { %v1360_v54 = vunpack.c.l.b16 %v1352_v51 }
 0x19a   : > { %v1364_v61 = vpack.c.b16 %v1362_v60, %v1361_v15 }
 0x19b   : > { %v1363_v56 = vpack.c.b16 %v1360_v54, %v1359_v53 }
 0x19d   : > { %1423 = vmatmul.bf16.vlgmr.msra.gmra.mxu0 %v1363_v56  ;;  %1490 = vmatmul.bf16.vlgmr.msra.gmra.mxu1 %v1363_v56 }
 0x19e   : > { %1557 = vmatmul.bf16.vlgmr.msra.gmra.mxu2 %v1363_v56  ;;  %1624 = vmatmul.bf16.vlgmr.msra.gmra.mxu3 %v1363_v56 }
 0x1ad   : > { %1428 = vmatmul.bf16.gmra.mxu0 %v1364_v61  ;;  %1495 = vmatmul.bf16.gmra.mxu1 %v1364_v61 }
 0x1ae   : > { %1562 = vmatmul.bf16.gmra.mxu2 %v1364_v61  ;;  %1629 = vmatmul.bf16.gmra.mxu3 %v1364_v61 }
 0x21a   : > { %v1424_v4 = vpop.f32.mrf.mxu0  ;;  %v1491_v5 = vpop.f32.mrf.mxu1 }
 0x21b   : > { %v1635_v6 = vpack.c.bf16 %v1424_v4, %v1424_v4  ;;  %v1639_v7 = vpack.c.bf16 %v1491_v5, %v1491_v5 }
 0x21d   : > { %v1655_v17 = vunpack.c.l.b16 %v1635_v6  ;;  %v1703_v18 = vunpack.c.l.b16 %v1639_v7 }
 0x221   : > { %v1558_v8 = vpop.f32.mrf.mxu2  ;;  %v1625_v9 = vpop.f32.mrf.mxu3 }
 0x222   : > { %v1426_v11 = vpop.f32.mrf.mxu0  ;;  %v1493_v12 = vpop.f32.mrf.mxu1  ;;  %v1643_v25 = vpack.c.bf16 %v1558_v8, %v1558_v8  ;;  %v1647_v26 = vpack.c.bf16 %v1625_v9, %v1625_v9 }
 0x223   : > { %v1636_v13 = vpack.c.bf16 %v1426_v11, %v1426_v11  ;;  %v1640_v14 = vpack.c.bf16 %v1493_v12, %v1493_v12 }
 0x224   : > { %v1750_v33 = vunpack.c.l.b16 %v1643_v25  ;;  %v1797_v34 = vunpack.c.l.b16 %v1647_v26 }
 0x225   : > { %v1656_v19 = vunpack.c.l.b16 %v1636_v13  ;;  %v1704_v20 = vunpack.c.l.b16 %v1640_v14 }
 0x227   : > { %v1659_v21 = vpack.c.b16 %v1656_v19, %v1655_v17  ;;  %v1707_v22 = vpack.c.b16 %v1704_v20, %v1703_v18 }
 0x229   : > { %v1560_v27 = vpop.f32.mrf.mxu2  ;;  %v1627_v28 = vpop.f32.mrf.mxu3  ;;  %6347 = vmatmul.msk.bf16.vlgmr.msrb.gmra.mxu0 %vm11084_vm13, %v1659_v21  ;;  %6357 = vmatmul.msk.bf16.vlgmr.msrb.gmra.mxu1 %vm11084_vm13, %v1707_v22 }
 0x22a   : > { %v1644_v29 = vpack.c.bf16 %v1560_v27, %v1560_v27  ;;  %v1648_v30 = vpack.c.bf16 %v1627_v28, %v1627_v28  ;;  %v1429_v31 = vpop.f32.mrf.mxu0  ;;  %v1496_v32 = vpop.f32.mrf.mxu1 }
 0x22b   : > { %v1637_v39 = vpack.c.bf16 %v1429_v31, %v1429_v31  ;;  %v1641_v40 = vpack.c.bf16 %v1496_v32, %v1496_v32 }
 0x22c   : > { %v1751_v35 = vunpack.c.l.b16 %v1644_v29  ;;  %v1798_v36 = vunpack.c.l.b16 %v1648_v30 }
 0x22d   : > { %v1657_v46 = vunpack.c.l.b16 %v1637_v39  ;;  %v1705_v47 = vunpack.c.l.b16 %v1641_v40  ;;  %v7259_v39 = vld [vmem:[%s8676_s21 + $0x30] sm:$0xff]  ;;  %v7253_v40 = vld [vmem:[%s8676_s21] sm:$0xff] }
 0x22e   : > { %v1754_v37 = vpack.c.b16 %v1751_v35, %v1750_v33  ;;  %v1801_v38 = vpack.c.b16 %v1798_v36, %v1797_v34  ;;  %v7258_v34 = vld [vmem:[%s8676_s21 + $0x28] sm:$0xff]  ;;  %v7260_v35 = vld [vmem:[%s8676_s21 + $0x38] sm:$0xff]  ;;  %v7257_v36 = vld [vmem:[%s8676_s21 + $0x20] sm:$0xff] }
 0x22f   : > { %2128 = vmatpush.bf16.msra.mxu2 %v7258_v34  ;;  %2175 = vmatpush.bf16.msra.mxu3 %v7260_v35 }
 0x230   : > { %6367 = vmatmul.msk.bf16.vlgmr.msrb.gmra.mxu2 %vm11084_vm13, %v1754_v37  ;;  %6377 = vmatmul.msk.bf16.vlgmr.msrb.gmra.mxu3 %vm11084_vm13, %v1801_v38  ;;  %v7254_v37 = vld [vmem:[%s8676_s21 + $0x8] sm:$0xff]  ;;  %v7256_v38 = vld [vmem:[%s8676_s21 + $0x18] sm:$0xff] }
 0x231   : > { %v1563_v16 = vpop.f32.mrf.mxu2  ;;  %v1630_v41 = vpop.f32.mrf.mxu3  ;;  %2034 = vmatpush.bf16.msra.mxu0 %v7254_v37  ;;  %2081 = vmatpush.bf16.msra.mxu1 %v7256_v38 }
 0x232   : > { %v1431_v42 = vpop.f32.mrf.mxu0  ;;  %v1498_v43 = vpop.f32.mrf.mxu1  ;;  %v1645_v52 = vpack.c.bf16 %v1563_v16, %v1563_v16  ;;  %v1649_v53 = vpack.c.bf16 %v1630_v41, %v1630_v41 }
 0x233   : > { %v1638_v44 = vpack.c.bf16 %v1431_v42, %v1431_v42  ;;  %v1642_v45 = vpack.c.bf16 %v1498_v43, %v1498_v43  ;;  %2129 = vmatpush.bf16.msra.mxu2 %v7257_v36  ;;  %2176 = vmatpush.bf16.msra.mxu3 %v7259_v39 }
 0x234   : > { %v1752_v24 = vunpack.c.l.b16 %v1645_v52  ;;  %v1799_v58 = vunpack.c.l.b16 %v1649_v53 }
 0x235   : > { %v1658_v48 = vunpack.c.l.b16 %v1638_v44  ;;  %v1706_v49 = vunpack.c.l.b16 %v1642_v45  ;;  %2035 = vmatpush.bf16.msra.mxu0 %v7253_v40  ;;  %v7255_v44 = vld [vmem:[%s8676_s21 + $0x10] sm:$0xff]  ;;  %s10997_s21 = scalar_lea.vmem [#allocation22], %s6203_s20  ;;  %s7449_s20 = sshll.u32 %s8326_s30, 5 }
 0x236   : > { %2082 = vmatpush.bf16.msra.mxu1 %v7255_v44  ;;  %s5923_s13 = sshll.u32 %s10997_s21, 4  ;;  %s5909_s30 = scalar_lea.sflag [#allocation4], %s8665_s27  ;;  %s5924_s13 = int_to_ptr.vmem [resolvable:$true] %s5923_s13 }
 0x237   : > { %v1660_v50 = vpack.c.b16 %v1658_v48, %v1657_v46  ;;  %v1708_v51 = vpack.c.b16 %v1706_v49, %v1705_v47 }
 0x239   : > { %v1565_v54 = vpop.f32.mrf.mxu2  ;;  %v1632_v55 = vpop.f32.mrf.mxu3  ;;  %6348 = vmatmul.msk.bf16.gmra.mxu0 %vm11084_vm13, %v1660_v50  ;;  %6358 = vmatmul.msk.bf16.gmra.mxu1 %vm11084_vm13, %v1708_v51 }
 0x23a   : > { %v1646_v56 = vpack.c.bf16 %v1565_v54, %v1565_v54  ;;  %v1650_v57 = vpack.c.bf16 %v1632_v55, %v1632_v55 }
 0x23c   : > { %v1753_v59 = vunpack.c.l.b16 %v1646_v56  ;;  %v1800_v23 = vunpack.c.l.b16 %v1650_v57 }
 0x23e   : > { %v1755_v60 = vpack.c.b16 %v1753_v59, %v1752_v24  ;;  %v1802_v15 = vpack.c.b16 %v1800_v23, %v1799_v58 }
 0x240   : > { %6368 = vmatmul.msk.bf16.gmra.mxu2 %vm11084_vm13, %v1755_v60  ;;  %6378 = vmatmul.msk.bf16.gmra.mxu3 %vm11084_vm13, %v1802_v15 }
 0x2a6   : > { %v8877_v61 = vpop.f32.mrf.mxu0  ;;  %v8887_v2 = vpop.f32.mrf.mxu1 }
 0x2a7   : > { %v1852_v7 = vsel %vm11084_vm13, %v8887_v2, -inf  ;;  %v1840_v13 = vsel %vm11084_vm13, %v8877_v61, -inf }
 0x2ae   : > { %v8889_v3 = vpop.f32.mrf.mxu0  ;;  %v8911_v17 = vpop.f32.mrf.mxu1 }
 0x2af   : > { %v1843_v8 = vsel %vm11084_vm13, %v8889_v3, -inf  ;;  %v1855_v21 = vsel %vm11084_vm13, %v8911_v17, -inf }
 0x2b3   : > { %v8879_v62 = vpop.f32.mrf.mxu2  ;;  %v8881_v63 = vpop.f32.mrf.mxu3 }
 0x2b4   : > { %v1876_v0 = vsel %vm11084_vm13, %v8881_v63, -inf  ;;  %v1864_v1 = vsel %vm11084_vm13, %v8879_v62, -inf }
 0x2b5   : > { %1877 = vmax.xlane.f32.xlu1 %v1876_v0  ;;  %1865 = vmax.xlane.f32.xlu2 %v1864_v1 }
 0x2b6   : > { %v8923_v25 = vpop.f32.mrf.mxu0  ;;  %v8925_v26 = vpop.f32.mrf.mxu1 }
 0x2b7   : > { %v1846_v28 = vsel %vm11084_vm13, %v8923_v25, -inf  ;;  %v1858_v29 = vsel %vm11084_vm13, %v8925_v26, -inf }
 0x2bb   : > { %v8891_v4 = vpop.f32.mrf.mxu2  ;;  %v8893_v5 = vpop.f32.mrf.mxu3 }
 0x2bc   : > { %v1867_v6 = vsel %vm11084_vm13, %v8891_v4, -inf  ;;  %v1879_v12 = vsel %vm11084_vm13, %v8893_v5, -inf }
 0x2bd   : > { %1868 = vmax.xlane.f32.xlu0 %v1867_v6  ;;  %1853 = vmax.xlane.f32.xlu2 %v1852_v7 }
 0x2be   : > { %1844 = vmax.xlane.f32.xlu1 %v1843_v8  ;;  %v8933_v30 = vpop.f32.mrf.mxu0  ;;  %v8935_v31 = vpop.f32.mrf.mxu1 }
 0x2bf   : > { %v1861_v32 = vsel %vm11084_vm13, %v8935_v31, -inf  ;;  %v1849_v33 = vsel %vm11084_vm13, %v8933_v30, -inf }
 0x2c3   : > { %v8901_v9 = vpop.f32.mrf.mxu2  ;;  %v8903_v11 = vpop.f32.mrf.mxu3 }
 0x2c4   : > { %v1870_v14 = vsel %vm11084_vm13, %v8901_v9, -inf  ;;  %v1882_v27 = vsel %vm11084_vm13, %v8903_v11, -inf }
 0x2c5   : > { %1880 = vmax.xlane.f32.xlu2 %v1879_v12  ;;  %1841 = vmax.xlane.f32.xlu0 %v1840_v13 }
 0x2c6   : > { %1871 = vmax.xlane.f32.xlu1 %v1870_v14 }
 0x2cb   : > { %v8913_v18 = vpop.f32.mrf.mxu2  ;;  %v8915_v19 = vpop.f32.mrf.mxu3 }
 0x2cc   : > { %v1873_v20 = vsel %vm11084_vm13, %v8913_v18, -inf  ;;  %v1885_v22 = vsel %vm11084_vm13, %v8915_v19, -inf }
 0x2cd   : > { %1874 = vmax.xlane.f32.xlu2 %v1873_v20  ;;  %1856 = vmax.xlane.f32.xlu0 %v1855_v21 }
 0x2ce   : > { %1886 = vmax.xlane.f32.xlu1 %v1885_v22 }
 0x2d5   : > { %1883 = vmax.xlane.f32.xlu0 %v1882_v27  ;;  %1847 = vmax.xlane.f32.xlu2 %v1846_v28 }
 0x2d6   : > { %1859 = vmax.xlane.f32.xlu1 %v1858_v29 }
 0x2dd   : > { %1862 = vmax.xlane.f32.xlu2 %v1861_v32  ;;  %1850 = vmax.xlane.f32.xlu0 %v1849_v33 }
 0x328   : > { %v1878_v16 = vpop.xlane.xlu1 %1877  ;;  %v1866_v41 = vpop.xlane.xlu2 %1865 }
 0x329   : > { %v1896_v42 = vsub.f32 %v8879_v62, %v1866_v41  ;;  %v1900_v47 = vsub.f32 %v8881_v63, %v1878_v16 }
 0x32b   : > { %v1920_v43 = vmul.f32 1.442695, %v1896_v42  ;;  %v1928_v55 = vmul.f32 1.442695, %v1900_v47 }
 0x32d   : > { %7640 = vpow2.f32 %v1920_v43 }
 0x330   : > { %v1869_v45 = vpop.xlane.xlu0 %1868  ;;  %v1854_v46 = vpop.xlane.xlu2 %1853 }
 0x331   : > { %v1897_v48 = vsub.f32 %v8891_v4, %v1869_v45  ;;  %v1892_v49 = vsub.f32 %v8887_v2, %v1854_v46  ;;  %v1845_v50 = vpop.xlane.xlu1 %1844 }
 0x332   : > { %v1889_v51 = vsub.f32 %v8889_v3, %v1845_v50 }
 0x333   : > { %v1922_v52 = vmul.f32 1.442695, %v1897_v48  ;;  %v1912_v53 = vmul.f32 1.442695, %v1892_v49  ;;  %v7641_v56 = vpop.eup %7640 }
 0x334   : > { %v1906_v54 = vmul.f32 1.442695, %v1889_v51  ;;  %v1992_v60 = vpack.c.bf16 %v7641_v56, %v7641_v56  ;;  %v1960_v36 = vsel %vm11084_vm13, %v7641_v56, 0.0 }
 0x335   : > { %7642 = vpow2.f32 %v1922_v52 }
 0x336   : > { %7644 = vpow2.f32 %v1912_v53 }
 0x337   : > { %7646 = vpow2.f32 %v1906_v54 }
 0x338   : > { %v1881_v57 = vpop.xlane.xlu2 %1880  ;;  %v1842_v24 = vpop.xlane.xlu0 %1841  ;;  %7648 = vpow2.f32 %v1928_v55 }
 0x339   : > { %v1901_v58 = vsub.f32 %v8893_v5, %v1881_v57  ;;  %v1888_v59 = vsub.f32 %v8877_v61, %v1842_v24  ;;  %v1872_v23 = vpop.xlane.xlu1 %1871  ;;  %v2098_v61 = vunpack.c.l.b16 %v1992_v60 }
 0x33a   : > { %v1898_v15 = vsub.f32 %v8901_v9, %v1872_v23 }
 0x33b   : > { %v8957_v62 = vpop.eup %7642  ;;  %v1930_v63 = vmul.f32 1.442695, %v1901_v58  ;;  %v1904_v0 = vmul.f32 1.442695, %v1888_v59 }
 0x33c   : > { %v8959_v1 = vpop.eup %7644  ;;  %v1993_v2 = vpack.c.bf16 %v8957_v62, %v8957_v62  ;;  %v1924_v4 = vmul.f32 1.442695, %v1898_v15 }
 0x33d   : > { %v7647_v3 = vpop.eup %7646  ;;  %7650 = vpow2.f32 %v1930_v63  ;;  %v1948_v5 = vsel %vm11084_vm13, %v8959_v1, 0.0  ;;  %v1988_v52 = vpack.c.bf16 %v8959_v1, %v8959_v1 }
 0x33e   : > { %v2099_v6 = vunpack.c.l.b16 %v1993_v2  ;;  %7652 = vpow2.f32 %v1904_v0  ;;  %v1939_v7 = vsel %vm11084_vm13, %v7647_v3, 0.0  ;;  %1949 = vadd.xlane.f32.xlu0 %v1948_v5  ;;  %v7649_v8 = vpop.eup %7648  ;;  %v1985_v29 = vpack.c.bf16 %v7647_v3, %v7647_v3 }
 0x33f   : > { %1940 = vadd.xlane.f32.xlu2 %v1939_v7  ;;  %7654 = vpow2.f32 %v1924_v4  ;;  %v1996_v22 = vpack.c.bf16 %v7649_v8, %v7649_v8  ;;  %v2051_v60 = vunpack.c.l.b16 %v1988_v52  ;;  %v7267_v52 = vld [vmem:[#allocation7 + $0x30] sm:$0xff] }
 0x340   : > { %v2102_v9 = vpack.c.b16 %v2099_v6, %v2098_v61  ;;  %v1875_v12 = vpop.xlane.xlu2 %1874  ;;  %v1857_v13 = vpop.xlane.xlu0 %1856  ;;  %v2005_v16 = vunpack.c.l.b16 %v1985_v29 }
 0x341   : > { %v1899_v14 = vsub.f32 %v8913_v18, %v1875_v12  ;;  %v1893_v20 = vsub.f32 %v8911_v17, %v1857_v13  ;;  %v1887_v21 = vpop.xlane.xlu1 %1886  ;;  %v2145_v17 = vunpack.c.l.b16 %v1996_v22 }
 0x342   : > { %v1903_v27 = vsub.f32 %v8915_v19, %v1887_v21  ;;  %6407 = vmatmul.msk.bf16.vlgmr.msra.gmra.mxu2 %vm11084_vm13, %v2102_v9  ;;  %v1972_v19 = vsel %vm11084_vm13, %v7649_v8, 0.0 }
 0x343   : > { %v7651_v28 = vpop.eup %7650  ;;  %v1926_v32 = vmul.f32 1.442695, %v1899_v14  ;;  %v1914_v33 = vmul.f32 1.442695, %v1893_v20 }
 0x344   : > { %v7653_v34 = vpop.eup %7652  ;;  %v1997_v35 = vpack.c.bf16 %v7651_v28, %v7651_v28  ;;  %v1934_v38 = vmul.f32 1.442695, %v1903_v27 }
 0x345   : > { %v1984_v37 = vpack.c.bf16 %v7653_v34, %v7653_v34  ;;  %7656 = vpow2.f32 %v1926_v32  ;;  %v1936_v18 = vsel %vm11084_vm13, %v7653_v34, 0.0  ;;  %v7655_v40 = vpop.eup %7654 }
 0x346   : > { %v2146_v39 = vunpack.c.l.b16 %v1997_v35  ;;  %7658 = vpow2.f32 %v1914_v33  ;;  %1937 = vadd.xlane.f32.xlu1 %v1936_v18  ;;  %1961 = vadd.xlane.f32.xlu0 %v1960_v36  ;;  %v1994_v50 = vpack.c.bf16 %v7655_v40, %v7655_v40  ;;  %v1966_v24 = vsel %vm11084_vm13, %v7655_v40, 0.0 }
 0x347   : > { %v2004_v41 = vunpack.c.l.b16 %v1984_v37  ;;  %1973 = vadd.xlane.f32.xlu2 %v1972_v19  ;;  %7660 = vpow2.f32 %v1934_v38 }
 0x348   : > { %v2149_v42 = vpack.c.b16 %v2146_v39, %v2145_v17  ;;  %v1884_v43 = vpop.xlane.xlu0 %1883  ;;  %v1848_v44 = vpop.xlane.xlu2 %1847  ;;  %v2100_v58 = vunpack.c.l.b16 %v1994_v50 }
 0x349   : > { %v2008_v45 = vpack.c.b16 %v2005_v16, %v2004_v41  ;;  %v1902_v46 = vsub.f32 %v8903_v11, %v1884_v43  ;;  %v1860_v47 = vpop.xlane.xlu1 %1859  ;;  %v1890_v48 = vsub.f32 %v8923_v25, %v1848_v44  ;;  %v1963_v11 = vsel %vm11084_vm13, %v8957_v62, 0.0  ;;  %v7266_v16 = vld [vmem:[#allocation7 + $0x28] sm:$0xff]  ;;  %v7268_v41 = vld [vmem:[#allocation7 + $0x38] sm:$0xff] }
 0x34a   : > { %v1894_v49 = vsub.f32 %v8925_v26, %v1860_v47  ;;  %6417 = vmatmul.msk.bf16.vlgmr.msra.gmra.mxu3 %vm11084_vm13, %v2149_v42  ;;  %v1975_v26 = vsel %vm11084_vm13, %v7651_v28, 0.0  ;;  %2588 = vmatpush.bf16.msrb.mxu2 %v7266_v16  ;;  %v7262_v42 = vld [vmem:[#allocation7 + $0x8] sm:$0xff]  ;;  %v7264_v43 = vld [vmem:[#allocation7 + $0x18] sm:$0xff] }
 0x34b   : > { %v7657_v51 = vpop.eup %7656  ;;  %v1932_v53 = vmul.f32 1.442695, %v1902_v46  ;;  %v1908_v54 = vmul.f32 1.442695, %v1890_v48  ;;  %6387 = vmatmul.msk.bf16.vlgmr.msra.gmra.mxu0 %vm11084_vm13, %v2008_v45  ;;  %2635 = vmatpush.bf16.msrb.mxu3 %v7268_v41 }
 0x34c   : > { %v7659_v55 = vpop.eup %7658  ;;  %v1995_v56 = vpack.c.bf16 %v7657_v51, %v7657_v51  ;;  %v1916_v25 = vmul.f32 1.442695, %v1894_v49  ;;  %v1969_v35 = vsel %vm11084_vm13, %v7657_v51, 0.0  ;;  %2494 = vmatpush.bf16.msrb.mxu0 %v7262_v42  ;;  %2541 = vmatpush.bf16.msrb.mxu1 %v7264_v43  ;;  %v7265_v51 = vld [vmem:[#allocation7 + $0x20] sm:$0xff] }
 0x34d   : > { %v1989_v57 = vpack.c.bf16 %v7659_v55, %v7659_v55  ;;  %7662 = vpow2.f32 %v1932_v53  ;;  %v7661_v23 = vpop.eup %7660  ;;  %v1951_v9 = vsel %vm11084_vm13, %v7659_v55, 0.0  ;;  %v7261_v53 = vld [vmem:[#allocation7] sm:$0xff] }
 0x34e   : > { %1964 = vadd.xlane.f32.xlu1 %v1963_v11  ;;  %1976 = vadd.xlane.f32.xlu0 %v1975_v26  ;;  %v2101_v59 = vunpack.c.l.b16 %v1995_v56  ;;  %7664 = vpow2.f32 %v1908_v54  ;;  %v1999_v4 = vpack.c.bf16 %v7661_v23, %v7661_v23  ;;  %v1981_v12 = vsel %vm11084_vm13, %v7661_v23, 0.0 }
 0x34f   : > { %v2052_v15 = vunpack.c.l.b16 %v1989_v57  ;;  %1967 = vadd.xlane.f32.xlu2 %v1966_v24  ;;  %7666 = vpow2.f32 %v1916_v25  ;;  %2589 = vmatpush.bf16.msrb.mxu2 %v7265_v51 }
 0x350   : > { %v1863_v63 = vpop.xlane.xlu2 %1862  ;;  %v1851_v0 = vpop.xlane.xlu0 %1850  ;;  %v2103_v62 = vpack.c.b16 %v2101_v59, %v2100_v58  ;;  %v2148_v13 = vunpack.c.l.b16 %v1999_v4  ;;  %2636 = vmatpush.bf16.msrb.mxu3 %v7267_v52  ;;  %2495 = vmatpush.bf16.msrb.mxu0 %v7261_v53 }
 0x351   : > { %v2055_v1 = vpack.c.b16 %v2052_v15, %v2051_v60  ;;  %v1895_v2 = vsub.f32 %v8935_v31, %v1863_v63  ;;  %v1891_v3 = vsub.f32 %v8933_v30, %v1851_v0 }
 0x352   : > { %6408 = vmatmul.msk.bf16.gmra.mxu2 %vm11084_vm13, %v2103_v62 }
 0x353   : > { %v7663_v5 = vpop.eup %7662  ;;  %v1918_v61 = vmul.f32 1.442695, %v1895_v2  ;;  %v1910_v6 = vmul.f32 1.442695, %v1891_v3  ;;  %6397 = vmatmul.msk.bf16.vlgmr.msra.gmra.mxu1 %vm11084_vm13, %v2055_v1 }
 0x354   : > { %v1998_v7 = vpack.c.bf16 %v7663_v5, %v7663_v5  ;;  %v7665_v8 = vpop.eup %7664  ;;  %v1978_v32 = vsel %vm11084_vm13, %v7663_v5, 0.0 }
 0x355   : > { %7668 = vpow2.f32 %v1918_v61  ;;  %v1942_v31 = vsel %vm11084_vm13, %v7665_v8, 0.0  ;;  %v7667_v14 = vpop.eup %7666  ;;  %v1986_v27 = vpack.c.bf16 %v7665_v8, %v7665_v8 }
 0x356   : > { %7670 = vpow2.f32 %v1910_v6  ;;  %1952 = vadd.xlane.f32.xlu1 %v1951_v9  ;;  %v2147_v30 = vunpack.c.l.b16 %v1998_v7  ;;  %1943 = vadd.xlane.f32.xlu0 %v1942_v31  ;;  %v1990_v21 = vpack.c.bf16 %v7667_v14, %v7667_v14  ;;  %v1954_v34 = vsel %vm11084_vm13, %v7667_v14, 0.0 }
 0x357   : > { %1982 = vadd.xlane.f32.xlu2 %v1981_v12  ;;  %v2006_v38 = vunpack.c.l.b16 %v1986_v27  ;;  %v7263_v12 = vld [vmem:[#allocation7 + $0x10] sm:$0xff] }
 0x358   : > { %v2150_v20 = vpack.c.b16 %v2148_v13, %v2147_v30  ;;  %v2053_v36 = vunpack.c.l.b16 %v1990_v21  ;;  %2542 = vmatpush.bf16.msrb.mxu1 %v7263_v12 }
 0x35a   : > { %6418 = vmatmul.msk.bf16.gmra.mxu3 %vm11084_vm13, %v2150_v20 }
 0x35b   : > { %v7669_v22 = vpop.eup %7668 }
 0x35c   : > { %v7671_v28 = vpop.eup %7670  ;;  %v1991_v29 = vpack.c.bf16 %v7669_v22, %v7669_v22  ;;  %v1957_v40 = vsel %vm11084_vm13, %v7669_v22, 0.0 }
 0x35d   : > { %v1987_v33 = vpack.c.bf16 %v7671_v28, %v7671_v28  ;;  %v1945_v19 = vsel %vm11084_vm13, %v7671_v28, 0.0 }
 0x35e   : > { %1979 = vadd.xlane.f32.xlu1 %v1978_v32  ;;  %v2054_v37 = vunpack.c.l.b16 %v1991_v29  ;;  %1970 = vadd.xlane.f32.xlu0 %v1969_v35 }
 0x35f   : > { %1955 = vadd.xlane.f32.xlu2 %v1954_v34  ;;  %v2007_v18 = vunpack.c.l.b16 %v1987_v33 }
 0x360   : > { %v2056_v17 = vpack.c.b16 %v2054_v37, %v2053_v36 }
 0x361   : > { %v2009_v39 = vpack.c.b16 %v2007_v18, %v2006_v38 }
 0x363   : > { %6388 = vmatmul.msk.bf16.gmra.mxu0 %vm11084_vm13, %v2009_v39  ;;  %6398 = vmatmul.msk.bf16.gmra.mxu1 %vm11084_vm13, %v2056_v17 }
 0x366   : > { %1946 = vadd.xlane.f32.xlu1 %v1945_v19  ;;  %1958 = vadd.xlane.f32.xlu0 %v1957_v40 }
 0x3b1   : > { %v8999_v44 = vpop.xlane.xlu0 %1949 }
 0x3b2   : > { %v9001_v45 = vpop.xlane.xlu2 %1940  ;;  %7672 = vrcp.f32 %v8999_v44  ;;  %v2259_v11 = vand.u32 2147483648, %v8999_v44  ;;  %v2257_v59 = vand.u32 2147483647, %v8999_v44  ;;  %vm2253_vm15 = vweird.f32 %v8999_v44 }
 0x3b3   : > { %7674 = vrcp.f32 %v9001_v45  ;;  %v2212_v56 = vand.u32 2147483647, %v9001_v45  ;;  %v2214_v57 = vand.u32 2147483648, %v9001_v45  ;;  %vm2208_vm14 = vweird.f32 %v9001_v45 }
 0x3b4   : > { %v9032_v15 = vor.u32 1.1754944e-38, %v2259_v11  ;;  %vm9092_vm10 = vcmp.eq.f32.partialorder %v2257_v59, 8.507059e+37 }
 0x3b5   : > { %vm9036_vm1 = vcmp.eq.f32.partialorder %v2212_v56, 8.507059e+37  ;;  %v2215_v62 = vor.u32 1.1754944e-38, %v2214_v57 }
 0x3b8   : > { %v9005_v46 = vpop.eup %7672 }
 0x3b9   : > { %v9007_v47 = vpop.eup %7674  ;;  %v2249_v48 = vmul.f32 %v9005_v46, %v8999_v44  ;;  %v9011_v49 = vpop.xlane.xlu1 %1937  ;;  %vm2254_vm2 = vweird.f32 %v9005_v46 }
 0x3ba   : > { %v9013_v50 = vpop.xlane.xlu0 %1961  ;;  %v2204_v54 = vmul.f32 %v9007_v47, %v9001_v45  ;;  %7676 = vrcp.f32 %v9011_v49  ;;  %v9018_v55 = vpop.xlane.xlu2 %1973  ;;  %v2197_v58 = vand.u32 2147483647, %v9011_v49  ;;  %v2199_v60 = vand.u32 2147483648, %v9011_v49 }
 0x3bb   : > { %7678 = vrcp.f32 %v9018_v55  ;;  %v2250_v26 = vsub.f32 1.0, %v2249_v48  ;;  %v2319_v24 = vand.u32 2147483648, %v9013_v50  ;;  %v2317_v63 = vand.u32 2147483647, %v9013_v50 }
 0x3bc   : > { %v2205_v25 = vsub.f32 1.0, %v2204_v54  ;;  %7680 = vrcp.f32 %v9013_v50  ;;  %vm2193_vm0 = vweird.f32 %v9011_v49  ;;  %vm2373_vm3 = vweird.f32 %v9018_v55 }
 0x3bd   : > { %v9043_v2 = vor.u32 1.1754944e-38, %v2319_v24  ;;  %v2377_v3 = vand.u32 2147483647, %v9018_v55  ;;  %v2251_v4 = vmul.f32 %v9005_v46, %v2250_v26  ;;  %vm2313_vm4 = vweird.f32 %v9013_v50 }
 0x3be   : > { %v2206_v23 = vmul.f32 %v9007_v47, %v2205_v25  ;;  %vm9057_vm5 = vcmp.eq.f32.partialorder %v2197_v58, 8.507059e+37  ;;  %vm2209_vm6 = vweird.f32 %v9007_v47  ;;  %v2200_v14 = vor.u32 1.1754944e-38, %v2199_v60 }
 0x3bf   : > { %v2379_v20 = vand.u32 2147483648, %v9018_v55  ;;  %vm9071_vm7 = vcmp.eq.f32.partialorder %v2317_v63, 8.507059e+37  ;;  %vm9082_vm9 = vmor %vm2208_vm14, %vm2209_vm6  ;;  %v2252_v33 = vadd.f32 %v9005_v46, %v2251_v4  ;;  %vm9098_vm12 = vcmp.eq.f32.partialorder %v2377_v3, 8.507059e+37 }
 0x3c0   : > { %v9041_v1 = vpop.eup %7676  ;;  %v2207_v9 = vadd.f32 %v9007_v47, %v2206_v23 }
 0x3c1   : > { %v9048_v5 = vpop.eup %7678  ;;  %v2189_v61 = vmul.f32 %v9041_v1, %v9011_v49  ;;  %v9052_v6 = vpop.xlane.xlu1 %1964  ;;  %vm2194_vm8 = vweird.f32 %v9041_v1  ;;  %v2380_v39 = vor.u32 1.1754944e-38, %v2379_v20 }
 0x3c2   : > { %v9054_v7 = vpop.xlane.xlu0 %1976  ;;  %v7681_v31 = vpop.eup %7680  ;;  %v2369_v30 = vmul.f32 %v9048_v5, %v9018_v55  ;;  %7682 = vrcp.f32 %v9052_v6  ;;  %v2334_v29 = vand.u32 2147483648, %v9052_v6  ;;  %v2332_v36 = vand.u32 2147483647, %v9052_v6  ;;  %vm9116_vm13 = vmor %vm2193_vm0, %vm2194_vm8 }
 0x3c3   : > { %v9066_v13 = vpop.xlane.xlu2 %1967  ;;  %v2190_v21 = vsub.f32 1.0, %v2189_v61  ;;  %v2309_v22 = vmul.f32 %v7681_v31, %v9013_v50  ;;  %v2211_v37 = vsel %vm9082_vm9, %v9007_v47, %v2207_v9  ;;  %vm2374_vm11 = vweird.f32 %v9048_v5  ;;  %vm9108_vm9 = vmor %vm2253_vm15, %vm2254_vm2 }
 0x3c4   : > { %7684 = vrcp.f32 %v9066_v13  ;;  %v2370_v28 = vsub.f32 1.0, %v2369_v30  ;;  %vm2314_vm14 = vweird.f32 %v7681_v31  ;;  %vm2328_vm6 = vweird.f32 %v9052_v6 }
 0x3c5   : > { %7686 = vrcp.f32 %v9054_v7  ;;  %v2310_v34 = vsub.f32 1.0, %v2309_v22  ;;  %v2191_v35 = vmul.f32 %v9041_v1, %v2190_v21  ;;  %v2131_v19 = vpop.f32.mrf.mxu2  ;;  %v2335_v47 = vor.u32 1.1754944e-38, %v2334_v29 }
 0x3c6   : > { %v2371_v18 = vmul.f32 %v9048_v5, %v2370_v28  ;;  %v2216_v44 = vsel %vm9036_vm1, %v2215_v62, %v2211_v37  ;;  %v2256_v51 = vsel %vm9108_vm9, %v9005_v46, %v2252_v33  ;;  %vm9134_vm0 = vcmp.eq.f32.partialorder %v2332_v36, 8.507059e+37  ;;  %vm9142_vm1 = vmor %vm2373_vm3, %vm2374_vm11 }
 0x3c7   : > { %v2311_v40 = vmul.f32 %v7681_v31, %v2310_v34  ;;  %v2192_v16 = vadd.f32 %v9041_v1, %v2191_v35  ;;  %v2261_v9 = vsel %vm9092_vm10, %v9032_v15, %v2256_v51  ;;  %vm2343_vm2 = vweird.f32 %v9066_v13 }
 0x3c8   : > { %v7683_v42 = vpop.eup %7682  ;;  %v2037_v43 = vpop.f32.mrf.mxu0  ;;  %v2372_v48 = vadd.f32 %v9048_v5, %v2371_v18  ;;  %v2349_v30 = vand.u32 2147483648, %v9066_v13 }
 0x3c9   : > { %v2324_v53 = vmul.f32 %v7683_v42, %v9052_v6  ;;  %v2312_v54 = vadd.f32 %v7681_v31, %v2311_v40  ;;  %v2196_v49 = vsel %vm9116_vm13, %v9041_v1, %v2192_v16  ;;  %v9132_v11 = vpop.xlane.xlu1 %1952  ;;  %vm2329_vm15 = vweird.f32 %v7683_v42  ;;  %vm2315_vm13 = vmor %vm2313_vm4, %vm2314_vm14 }
 0x3ca   : > { %v9126_v52 = vpop.eup %7684  ;;  %v2201_v26 = vsel %vm9057_vm5, %v2200_v14, %v2196_v49  ;;  %7688 = vrcp.f32 %v9132_v11  ;;  %v9158_v55 = vpop.xlane.xlu0 %1943  ;;  %v2376_v58 = vsel %vm9142_vm1, %v9048_v5, %v2372_v48  ;;  %vm2330_vm3 = vmor %vm2328_vm6, %vm2329_vm15  ;;  %vm2388_vm5 = vweird.f32 %v9054_v7 }
 0x3cb   : > { %v9146_v57 = vpop.eup %7686  ;;  %v2339_v25 = vmul.f32 %v9126_v52, %v9066_v13  ;;  %v9156_v24 = vpop.xlane.xlu2 %1982  ;;  %v2325_v59 = vsub.f32 1.0, %v2324_v53  ;;  %v2316_v60 = vsel %vm2315_vm13, %v7681_v31, %v2312_v54  ;;  %v2428_v50 = vmul.f32 %v2201_v26, %v2037_v43 }
 0x3cc   : > { %v2384_v23 = vmul.f32 %v9146_v57, %v9054_v7  ;;  %v2321_v0 = vsel %vm9071_vm7, %v9043_v2, %v2316_v60  ;;  %7690 = vrcp.f32 %v9156_v24  ;;  %v2381_v62 = vsel %vm9098_vm12, %v2380_v39, %v2376_v58 }
 0x3cd   : > { %v2340_v63 = vsub.f32 1.0, %v2339_v25  ;;  %v2326_v1 = vmul.f32 %v7683_v42, %v2325_v59  ;;  %v2436_v4 = vmul.f32 %v2321_v0, %v2131_v19  ;;  %v2444_v5 = vpack.c.bf16 %v2428_v50, %v2428_v50  ;;  %v2178_v61 = vpop.f32.mrf.mxu3  ;;  %v2133_v29 = vpop.f32.mrf.mxu2 }
 0x3ce   : > { %v2385_v3 = vsub.f32 1.0, %v2384_v23  ;;  %7692 = vrcp.f32 %v9158_v55  ;;  %v2440_v8 = vmul.f32 %v2381_v62, %v2178_v61  ;;  %v2347_v31 = vand.u32 2147483647, %v9066_v13 }
 0x3cf   : > { %v2341_v12 = vmul.f32 %v9126_v52, %v2340_v63  ;;  %v2327_v2 = vadd.f32 %v7683_v42, %v2326_v1  ;;  %v2452_v21 = vpack.c.bf16 %v2436_v4, %v2436_v4  ;;  %v2464_v22 = vunpack.c.l.b16 %v2444_v5 }
 0x3d0   : > { %v9179_v14 = vpop.eup %7688  ;;  %v2386_v20 = vmul.f32 %v9146_v57, %v2385_v3  ;;  %v2039_v15 = vpop.f32.mrf.mxu0  ;;  %vm2344_vm4 = vweird.f32 %v9126_v52  ;;  %v2456_v37 = vpack.c.bf16 %v2440_v8, %v2440_v8  ;;  %vm9214_vm8 = vcmp.eq.f32.partialorder %v2347_v31, 8.507059e+37 }
 0x3d1   : > { %v2084_v27 = vpop.f32.mrf.mxu1  ;;  %v2264_v28 = vmul.f32 %v9179_v14, %v9132_v11  ;;  %v2331_v32 = vsel %vm2330_vm3, %v7683_v42, %v2327_v2  ;;  %v2429_v33 = vmul.f32 %v2216_v44, %v2039_v15  ;;  %v9189_v34 = vpop.xlane.xlu1 %1979  ;;  %v2342_v35 = vadd.f32 %v9126_v52, %v2341_v12  ;;  %vm9210_vm7 = vmor %vm2343_vm2, %vm2344_vm4 }
 0x3d2   : > { %v9192_v36 = vpop.eup %7690  ;;  %v2336_v6 = vsel %vm9134_vm0, %v2335_v47, %v2331_v32  ;;  %v2432_v38 = vmul.f32 %v2261_v9, %v2084_v27  ;;  %7694 = vrcp.f32 %v9189_v34  ;;  %v9199_v17 = vpop.xlane.xlu0 %1970  ;;  %v2350_v47 = vor.u32 1.1754944e-38, %v2349_v30 }
 0x3d3   : > { %v9197_v18 = vpop.xlane.xlu2 %1955  ;;  %v2265_v39 = vsub.f32 1.0, %v2264_v28  ;;  %v2414_v19 = vmul.f32 %v9192_v36, %v9156_v24  ;;  %v2437_v40 = vmul.f32 %v2336_v6, %v2133_v29  ;;  %v2445_v16 = vpack.c.bf16 %v2429_v33, %v2429_v33 }
 0x3d4   : > { %v9203_v41 = vpop.eup %7692  ;;  %v2448_v42 = vpack.c.bf16 %v2432_v38, %v2432_v38  ;;  %7696 = vrcp.f32 %v9197_v18  ;;  %v2558_v48 = vunpack.c.l.b16 %v2452_v21  ;;  %v2346_v53 = vsel %vm9210_vm7, %v9126_v52, %v2342_v35 }
 0x3d5   : > { %v2266_v44 = vmul.f32 %v9179_v14, %v2265_v39  ;;  %v2453_v51 = vpack.c.bf16 %v2437_v40, %v2437_v40  ;;  %v2415_v54 = vsub.f32 1.0, %v2414_v19  ;;  %v2465_v49 = vunpack.c.l.b16 %v2445_v16  ;;  %v2180_v5 = vpop.f32.mrf.mxu3  ;;  %v2136_v12 = vpop.f32.mrf.mxu2 }
 0x3d6   : > { %7698 = vrcp.f32 %v9199_v17  ;;  %v2387_v13 = vadd.f32 %v9146_v57, %v2386_v20  ;;  %v9226_v56 = vmul.f32 %v9203_v41, %v9158_v55  ;;  %v9228_v25 = vunpack.c.l.b16 %v2456_v37 }
 0x3d7   : > { %v2559_v46 = vunpack.c.l.b16 %v2453_v51  ;;  %v9230_v26 = vunpack.c.l.b16 %v2448_v42  ;;  %v2468_v59 = vpack.c.b16 %v2465_v49, %v2464_v22  ;;  %vm2389_vm10 = vweird.f32 %v9146_v57 }
 0x3d8   : > { %v9232_v58 = vpop.eup %7694  ;;  %v2392_v52 = vand.u32 2147483647, %v9054_v7  ;;  %v2394_v23 = vand.u32 2147483648, %v9054_v7  ;;  %v2351_v63 = vsel %vm9214_vm8, %v2350_v47, %v2346_v53  ;;  %vm9243_vm11 = vmor %vm2388_vm5, %vm2389_vm10  ;;  %v2267_v62 = vadd.f32 %v9179_v14, %v2266_v44 }
 0x3d9   : > { %v2562_v60 = vpack.c.b16 %v2559_v46, %v2558_v48  ;;  %v2399_v50 = vmul.f32 %v9232_v58, %v9189_v34  ;;  %v9248_v1 = vpop.xlane.xlu1 %1946  ;;  %v9253_v4 = vmul.f32 %v9192_v36, %v2415_v54  ;;  %v2391_v61 = vsel %vm9243_vm11, %v9146_v57, %v2387_v13 }
 0x3da   : > { %v9250_v3 = vpop.eup %7696  ;;  %vm2393_vm12 = vcmp.eq.f32.partialorder %v2392_v52, 8.507059e+37  ;;  %v2395_v7 = vor.u32 1.1754944e-38, %v2394_v23  ;;  %vm11162_vm14 = vcmask 261120   ;;  %vm2268_vm6 = vweird.f32 %v9132_v11  ;;  %v9265_v2 = vpop.xlane.xlu0 %1958 }
 0x3db   : > { %6427 = vmatmul.msk.bf16.vlgmr.msrb.gmra.mxu0 %vm11162_vm14, %v2468_v59  ;;  %v2400_v8 = vsub.f32 1.0, %v2399_v50  ;;  %v9261_v9 = vmul.f32 %v9250_v3, %v9197_v18  ;;  %vm2269_vm9 = vweird.f32 %v9179_v14  ;;  %vm11163_vm15 = vmmov %vm11162_vm14  ;;  %v2272_v20 = vand.u32 2147483647, %v9132_v11 }
 0x3dc   : > { %6447 = vmatmul.msk.bf16.vlgmr.msrb.gmra.mxu2 %vm11163_vm15, %v2562_v60  ;;  %v7699_v31 = vpop.eup %7698  ;;  %v2396_v57 = vsel %vm2393_vm12, %v2395_v7, %v2391_v61  ;;  %vm9268_vm0 = vmor %vm2268_vm6, %vm2269_vm9  ;;  %v2274_v21 = vand.u32 2147483648, %v9132_v11  ;;  %7700 = vrcp.f32 %v9248_v1  ;;  %v2220_v22 = vsub.f32 1.0, %v9226_v56  ;;  %v2086_v11 = vpop.f32.mrf.mxu1 }
 0x3dd   : > { %v2354_v15 = vmul.f32 %v7699_v31, %v9199_v17  ;;  %v2441_v27 = vmul.f32 %v2396_v57, %v2180_v5  ;;  %v2271_v28 = vsel %vm9268_vm0, %v9179_v14, %v2267_v62  ;;  %v2280_v29 = vsub.f32 1.0, %v9261_v9  ;;  %vm11168_vm10 = vmmov %vm11162_vm14  ;;  %v2138_v23 = vpop.f32.mrf.mxu2  ;;  %v2183_v5 = vpop.f32.mrf.mxu3 }
 0x3de   : > { %v2438_v32 = vmul.f32 %v2351_v63, %v2136_v12  ;;  %v2275_v33 = vor.u32 1.1754944e-38, %v2274_v21  ;;  %7702 = vrcp.f32 %v9265_v2  ;;  %vm2273_vm1 = vcmp.eq.f32.partialorder %v2272_v20, 8.507059e+37  ;;  %vm11169_vm14 = vmmov %vm11168_vm10 }
 0x3df   : > { %v2355_v35 = vsub.f32 1.0, %v2354_v15  ;;  %v2457_v6 = vpack.c.bf16 %v2441_v27, %v2441_v27  ;;  %vm2359_vm13 = vweird.f32 %v7699_v31  ;;  %v2362_v38 = vand.u32 2147483647, %v9199_v17 }
 0x3e0   : > { %v2276_v37 = vsel %vm2273_vm1, %v2275_v33, %v2271_v28  ;;  %v2364_v39 = vand.u32 2147483648, %v9199_v17  ;;  %v2401_v19 = vmul.f32 %v9232_v58, %v2400_v8  ;;  %vm2358_vm2 = vweird.f32 %v9199_v17 }
 0x3e1   : > { %v2356_v40 = vmul.f32 %v7699_v31, %v2355_v35  ;;  %v2606_v14 = vunpack.c.l.b16 %v2457_v6  ;;  %v2433_v16 = vmul.f32 %v2276_v37, %v2086_v11  ;;  %vm2403_vm3 = vweird.f32 %v9189_v34  ;;  %vm2360_vm5 = vmor %vm2358_vm2, %vm2359_vm13  ;;  %v7857_v37 = vld [vmem:[%s8723_s24 + $0x8] sm:$0xff] }
 0x3e2   : > { %v9286_v42 = vpop.eup %7700  ;;  %v2402_v43 = vadd.f32 %v9232_v58, %v2401_v19  ;;  %vm2404_vm4 = vweird.f32 %v9232_v58  ;;  %v2407_v45 = vand.u32 2147483647, %v9189_v34  ;;  %vm2363_vm7 = vcmp.eq.f32.partialorder %v2362_v38, 8.507059e+37 }
 0x3e3   : > { %v2609_v47 = vpack.c.b16 %v2606_v14, %v9228_v25  ;;  %v2449_v48 = vpack.c.bf16 %v2433_v16, %v2433_v16  ;;  %v2234_v44 = vmul.f32 %v9286_v42, %v9248_v1  ;;  %v2357_v51 = vadd.f32 %v7699_v31, %v2356_v40  ;;  %vm9298_vm8 = vmor %vm2403_vm3, %vm2404_vm4 }
 0x3e4   : > { %v9296_v17 = vpop.eup %7702  ;;  %v2365_v53 = vor.u32 1.1754944e-38, %v2364_v39  ;;  %v2409_v49 = vand.u32 2147483648, %v9189_v34  ;;  %v2221_v13 = vmul.f32 %v9203_v41, %v2220_v22  ;;  %v2406_v59 = vsel %vm9298_vm8, %v9232_v58, %v2402_v43  ;;  %v2042_v22 = vpop.f32.mrf.mxu0 }
 0x3e5   : > { %v2512_v56 = vunpack.c.l.b16 %v2449_v48  ;;  %v2294_v46 = vmul.f32 %v9296_v17, %v9265_v2  ;;  %v2361_v25 = vsel %vm2360_vm5, %v7699_v31, %v2357_v51  ;;  %6457 = vmatmul.msk.bf16.vlgmr.msrb.gmra.mxu3 %vm11168_vm10, %v2609_v47  ;;  %v2454_v52 = vpack.c.bf16 %v2438_v32, %v2438_v32  ;;  %v2089_v35 = vpop.f32.mrf.mxu1  ;;  %v2185_v14 = vpop.f32.mrf.mxu3 }
 0x3e6   : > { %v2366_v60 = vsel %vm2363_vm7, %v2365_v53, %v2361_v25  ;;  %vm2408_vm11 = vcmp.eq.f32.partialorder %v2407_v45, 8.507059e+37  ;;  %v2410_v50 = vor.u32 1.1754944e-38, %v2409_v49  ;;  %v2235_v63 = vsub.f32 1.0, %v2234_v44 }
 0x3e7   : > { %v2515_v34 = vpack.c.b16 %v2512_v56, %v9230_v26  ;;  %v2295_v0 = vsub.f32 1.0, %v2294_v46  ;;  %v2439_v62 = vmul.f32 %v2366_v60, %v2138_v23  ;;  %v2222_v7 = vadd.f32 %v9203_v41, %v2221_v13 }
 0x3e8   : > { %v2411_v61 = vsel %vm2408_vm11, %v2410_v50, %v2406_v59  ;;  %vm2224_vm12 = vweird.f32 %v9203_v41  ;;  %v2227_v58 = vand.u32 2147483647, %v9158_v55  ;;  %v2229_v9 = vand.u32 2147483648, %v9158_v55 }
 0x3e9   : > { %v2455_v8 = vpack.c.bf16 %v2439_v62, %v2439_v62  ;;  %v2281_v12 = vmul.f32 %v9250_v3, %v2280_v29  ;;  %6437 = vmatmul.msk.bf16.vlgmr.msrb.gmra.mxu1 %vm11169_vm14, %v2515_v34  ;;  %v9317_v31 = vunpack.c.l.b16 %v2454_v52  ;;  %v2442_v26 = vmul.f32 %v2411_v61, %v2183_v5 }
 0x3ea   : > { %vm2223_vm6 = vweird.f32 %v9158_v55  ;;  %v2236_v57 = vmul.f32 %v9286_v42, %v2235_v63  ;;  %v2296_v30 = vmul.f32 %v9296_v17, %v2295_v0  ;;  %vm2284_vm15 = vweird.f32 %v9250_v3 }
 0x3eb   : > { %vm9322_vm9 = vmor %vm2223_vm6, %vm2224_vm12  ;;  %v2282_v21 = vadd.f32 %v9250_v3, %v2281_v12  ;;  %vm2228_vm0 = vcmp.eq.f32.partialorder %v2227_v58, 8.507059e+37  ;;  %v2289_v55 = vand.u32 2147483648, %v9197_v18  ;;  %v2417_v27 = vadd.f32 %v9192_v36, %v9253_v4 }
 0x3ec   : > { %v2226_v15 = vsel %vm9322_vm9, %v9203_v41, %v2222_v7  ;;  %v2561_v28 = vunpack.c.l.b16 %v2455_v8  ;;  %v2230_v29 = vor.u32 1.1754944e-38, %v2229_v9  ;;  %vm2283_vm1 = vweird.f32 %v9197_v18  ;;  %v2044_v46 = vpop.f32.mrf.mxu0 }
 0x3ed   : > { %v2287_v32 = vand.u32 2147483647, %v9197_v18  ;;  %v2458_v33 = vpack.c.bf16 %v2442_v26, %v2442_v26  ;;  %vm9336_vm13 = vmor %vm2283_vm1, %vm2284_vm15  ;;  %vm2418_vm2 = vweird.f32 %v9156_v24  ;;  %vm2419_vm3 = vweird.f32 %v9192_v36 }
 0x3ee   : > { %v2422_v41 = vand.u32 2147483647, %v9156_v24  ;;  %v2231_v11 = vsel %vm2228_vm0, %v2230_v29, %v2226_v15  ;;  %v2286_v4 = vsel %vm9336_vm13, %v9250_v3, %v2282_v21  ;;  %vm9346_vm4 = vmor %vm2418_vm2, %vm2419_vm3  ;;  %v2424_v18 = vand.u32 2147483648, %v9156_v24 }
 0x3ef   : > { %v2237_v38 = vadd.f32 %v9286_v42, %v2236_v57  ;;  %v2430_v39 = vmul.f32 %v2231_v11, %v2042_v22  ;;  %v2290_v19 = vor.u32 1.1754944e-38, %v2289_v55  ;;  %v2421_v40 = vsel %vm9346_vm4, %v9192_v36, %v2417_v27  ;;  %v7620_v22 = vld [vmem:[#allocation8] ss:$0 sm:$0xff] }
 0x3f0   : > { %vm2239_vm5 = vweird.f32 %v9286_v42  ;;  %vm2288_vm7 = vcmp.eq.f32.partialorder %v2287_v32, 8.507059e+37  ;;  %v2425_v16 = vor.u32 1.1754944e-38, %v2424_v18  ;;  %vm2238_vm8 = vweird.f32 %v9248_v1  ;;  %v7856_v32 = vld [vmem:[%s8723_s24] sm:$0xff] }
 0x3f1   : > { %v2242_v3 = vand.u32 2147483647, %v9248_v1  ;;  %v2291_v43 = vsel %vm2288_vm7, %v2290_v19, %v2286_v4  ;;  %vm2423_vm10 = vcmp.eq.f32.partialorder %v2422_v41, 8.507059e+37  ;;  %vm9358_vm11 = vmor %vm2238_vm8, %vm2239_vm5  ;;  %v2244_v45 = vand.u32 2147483648, %v9248_v1 }
 0x3f2   : > { %v2297_v47 = vadd.f32 %v9296_v17, %v2296_v30  ;;  %v2426_v36 = vsel %vm2423_vm10, %v2425_v16, %v2421_v40  ;;  %v2241_v48 = vsel %vm9358_vm11, %v9286_v42, %v2237_v38  ;;  %vm2298_vm12 = vweird.f32 %v9265_v2 }
 0x3f3   : > { %vm2299_vm14 = vweird.f32 %v9296_v17  ;;  %v2443_v44 = vmul.f32 %v2426_v36, %v2185_v14  ;;  %v2245_v51 = vor.u32 1.1754944e-38, %v2244_v45  ;;  %v2302_v54 = vand.u32 2147483647, %v9265_v2  ;;  %v7858_v36 = vld [vmem:[%s8723_s24 + $0x10] sm:$0xff] }
 0x3f4   : > { %vm9369_vm6 = vmor %vm2298_vm12, %vm2299_vm14  ;;  %v2304_v1 = vand.u32 2147483648, %v9265_v2  ;;  %v2434_v49 = vmul.f32 %v2291_v43, %v2089_v35  ;;  %vm2243_vm9 = vcmp.eq.f32.partialorder %v2242_v3, 8.507059e+37  ;;  %v2563_v13 = vpack.c.b16 %v2561_v28, %v9317_v31  ;;  %v2091_v2 = vpop.f32.mrf.mxu1 }
 0x3f5   : > { %v2301_v42 = vsel %vm9369_vm6, %v9296_v17, %v2297_v47  ;;  %v2459_v56 = vpack.c.bf16 %v2443_v44, %v2443_v44  ;;  %v2246_v25 = vsel %vm2243_vm9, %v2245_v51, %v2241_v48  ;;  %v2446_v52 = vpack.c.bf16 %v2430_v39, %v2430_v39 }
 0x3f6   : > { %v2305_v59 = vor.u32 1.1754944e-38, %v2304_v1  ;;  %v2431_v23 = vmul.f32 %v2246_v25, %v2044_v46  ;;  %vm2303_vm15 = vcmp.eq.f32.partialorder %v2302_v54, 8.507059e+37  ;;  %vm11180_vm0 = vcmask 261120  }
 0x3f7   : > { %6448 = vmatmul.msk.bf16.gmra.mxu2 %vm11180_vm0, %v2563_v13  ;;  %v2607_v60 = vunpack.c.l.b16 %v2458_v33  ;;  %v2608_v50 = vunpack.c.l.b16 %v2459_v56  ;;  %v2450_v63 = vpack.c.bf16 %v2434_v49, %v2434_v49  ;;  %v2466_v17 = vunpack.c.l.b16 %v2446_v52  ;;  %vm11181_vm1 = vmmov %vm11180_vm0  ;;  %v7859_v49 = vld [vmem:[%s8723_s24 + $0x18] sm:$0xff]  ;;  %s11184_s24 = sld [smem:[#allocation46_spill]] }
 0x3f8   : > { %v2306_v34 = vsel %vm2303_vm15, %v2305_v59, %v2301_v42  ;;  %v2447_v0 = vpack.c.bf16 %v2431_v23, %v2431_v23  ;;  %vm11182_vm13 = vmmov %vm11180_vm0 }
 0x3f9   : > { %v2435_v62 = vmul.f32 %v2306_v34, %v2091_v2  ;;  %v2610_v5 = vpack.c.b16 %v2608_v50, %v2607_v60  ;;  %v2513_v58 = vunpack.c.l.b16 %v2450_v63  ;;  %vm11183_vm2 = vmmov %vm11180_vm0 }
 0x3fa   : > { %v2467_v61 = vunpack.c.l.b16 %v2447_v0 }
 0x3fb   : > { %v2451_v7 = vpack.c.bf16 %v2435_v62, %v2435_v62  ;;  %6458 = vmatmul.msk.bf16.gmra.mxu3 %vm11181_vm1, %v2610_v5 }
 0x3fc   : > { %v2469_v9 = vpack.c.b16 %v2467_v61, %v2466_v17 }
 0x3fd   : > { %v2514_v8 = vunpack.c.l.b16 %v2451_v7  ;;  %v6581_v61 = vld [vmem:[%s11184_s24 + $0xe8] sm:$0xf]  ;;  %v7300_v7 = vld [vmem:[%s11184_s24 + $0xf4] sm:$0xf0] }
 0x3fe   : > { %6428 = vmatmul.msk.bf16.gmra.mxu0 %vm11182_vm13, %v2469_v9  ;;  %v7299_v9 = vld [vmem:[%s11184_s24 + $0xec] sm:$0xf0] }
 0x3ff   : > { %v2516_v12 = vpack.c.b16 %v2514_v8, %v2513_v58  ;;  %v6573_v58 = vld [vmem:[%s11184_s24 + $0xe0] sm:$0xf]  ;;  %v6582_v8 = vor.u32 %v7300_v7, %v6581_v61  ;;  %v6535_v61 = vld [vmem:[%s11184_s24 + $0x98] sm:$0xf0] }
 0x401   : > { %6438 = vmatmul.msk.bf16.gmra.mxu1 %vm11183_vm2, %v2516_v12  ;;  %v7297_v12 = vld [vmem:[%s11184_s24 + $0xe4] sm:$0xf]  ;;  %3074 = vmatpush.bf16.msra.mxu2 %v6582_v8 }
 0x458   : > { %v2497_v31 = vpop.f32.mrf.mxu0 }
 0x45f   : > { %v2591_v26 = vpop.f32.mrf.mxu2 }
 0x460   : > { %v2499_v27 = vpop.f32.mrf.mxu0 }
 0x466   : > { %v2544_v57 = vpop.f32.mrf.mxu1 }
 0x467   : > { %v2648_v30 = vadd.f32 %v2544_v57, %v2497_v31  ;;  %v2593_v35 = vpop.f32.mrf.mxu2  ;;  %v6575_v31 = vld [vmem:[%s11184_s24 + $0xf0] sm:$0xf0] }
 0x468   : > { %v2638_v20 = vpop.f32.mrf.mxu3  ;;  %v6578_v57 = vor.u32 %v7297_v12, %v6575_v31  ;;  %v7284_v12 = vld [vmem:[%s11184_s24 + $0x74] sm:$0xf0] }
 0x469   : > { %v2649_v21 = vadd.f32 %v2648_v30, %v2591_v26  ;;  %v6574_v26 = vor.u32 %v7299_v9, %v6573_v58  ;;  %v7298_v30 = vld [vmem:[%s11184_s24 + $0xec] sm:$0xf]  ;;  %v6517_v9 = vld [vmem:[%s11184_s24 + $0x68] sm:$0xf] }
 0x46a   : > { %3055 = vmatpush.bf16.msra.mxu1 %v6578_v57  ;;  %v6509_v57 = vld [vmem:[%s11184_s24 + $0x60] sm:$0xf] }
 0x46b   : > { %v2650_v15 = vadd.f32 %v2649_v21, %v2638_v20  ;;  %v6583_v20 = vld [vmem:[%s11184_s24 + $0xf8] sm:$0xf0]  ;;  %3036 = vmatpush.bf16.msra.mxu0 %v6574_v26  ;;  %v6518_v26 = vor.u32 %v7284_v12, %v6517_v9  ;;  %v7271_v9 = vld [vmem:[%s11184_s24 + $0xc] sm:$0xf0]  ;;  %v7269_v12 = vld [vmem:[%s11184_s24 + $0x4] sm:$0xf] }
 0x46c   : > { %v6586_v21 = vor.u32 %v7298_v30, %v6583_v20  ;;  %v7283_v30 = vld [vmem:[%s11184_s24 + $0x6c] sm:$0xf0]  ;;  %v7281_v20 = vld [vmem:[%s11184_s24 + $0x64] sm:$0xf] }
 0x46d   : > { %v2663_v55 = vadd.f32 %v7620_v22, %v2650_v15  ;;  %v7296_v15 = vld [vmem:[%s11184_s24 + $0xd4] sm:$0xf0] }
 0x46e   : > { %v2546_v28 = vpop.f32.mrf.mxu1  ;;  %3093 = vmatpush.bf16.msra.mxu3 %v6586_v21 }
 0x46f   : > { %v2651_v29 = vadd.f32 %v2546_v28, %v2499_v27  ;;  %v9384_v33 = vadd.f32 %v7856_v32, %v2663_v55  ;;  %v6557_v55 = vld [vmem:[%s11184_s24 + $0xc0] sm:$0xf]  ;;  %v7293_v32 = vld [vmem:[%s11184_s24 + $0xc4] sm:$0xf] }
 0x470   : > { %v2640_v41 = vpop.f32.mrf.mxu3 }
 0x471   : > { %v2652_v6 = vadd.f32 %v2651_v29, %v2593_v35  ;;  %2673 = vadd.xlane.f32.xlu1 %v9384_v33  ;;  %v7295_v29 = vld [vmem:[%s11184_s24 + $0xcc] sm:$0xf0]  ;;  %v6559_v35 = vld [vmem:[%s11184_s24 + $0xd0] sm:$0xf0] }
 0x473   : > { %v2653_v11 = vadd.f32 %v2652_v6, %v2640_v41  ;;  %v6558_v41 = vor.u32 %v7295_v29, %v6557_v55  ;;  %v6511_v55 = vld [vmem:[%s11184_s24 + $0x70] sm:$0xf0] }
 0x474   : > { %v6514_v29 = vor.u32 %v7281_v20, %v6511_v55  ;;  %v6471_v20 = vld [vmem:[%s11184_s24 + $0x18] sm:$0xf0]  ;;  %v7622_v55 = vld [vmem:[#allocation14] ss:$0 sm:$0xff] }
 0x475   : > { %v2664_v4 = vadd.f32 %v7620_v22, %v2653_v11  ;;  %v6562_v11 = vor.u32 %v7293_v32, %v6559_v35  ;;  %3037 = vmatpush.bf16.msra.mxu0 %v6558_v41  ;;  %v6501_v41 = vld [vmem:[%s11184_s24 + $0x48] sm:$0xf] }
 0x477   : > { %v9388_v18 = vadd.f32 %v7857_v37, %v2664_v4  ;;  %v7294_v4 = vld [vmem:[%s11184_s24 + $0xcc] sm:$0xf]  ;;  %v6567_v37 = vld [vmem:[%s11184_s24 + $0xd8] sm:$0xf0]  ;;  %3056 = vmatpush.bf16.msra.mxu1 %v6562_v11  ;;  %v7280_v11 = vld [vmem:[%s11184_s24 + $0x54] sm:$0xf0] }
 0x479   : > { %2675 = vadd.xlane.f32.xlu2 %v9388_v18 }
 0x47a   : > { %v2596_v39 = vpop.f32.mrf.mxu2 }
 0x47b   : > { %v2502_v38 = vpop.f32.mrf.mxu0 }
 0x47e   : > { %v2549_v19 = vpop.f32.mrf.mxu1  ;;  %v2643_v14 = vpop.f32.mrf.mxu3 }
 0x47f   : > { %v2654_v40 = vadd.f32 %v2549_v19, %v2502_v38  ;;  %v6549_v38 = vld [vmem:[%s11184_s24 + $0xa8] sm:$0xf]  ;;  %v7292_v19 = vld [vmem:[%s11184_s24 + $0xb4] sm:$0xf0] }
 0x481   : > { %v2655_v16 = vadd.f32 %v2654_v40, %v2596_v39  ;;  %v6570_v39 = vor.u32 %v7294_v4, %v6567_v37  ;;  %v6541_v40 = vld [vmem:[%s11184_s24 + $0xa0] sm:$0xf] }
 0x482   : > { %v2598_v44 = vpop.f32.mrf.mxu2  ;;  %v6493_v4 = vld [vmem:[%s11184_s24 + $0x40] sm:$0xf] }
 0x483   : > { %v2656_v3 = vadd.f32 %v2655_v16, %v2643_v14  ;;  %v2504_v43 = vpop.f32.mrf.mxu0  ;;  %v7291_v14 = vld [vmem:[%s11184_s24 + $0xac] sm:$0xf0]  ;;  %3094 = vmatpush.bf16.msra.mxu3 %v6570_v39 }
 0x485   : > { %v2665_v24 = vadd.f32 %v7620_v22, %v2656_v3  ;;  %v6550_v3 = vor.u32 %v7292_v19, %v6549_v38  ;;  %v6502_v19 = vor.u32 %v7280_v11, %v6501_v41 }
 0x486   : > { %v2551_v45 = vpop.f32.mrf.mxu1  ;;  %v2645_v53 = vpop.f32.mrf.mxu3 }
 0x487   : > { %v2657_v47 = vadd.f32 %v2551_v45, %v2504_v43  ;;  %v9392_v48 = vadd.f32 %v7858_v36, %v2665_v24  ;;  %v6542_v43 = vor.u32 %v7291_v14, %v6541_v40  ;;  %v7289_v24 = vld [vmem:[%s11184_s24 + $0xa4] sm:$0xf]  ;;  %v6543_v45 = vld [vmem:[%s11184_s24 + $0xb0] sm:$0xf0]  ;;  %v7290_v36 = vld [vmem:[%s11184_s24 + $0xac] sm:$0xf] }
 0x488   : > { %v7279_v40 = vld [vmem:[%s11184_s24 + $0x4c] sm:$0xf0]  ;;  %v7277_v14 = vld [vmem:[%s11184_s24 + $0x44] sm:$0xf] }
 0x489   : > { %v2658_v51 = vadd.f32 %v2657_v47, %v2598_v44  ;;  %2677 = vadd.xlane.f32.xlu0 %v9392_v48  ;;  %v6546_v47 = vor.u32 %v7289_v24, %v6543_v45  ;;  %v6551_v44 = vld [vmem:[%s11184_s24 + $0xb8] sm:$0xf0]  ;;  %3038 = vmatpush.bf16.msra.mxu0 %v6542_v43  ;;  %v6495_v43 = vld [vmem:[%s11184_s24 + $0x50] sm:$0xf0]  ;;  %v7278_v24 = vld [vmem:[%s11184_s24 + $0x4c] sm:$0xf] }
 0x48a   : > { %v6503_v45 = vld [vmem:[%s11184_s24 + $0x58] sm:$0xf0] }
 0x48b   : > { %v2659_v54 = vadd.f32 %v2658_v51, %v2645_v53  ;;  %v6554_v51 = vor.u32 %v7290_v36, %v6551_v44  ;;  %3057 = vmatpush.bf16.msra.mxu1 %v6546_v47  ;;  %v9594_v47 = vld [vmem:[#allocation13] ss:$0 sm:$0xff]  ;;  %v6498_v44 = vor.u32 %v7277_v14, %v6495_v43 }
 0x48d   : > { %v2666_v1 = vadd.f32 %v7620_v22, %v2659_v54  ;;  %v6565_v22 = vld [vmem:[%s11184_s24 + $0xc8] sm:$0xf]  ;;  %3095 = vmatpush.bf16.msra.mxu3 %v6554_v51  ;;  %v6506_v51 = vor.u32 %v7278_v24, %v6503_v45 }
 0x48e   : > { %v6566_v28 = vor.u32 %v7296_v15, %v6565_v22  ;;  %v6510_v15 = vor.u32 %v7283_v30, %v6509_v57  ;;  %v7270_v30 = vld [vmem:[%s11184_s24 + $0xc] sm:$0xf] }
 0x48f   : > { %v9396_v42 = vadd.f32 %v7859_v49, %v2666_v1 }
 0x490   : > { %3075 = vmatpush.bf16.msra.mxu2 %v6566_v28  ;;  %v6519_v28 = vld [vmem:[%s11184_s24 + $0x78] sm:$0xf0] }
 0x491   : > { %2679 = vadd.xlane.f32.xlu1 %v9396_v42 }
 0x494   : > { %3076 = vmatpush.bf16.msra.mxu2 %v6550_v3  ;;  %v6494_v3 = vor.u32 %v7279_v40, %v6493_v4 }
 0x4e4   : > { %v2674_v13 = vpop.xlane.xlu1 %2673 }
 0x4e5   : > { %v2681_v56 = vmul.f32 %v2674_v13, %v8729_v10 }
 0x4e7   : > { %v9401_v46 = vsub.f32 %v9384_v33, %v2681_v56 }
 0x4e9   : > { %v2689_v25 = vmul.f32 %v9401_v46, %v9401_v46 }
 0x4eb   : > { %2693 = vadd.xlane.f32.xlu2 %v2689_v25  ;;  %v6533_v25 = vld [vmem:[%s11184_s24 + $0x88] sm:$0xf] }
 0x4ec   : > { %v2676_v59 = vpop.xlane.xlu2 %2675 }
 0x4ed   : > { %v2682_v52 = vmul.f32 %v2676_v59, %v8729_v10  ;;  %v7288_v59 = vld [vmem:[%s11184_s24 + $0x94] sm:$0xf0] }
 0x4ef   : > { %v9407_v23 = vsub.f32 %v9388_v18, %v2682_v52  ;;  %v6525_v52 = vld [vmem:[%s11184_s24 + $0x80] sm:$0xf] }
 0x4f1   : > { %v2690_v60 = vmul.f32 %v9407_v23, %v9407_v23 }
 0x4f3   : > { %2695 = vadd.xlane.f32.xlu0 %v2690_v60 }
 0x4fc   : > { %v2678_v50 = vpop.xlane.xlu0 %2677 }
 0x4fd   : > { %v2683_v2 = vmul.f32 %v2678_v50, %v8729_v10  ;;  %v6534_v50 = vor.u32 %v7288_v59, %v6533_v25  ;;  %v6477_v25 = vld [vmem:[%s11184_s24 + $0x20] sm:$0xf]  ;;  %v7275_v59 = vld [vmem:[%s11184_s24 + $0x2c] sm:$0xf0] }
 0x4ff   : > { %v9413_v34 = vsub.f32 %v9392_v48, %v2683_v2  ;;  %v7287_v2 = vld [vmem:[%s11184_s24 + $0x8c] sm:$0xf0]  ;;  %3077 = vmatpush.bf16.msra.mxu2 %v6534_v50  ;;  %v6479_v50 = vld [vmem:[%s11184_s24 + $0x30] sm:$0xf0] }
 0x501   : > { %v2691_v63 = vmul.f32 %v9413_v34, %v9413_v34 }
 0x503   : > { %2697 = vadd.xlane.f32.xlu1 %v2691_v63  ;;  %v7285_v63 = vld [vmem:[%s11184_s24 + $0x84] sm:$0xf]  ;;  %3078 = vmatpush.bf16.msra.mxu2 %v6518_v26 }
 0x504   : > { %v2680_v0 = vpop.xlane.xlu1 %2679 }
 0x505   : > { %v2684_v62 = vmul.f32 %v2680_v0, %v8729_v10  ;;  %v6526_v0 = vor.u32 %v7287_v2, %v6525_v52  ;;  %v6478_v52 = vor.u32 %v7275_v59, %v6477_v25  ;;  %v7274_v2 = vld [vmem:[%s11184_s24 + $0x2c] sm:$0xf]  ;;  %v7332_v25 = vld [vmem:[%s11057_s12 + $0xf8] sm:$0xff] }
 0x506   : > { %v7306_v59 = vld [vmem:[%s11057_s12 + $0x28] sm:$0xff] }
 0x507   : > { %v9419_v5 = vsub.f32 %v9396_v42, %v2684_v62  ;;  %v6527_v62 = vld [vmem:[%s11184_s24 + $0x90] sm:$0xf0]  ;;  %3039 = vmatpush.bf16.msra.mxu0 %v6526_v0  ;;  %3079 = vmatpush.bf16.msra.mxu2 %v6502_v19  ;;  %v6487_v0 = vld [vmem:[%s11184_s24 + $0x38] sm:$0xf0] }
 0x508   : > { %v6530_v58 = vor.u32 %v7285_v63, %v6527_v62  ;;  %v6469_v62 = vld [vmem:[%s11184_s24 + $0x8] sm:$0xf] }
 0x509   : > { %v2692_v17 = vmul.f32 %v9419_v5, %v9419_v5 }
 0x50a   : > { %3058 = vmatpush.bf16.msra.mxu1 %v6530_v58 }
 0x50b   : > { %2699 = vadd.xlane.f32.xlu2 %v2692_v17  ;;  %v7286_v17 = vld [vmem:[%s11184_s24 + $0x8c] sm:$0xf]  ;;  %3040 = vmatpush.bf16.msra.mxu0 %v6510_v15  ;;  %v6474_v15 = vor.u32 %v7270_v30, %v6471_v20  ;;  %v7303_v30 = vld [vmem:[%s11057_s12 + $0x10] sm:$0xff] }
 0x50c   : > { %v6538_v8 = vor.u32 %v7286_v17, %v6535_v61  ;;  %v7272_v17 = vld [vmem:[%s11184_s24 + $0x14] sm:$0xf0]  ;;  %v7311_v20 = vld [vmem:[%s11057_s12 + $0x50] sm:$0xff] }
 0x50d   : > { %v6470_v58 = vor.u32 %v7272_v17, %v6469_v62  ;;  %v7330_v62 = vld [vmem:[%s11057_s12 + $0xe8] sm:$0xff]  ;;  %v7304_v17 = vld [vmem:[%s11057_s12 + $0x18] sm:$0xff] }
 0x50e   : > { %3096 = vmatpush.bf16.msra.mxu3 %v6538_v8  ;;  %3059 = vmatpush.bf16.msra.mxu1 %v6514_v29  ;;  %v6461_v8 = vld [vmem:[%s11184_s24] sm:$0xf] }
 0x50f   : > { %3041 = vmatpush.bf16.msra.mxu0 %v6494_v3  ;;  %v6462_v57 = vor.u32 %v7271_v9, %v6461_v8  ;;  %v7321_v8 = vld [vmem:[%s11057_s12 + $0xa0] sm:$0xff] }
 0x510   : > { %v7329_v9 = vld [vmem:[%s11057_s12 + $0xe0] sm:$0xff] }
 0x512   : > { %3060 = vmatpush.bf16.msra.mxu1 %v6498_v44 }
 0x513   : > { %3042 = vmatpush.bf16.msra.mxu0 %v6478_v52  ;;  %v7323_v52 = vld [vmem:[%s11057_s12 + $0xb0] sm:$0xff] }
 0x517   : > { %3043 = vmatpush.bf16.msra.mxu0 %v6462_v57 }
 0x55e   : > { %v2694_v27 = vpop.xlane.xlu2 %2693 }
 0x55f   : > { %v2701_v6 = vmul.f32 %v2694_v27, %v8729_v10  ;;  %v7282_v27 = vld [vmem:[%s11184_s24 + $0x6c] sm:$0xf] }
 0x560   : > { %v6522_v32 = vor.u32 %v7282_v27, %v6519_v28 }
 0x561   : > { %v2705_v16 = vadd.f32 1e-05, %v2701_v6 }
 0x562   : > { %3097 = vmatpush.bf16.msra.mxu3 %v6522_v32 }
 0x563   : > { %7704 = vrsqrt.f32 %v2705_v16  ;;  %vm2715_vm4 = vweird.f32 %v2705_v16 }
 0x566   : > { %v2696_v53 = vpop.xlane.xlu0 %2695  ;;  %3098 = vmatpush.bf16.msra.mxu3 %v6506_v51 }
 0x567   : > { %v2702_v54 = vmul.f32 %v2696_v53, %v8729_v10  ;;  %v6485_v53 = vld [vmem:[%s11184_s24 + $0x28] sm:$0xf] }
 0x569   : > { %v9497_v1 = vpop.eup %7704  ;;  %v9499_v49 = vadd.f32 1e-05, %v2702_v54  ;;  %v7276_v54 = vld [vmem:[%s11184_s24 + $0x34] sm:$0xf0] }
 0x56a   : > { %v2710_v13 = vmul.f32 %v9497_v1, %v2705_v16  ;;  %vm2716_vm3 = vweird.f32 %v9497_v1 }
 0x56b   : > { %7706 = vrsqrt.f32 %v9499_v49  ;;  %vm9560_vm5 = vmor %vm2715_vm4, %vm2716_vm3  ;;  %vm2725_vm8 = vweird.f32 %v9499_v49 }
 0x56c   : > { %v2711_v56 = vmul.f32 %v9497_v1, %v2710_v13 }
 0x56e   : > { %v2712_v60 = vmul.f32 0.5, %v2711_v56  ;;  %v6486_v56 = vor.u32 %v7276_v54, %v6485_v53 }
 0x570   : > { %v2713_v7 = vsub.f32 1.5, %v2712_v60  ;;  %v7273_v60 = vld [vmem:[%s11184_s24 + $0x24] sm:$0xf]  ;;  %3080 = vmatpush.bf16.msra.mxu2 %v6486_v56  ;;  %v7324_v56 = vld [vmem:[%s11057_s12 + $0xb8] sm:$0xff] }
 0x571   : > { %v9534_v31 = vpop.eup %7706  ;;  %v6482_v63 = vor.u32 %v7273_v60, %v6479_v50  ;;  %v7331_v60 = vld [vmem:[%s11057_s12 + $0xf0] sm:$0xff]  ;;  %v7305_v50 = vld [vmem:[%s11057_s12 + $0x20] sm:$0xff] }
 0x572   : > { %v2714_v21 = vmul.f32 %v9497_v1, %v2713_v7  ;;  %v2720_v22 = vmul.f32 %v9534_v31, %v9499_v49  ;;  %vm2726_vm7 = vweird.f32 %v9534_v31  ;;  %v6490_v7 = vor.u32 %v7274_v2, %v6487_v0  ;;  %v7313_v2 = vld [vmem:[%s11057_s12 + $0x60] sm:$0xff]  ;;  %v7322_v0 = vld [vmem:[%s11057_s12 + $0xa8] sm:$0xff] }
 0x573   : > { %vm9606_vm10 = vmor %vm2725_vm8, %vm2726_vm7  ;;  %3061 = vmatpush.bf16.msra.mxu1 %v6482_v63  ;;  %v2799_v63 = vld [vmem:[%s11189_s26] sm:$0xf] }
 0x574   : > { %v2721_v6 = vmul.f32 %v9534_v31, %v2720_v22  ;;  %v2718_v37 = vsel %vm9560_vm5, %v9497_v1, %v2714_v21  ;;  %3099 = vmatpush.bf16.msra.mxu3 %v6490_v7  ;;  %3081 = vmatpush.bf16.msra.mxu2 %v6470_v58  ;;  %v9720_v7 = vperm.slane %v2799_v63, 0  ;;  %v9722_v58 = vperm.slane %v2799_v63, 1 }
 0x575   : > { %v2749_v1 = vmul.f32 %v2718_v37, %v9401_v46 }
 0x576   : > { %v2722_v38 = vmul.f32 0.5, %v2721_v6  ;;  %v2698_v39 = vpop.xlane.xlu1 %2697 }
 0x577   : > { %v2703_v16 = vmul.f32 %v2698_v39, %v8729_v10  ;;  %v2756_v21 = vmul.f32 %v9594_v47, %v2749_v1 }
 0x578   : > { %v2723_v36 = vsub.f32 1.5, %v2722_v38  ;;  %3100 = vmatpush.bf16.msra.mxu3 %v6474_v15  ;;  %3497 = vmatpush.bf16.msrb.mxu2 %v7324_v56  ;;  %v7328_v15 = vld [vmem:[%s11057_s12 + $0xd8] sm:$0xff]  ;;  %v7317_v56 = vld [vmem:[%s11057_s12 + $0x80] sm:$0xff] }
 0x579   : > { %v9610_v49 = vadd.f32 1e-05, %v2703_v16  ;;  %v2763_v35 = vadd.f32 %v7622_v55, %v2756_v21  ;;  %v7320_v21 = vld [vmem:[%s11057_s12 + $0x98] sm:$0xff] }
 0x57a   : > { %v2724_v46 = vmul.f32 %v9534_v31, %v2723_v36 }
 0x57b   : > { %7708 = vrsqrt.f32 %v9610_v49  ;;  %vm2735_vm12 = vweird.f32 %v9610_v49 }
 0x57c   : > { %v2728_v61 = vsel %vm9606_vm10, %v9534_v31, %v2724_v46  ;;  %v6463_v31 = vld [vmem:[%s11184_s24 + $0x10] sm:$0xf0]  ;;  %v7314_v46 = vld [vmem:[%s11057_s12 + $0x68] sm:$0xff]  ;;  %3516 = vmatpush.bf16.msrb.mxu3 %v7332_v25  ;;  %3498 = vmatpush.bf16.msrb.mxu2 %v7323_v52 }
 0x57d   : > { %v2750_v26 = vmul.f32 %v2728_v61, %v9407_v23  ;;  %v6466_v23 = vor.u32 %v7269_v12, %v6463_v31  ;;  %v7312_v61 = vld [vmem:[%s11057_s12 + $0x58] sm:$0xff] }
 0x57e   : > { %v2700_v22 = vpop.xlane.xlu2 %2699 }
 0x57f   : > { %v2704_v27 = vmul.f32 %v2700_v22, %v8729_v10  ;;  %v2757_v28 = vmul.f32 %v9594_v47, %v2750_v26  ;;  %3062 = vmatpush.bf16.msra.mxu1 %v6466_v23 }
 0x580   : > { %3517 = vmatpush.bf16.msrb.mxu3 %v7331_v60  ;;  %3499 = vmatpush.bf16.msrb.mxu2 %v7322_v0  ;;  %v7325_v60 = vld [vmem:[%s11057_s12 + $0xc0] sm:$0xff] }
 0x581   : > { %v7709_v29 = vpop.eup %7708  ;;  %v2708_v32 = vadd.f32 1e-05, %v2704_v27  ;;  %v2764_v6 = vadd.f32 %v7622_v55, %v2757_v28  ;;  %v9752_v27 = vperm.slane %v2799_v63, 3  ;;  %v7302_v28 = vld [vmem:[%s11057_s12 + $0x8] sm:$0xff] }
 0x582   : > { %v2730_v41 = vmul.f32 %v7709_v29, %v9610_v49  ;;  %vm2736_vm11 = vweird.f32 %v7709_v29  ;;  %v7316_v49 = vld [vmem:[%s11057_s12 + $0x78] sm:$0xff] }
 0x583   : > { %7710 = vrsqrt.f32 %v2708_v32  ;;  %v2865_v11 = vpack.c.bf16 %v2764_v6, %v2763_v35  ;;  %vm2737_vm14 = vmor %vm2735_vm12, %vm2736_vm11  ;;  %vm2745_vm9 = vweird.f32 %v2708_v32  ;;  %3478 = vmatpush.bf16.msrb.mxu1 %v7316_v49  ;;  %v7319_v6 = vld [vmem:[%s11057_s12 + $0x90] sm:$0xff] }
 0x584   : > { %v2731_v4 = vmul.f32 %v7709_v29, %v2730_v41  ;;  %3518 = vmatpush.bf16.msrb.mxu3 %v7330_v62  ;;  %3500 = vmatpush.bf16.msrb.mxu2 %v7321_v8  ;;  %v7327_v41 = vld [vmem:[%s11057_s12 + $0xd0] sm:$0xff] }
 0x585   : > { %3044 = vmatmul.bf16.vlgmr.msra.gmra.mxu0 %v2865_v11  ;;  %3063 = vmatmul.bf16.vlgmr.msra.gmra.mxu1 %v2865_v11 }
 0x586   : > { %v2732_v37 = vmul.f32 0.5, %v2731_v4  ;;  %3082 = vmatmul.bf16.vlgmr.msra.gmra.mxu2 %v2865_v11  ;;  %3101 = vmatmul.bf16.vlgmr.msra.gmra.mxu3 %v2865_v11 }
 0x588   : > { %v2733_v38 = vsub.f32 1.5, %v2732_v37  ;;  %3519 = vmatpush.bf16.msrb.mxu3 %v7329_v9  ;;  %3501 = vmatpush.bf16.msrb.mxu2 %v7320_v21 }
 0x589   : > { %v7711_v39 = vpop.eup %7710 }
 0x58a   : > { %v2734_v19 = vmul.f32 %v7709_v29, %v2733_v38  ;;  %v2740_v40 = vmul.f32 %v7711_v39, %v2708_v32  ;;  %vm2746_vm6 = vweird.f32 %v7711_v39 }
 0x58b   : > { %vm2747_vm15 = vmor %vm2745_vm9, %vm2746_vm6 }
 0x58c   : > { %v2741_v14 = vmul.f32 %v7711_v39, %v2740_v40  ;;  %v2738_v16 = vsel %vm2737_vm14, %v7709_v29, %v2734_v19  ;;  %v7310_v29 = vld [vmem:[%s11057_s12 + $0x48] sm:$0xff]  ;;  %3520 = vmatpush.bf16.msrb.mxu3 %v7328_v15  ;;  %3502 = vmatpush.bf16.msrb.mxu2 %v7319_v6  ;;  %vm11194_vm14 = vcmask 261120  }
 0x58d   : > { %v2751_v24 = vmul.f32 %v2738_v16, %v9413_v34  ;;  %v7308_v34 = vld [vmem:[%s11057_s12 + $0x38] sm:$0xff]  ;;  %v7301_v16 = vld [vmem:[%s11057_s12] sm:$0xff]  ;;  %vm11195_vm6 = vmmov %vm11194_vm14 }
 0x58e   : > { %v2742_v3 = vmul.f32 0.5, %v2741_v14  ;;  %3459 = vmatpush.bf16.msrb.mxu0 %v7308_v34  ;;  %vm11196_vm9 = vmmov %vm11195_vm6 }
 0x58f   : > { %v2758_v51 = vmul.f32 %v9594_v47, %v2751_v24 }
 0x590   : > { %v2743_v43 = vsub.f32 1.5, %v2742_v3  ;;  %v7309_v3 = vld [vmem:[%s11057_s12 + $0x40] sm:$0xff]  ;;  %3521 = vmatpush.bf16.msrb.mxu3 %v7327_v41 }
 0x591   : > { %v2765_v54 = vadd.f32 %v7622_v55, %v2758_v51 }
 0x592   : > { %v2744_v45 = vmul.f32 %v7711_v39, %v2743_v43 }
 0x594   : > { %v2748_v36 = vsel %vm2747_vm15, %v7711_v39, %v2744_v45  ;;  %vm11197_vm15 = vmmov %vm11195_vm6 }
 0x595   : > { %v2752_v44 = vmul.f32 %v2748_v36, %v9419_v5  ;;  %v7307_v5 = vld [vmem:[%s11057_s12 + $0x30] sm:$0xff]  ;;  %v7318_v36 = vld [vmem:[%s11057_s12 + $0x88] sm:$0xff] }
 0x596   : > { %3460 = vmatpush.bf16.msrb.mxu0 %v7307_v5  ;;  %3503 = vmatpush.bf16.msrb.mxu2 %v7318_v36 }
 0x597   : > { %v2759_v53 = vmul.f32 %v9594_v47, %v2752_v44  ;;  %v7315_v47 = vld [vmem:[%s11057_s12 + $0x70] sm:$0xff] }
 0x598   : > { %3479 = vmatpush.bf16.msrb.mxu1 %v7315_v47 }
 0x599   : > { %v2766_v1 = vadd.f32 %v7622_v55, %v2759_v53  ;;  %v9750_v55 = vperm.slane %v2799_v63, 2 }
 0x59a   : > { %3461 = vmatpush.bf16.msrb.mxu0 %v7306_v59  ;;  %3504 = vmatpush.bf16.msrb.mxu2 %v7317_v56 }
 0x59b   : > { %v2866_v13 = vpack.c.bf16 %v2766_v1, %v2765_v54  ;;  %v7326_v54 = vld [vmem:[%s11057_s12 + $0xc8] sm:$0xff] }
 0x59c   : > { %3480 = vmatpush.bf16.msrb.mxu1 %v7314_v46  ;;  %3522 = vmatpush.bf16.msrb.mxu3 %v7326_v54 }
 0x59d   : > { %3049 = vmatmul.bf16.gmra.mxu0 %v2866_v13  ;;  %3068 = vmatmul.bf16.gmra.mxu1 %v2866_v13 }
 0x59e   : > { %3087 = vmatmul.bf16.gmra.mxu2 %v2866_v13  ;;  %3106 = vmatmul.bf16.gmra.mxu3 %v2866_v13 }
 0x59f   : > { %3462 = vmatpush.bf16.msrb.mxu0 %v7305_v50 }
 0x5a0   : > { %3481 = vmatpush.bf16.msrb.mxu1 %v7313_v2  ;;  %3523 = vmatpush.bf16.msrb.mxu3 %v7325_v60 }
 0x5a3   : > { %3463 = vmatpush.bf16.msrb.mxu0 %v7304_v17 }
 0x5a4   : > { %3482 = vmatpush.bf16.msrb.mxu1 %v7312_v61 }
 0x5a7   : > { %3464 = vmatpush.bf16.msrb.mxu0 %v7303_v30 }
 0x5a8   : > { %3483 = vmatpush.bf16.msrb.mxu1 %v7311_v20 }
 0x5ab   : > { %3465 = vmatpush.bf16.msrb.mxu0 %v7302_v28 }
 0x5ac   : > { %3484 = vmatpush.bf16.msrb.mxu1 %v7310_v29 }
 0x5af   : > { %3466 = vmatpush.bf16.msrb.mxu0 %v7301_v16 }
 0x5b0   : > { %3485 = vmatpush.bf16.msrb.mxu1 %v7309_v3 }
 0x602   : > { %v3045_v12 = vpop.f32.mrf.mxu0  ;;  %v3064_v26 = vpop.f32.mrf.mxu1 }
 0x603   : > { %v9731_v57 = vadd.f32 %v3045_v12, %v9720_v7  ;;  %v9734_v31 = vadd.f32 %v3064_v26, %v9722_v58 }
 0x605   : > { %v3128_v22 = vmul.f32 0.044715, %v9731_v57  ;;  %v3129_v23 = vmul.f32 0.044715, %v9734_v31 }
 0x607   : > { %v3144_v32 = vmul.f32 %v3128_v22, %v9731_v57  ;;  %v3145_v35 = vmul.f32 %v3129_v23, %v9734_v31 }
 0x609   : > { %v3160_v11 = vmul.f32 %v3144_v32, %v9731_v57  ;;  %v3161_v4 = vmul.f32 %v3145_v35, %v9734_v31  ;;  %v3083_v37 = vpop.f32.mrf.mxu2  ;;  %v3102_v38 = vpop.f32.mrf.mxu3 }
 0x60a   : > { %v9771_v39 = vadd.f32 %v3083_v37, %v9750_v55  ;;  %v9774_v19 = vadd.f32 %v3102_v38, %v9752_v27  ;;  %v3047_v40 = vpop.f32.mrf.mxu0  ;;  %v3066_v14 = vpop.f32.mrf.mxu1 }
 0x60b   : > { %v3176_v43 = vadd.f32 %v3160_v11, %v9731_v57  ;;  %v9784_v24 = vadd.f32 %v3047_v40, %v9720_v7  ;;  %v9787_v45 = vadd.f32 %v3066_v14, %v9722_v58  ;;  %v3177_v44 = vadd.f32 %v3161_v4, %v9734_v31 }
 0x60c   : > { %v3130_v51 = vmul.f32 0.044715, %v9771_v39  ;;  %v3131_v53 = vmul.f32 0.044715, %v9774_v19  ;;  %v3112_v14 = vmul.f32 0.5, %v9731_v57 }
 0x60d   : > { %v3132_v1 = vmul.f32 0.044715, %v9784_v24  ;;  %v3133_v49 = vmul.f32 0.044715, %v9787_v45  ;;  %v3192_v5 = vmul.f32 0.7978846, %v3176_v43 }
 0x60e   : > { %v3146_v13 = vmul.f32 %v3130_v51, %v9771_v39  ;;  %v3147_v34 = vmul.f32 %v3131_v53, %v9774_v19  ;;  %v3193_v25 = vmul.f32 0.7978846, %v3177_v44  ;;  %v3113_v51 = vmul.f32 0.5, %v9734_v31 }
 0x60f   : > { %v3148_v47 = vmul.f32 %v3132_v1, %v9784_v24  ;;  %v3149_v52 = vmul.f32 %v3133_v49, %v9787_v45  ;;  %7712 = vtanh.f32 %v3192_v5  ;;  %v3116_v1 = vmul.f32 0.5, %v9784_v24 }
 0x610   : > { %v3162_v59 = vmul.f32 %v3146_v13, %v9771_v39  ;;  %v3163_v46 = vmul.f32 %v3147_v34, %v9774_v19  ;;  %7714 = vtanh.f32 %v3193_v25  ;;  %v3117_v5 = vmul.f32 0.5, %v9787_v45 }
 0x611   : > { %v3164_v50 = vmul.f32 %v3148_v47, %v9784_v24  ;;  %v3085_v2 = vpop.f32.mrf.mxu2  ;;  %v3104_v63 = vpop.f32.mrf.mxu3  ;;  %v3165_v62 = vmul.f32 %v3149_v52, %v9787_v45 }
 0x612   : > { %v3178_v0 = vadd.f32 %v3162_v59, %v9771_v39  ;;  %v9816_v17 = vadd.f32 %v3085_v2, %v9750_v55  ;;  %v3179_v61 = vadd.f32 %v3163_v46, %v9774_v19  ;;  %v9820_v8 = vadd.f32 %v3104_v63, %v9752_v27 }
 0x613   : > { %v3180_v9 = vadd.f32 %v3164_v50, %v9784_v24  ;;  %v3181_v26 = vadd.f32 %v3165_v62, %v9787_v45  ;;  %v3114_v46 = vmul.f32 0.5, %v9771_v39 }
 0x614   : > { %v3134_v12 = vmul.f32 0.044715, %v9816_v17  ;;  %v3194_v30 = vmul.f32 0.7978846, %v3178_v0  ;;  %v3135_v20 = vmul.f32 0.044715, %v9820_v8 }
 0x615   : > { %v3196_v21 = vmul.f32 0.7978846, %v3180_v9  ;;  %v3197_v23 = vmul.f32 0.7978846, %v3181_v26  ;;  %v3195_v15 = vmul.f32 0.7978846, %v3179_v61  ;;  %v7713_v32 = vpop.eup %7712 }
 0x616   : > { %v3150_v22 = vmul.f32 %v3134_v12, %v9816_v17  ;;  %v3151_v28 = vmul.f32 %v3135_v20, %v9820_v8  ;;  %v7715_v6 = vpop.eup %7714  ;;  %v3224_v16 = vadd.f32 1.0, %v7713_v32 }
 0x617   : > { %7716 = vtanh.f32 %v3196_v21  ;;  %v3225_v53 = vadd.f32 1.0, %v7715_v6 }
 0x618   : > { %v3166_v29 = vmul.f32 %v3150_v22, %v9816_v17  ;;  %7718 = vtanh.f32 %v3197_v23  ;;  %v3167_v35 = vmul.f32 %v3151_v28, %v9820_v8  ;;  %v3240_v25 = vmul.f32 %v3224_v16, %v3112_v14 }
 0x619   : > { %7720 = vtanh.f32 %v3194_v30  ;;  %v3241_v24 = vmul.f32 %v3225_v53, %v3113_v51  ;;  %v3115_v23 = vmul.f32 0.5, %v9774_v19 }
 0x61a   : > { %v3050_v41 = vpop.f32.mrf.mxu0  ;;  %v3069_v11 = vpop.f32.mrf.mxu1  ;;  %v3182_v4 = vadd.f32 %v3166_v29, %v9816_v17  ;;  %v3183_v40 = vadd.f32 %v3167_v35, %v9820_v8  ;;  %7722 = vtanh.f32 %v3195_v15 }
 0x61b   : > { %v9832_v37 = vadd.f32 %v3050_v41, %v9720_v7  ;;  %v9835_v38 = vadd.f32 %v3069_v11, %v9722_v58  ;;  %v3119_v41 = vmul.f32 0.5, %v9820_v8 }
 0x61c   : > { %v3198_v3 = vmul.f32 0.7978846, %v3182_v4  ;;  %v3199_v34 = vmul.f32 0.7978846, %v3183_v40 }
 0x61d   : > { %v7717_v43 = vpop.eup %7716  ;;  %v3136_v36 = vmul.f32 0.044715, %v9832_v37  ;;  %v3137_v44 = vmul.f32 0.044715, %v9835_v38 }
 0x61e   : > { %v7719_v54 = vpop.eup %7718  ;;  %v3228_v13 = vadd.f32 1.0, %v7717_v43  ;;  %7724 = vtanh.f32 %v3198_v3 }
 0x61f   : > { %v7721_v49 = vpop.eup %7720  ;;  %v3229_v57 = vadd.f32 1.0, %v7719_v54  ;;  %v3152_v47 = vmul.f32 %v3136_v36, %v9832_v37  ;;  %v3153_v56 = vmul.f32 %v3137_v44, %v9835_v38  ;;  %7726 = vtanh.f32 %v3199_v34 }
 0x620   : > { %v3244_v59 = vmul.f32 %v3228_v13, %v3116_v1  ;;  %v7723_v31 = vpop.eup %7722  ;;  %v3226_v39 = vadd.f32 1.0, %v7721_v49 }
 0x621   : > { %v3088_v52 = vpop.f32.mrf.mxu2  ;;  %v3107_v60 = vpop.f32.mrf.mxu3  ;;  %v3245_v50 = vmul.f32 %v3229_v57, %v3117_v5  ;;  %v3168_v2 = vmul.f32 %v3152_v47, %v9832_v37  ;;  %v3169_v63 = vmul.f32 %v3153_v56, %v9835_v38  ;;  %v3227_v15 = vadd.f32 1.0, %v7723_v31 }
 0x622   : > { %v9850_v45 = vadd.f32 %v3088_v52, %v9750_v55  ;;  %v9853_v0 = vadd.f32 %v3107_v60, %v9752_v27  ;;  %v3052_v62 = vpop.f32.mrf.mxu0  ;;  %v3071_v61 = vpop.f32.mrf.mxu1  ;;  %v3256_v9 = vpack.c.bf16 %v3244_v59, %v3240_v25  ;;  %v3242_v6 = vmul.f32 %v3226_v39, %v3114_v46 }
 0x623   : > { %v9856_v12 = vadd.f32 %v3052_v62, %v9720_v7  ;;  %v9859_v26 = vadd.f32 %v3071_v61, %v9722_v58  ;;  %v3257_v30 = vpack.c.bf16 %v3245_v50, %v3241_v24  ;;  %v3184_v20 = vadd.f32 %v3168_v2, %v9832_v37 }
 0x624   : > { %v7725_v21 = vpop.eup %7724  ;;  %v3138_v22 = vmul.f32 0.044715, %v9850_v45  ;;  %3467 = vmatmul.bf16.vlgmr.msrb.gmra.mxu0 %v3256_v9  ;;  %v3185_v28 = vadd.f32 %v3169_v63, %v9835_v38  ;;  %v3139_v29 = vmul.f32 0.044715, %v9853_v0  ;;  %v3118_v7 = vmul.f32 0.5, %v9816_v17 }
 0x625   : > { %3486 = vmatmul.bf16.vlgmr.msrb.gmra.mxu1 %v3257_v30  ;;  %v3230_v32 = vadd.f32 1.0, %v7725_v21  ;;  %v3140_v58 = vmul.f32 0.044715, %v9856_v12  ;;  %v7727_v35 = vpop.eup %7726  ;;  %v3141_v11 = vmul.f32 0.044715, %v9859_v26  ;;  %v3243_v3 = vmul.f32 %v3227_v15, %v3115_v23 }
 0x626   : > { %v3154_v4 = vmul.f32 %v3138_v22, %v9850_v45  ;;  %v3231_v40 = vadd.f32 1.0, %v7727_v35  ;;  %v3200_v16 = vmul.f32 0.7978846, %v3184_v20  ;;  %v3201_v17 = vmul.f32 0.7978846, %v3185_v28 }
 0x627   : > { %v3246_v19 = vmul.f32 %v3230_v32, %v3118_v7  ;;  %v3156_v14 = vmul.f32 %v3140_v58, %v9856_v12  ;;  %v3157_v43 = vmul.f32 %v3141_v11, %v9859_v26  ;;  %v3155_v1 = vmul.f32 %v3139_v29, %v9853_v0 }
 0x628   : > { %v3170_v36 = vmul.f32 %v3154_v4, %v9850_v45  ;;  %v3247_v54 = vmul.f32 %v3231_v40, %v3119_v41  ;;  %7728 = vtanh.f32 %v3200_v16  ;;  %v3120_v28 = vmul.f32 0.5, %v9832_v37 }
 0x629   : > { %v3090_v44 = vpop.f32.mrf.mxu2  ;;  %v3109_v51 = vpop.f32.mrf.mxu3  ;;  %v3258_v53 = vpack.c.bf16 %v3246_v19, %v3242_v6  ;;  %v3172_v8 = vmul.f32 %v3156_v14, %v9856_v12  ;;  %v3173_v49 = vmul.f32 %v3157_v43, %v9859_v26  ;;  %v3171_v56 = vmul.f32 %v3155_v1, %v9853_v0 }
 0x62a   : > { %v3091_v13 = vadd.f32 %v3090_v44, %v9750_v55  ;;  %v3110_v34 = vadd.f32 %v3109_v51, %v9752_v27  ;;  %v3186_v5 = vadd.f32 %v3170_v36, %v9850_v45  ;;  %v3259_v57 = vpack.c.bf16 %v3247_v54, %v3243_v3 }
 0x62b   : > { %3505 = vmatmul.bf16.vlgmr.msrb.gmra.mxu2 %v3258_v53  ;;  %v3188_v47 = vadd.f32 %v3172_v8, %v9856_v12  ;;  %v3189_v25 = vadd.f32 %v3173_v49, %v9859_v26  ;;  %7730 = vtanh.f32 %v3201_v17  ;;  %v3187_v27 = vadd.f32 %v3171_v56, %v9853_v0 }
 0x62c   : > { %v3142_v59 = vmul.f32 0.044715, %v3091_v13  ;;  %3524 = vmatmul.bf16.vlgmr.msrb.gmra.mxu3 %v3259_v57  ;;  %v3143_v55 = vmul.f32 0.044715, %v3110_v34  ;;  %v3202_v60 = vmul.f32 0.7978846, %v3186_v5 }
 0x62d   : > { %v3204_v46 = vmul.f32 0.7978846, %v3188_v47  ;;  %v3205_v31 = vmul.f32 0.7978846, %v3189_v25  ;;  %v3203_v50 = vmul.f32 0.7978846, %v3187_v27 }
 0x62e   : > { %v3158_v52 = vmul.f32 %v3142_v59, %v3091_v13  ;;  %v3159_v24 = vmul.f32 %v3143_v55, %v3110_v34  ;;  %v7729_v63 = vpop.eup %7728  ;;  %v3124_v29 = vmul.f32 0.5, %v9856_v12  ;;  %v3121_v32 = vmul.f32 0.5, %v9835_v38  ;;  %v7623_v47 = vld [vmem:[#allocation16] ss:$0 sm:$0xff] }
 0x62f   : > { %7732 = vtanh.f32 %v3204_v46  ;;  %v3232_v30 = vadd.f32 1.0, %v7729_v63  ;;  %v3125_v58 = vmul.f32 0.5, %v9859_v26  ;;  %v3122_v38 = vmul.f32 0.5, %v9850_v45 }
 0x630   : > { %7734 = vtanh.f32 %v3205_v31  ;;  %v3174_v2 = vmul.f32 %v3158_v52, %v3091_v13  ;;  %v3175_v62 = vmul.f32 %v3159_v24, %v3110_v34  ;;  %v3126_v17 = vmul.f32 0.5, %v3091_v13 }
 0x631   : > { %v7731_v61 = vpop.eup %7730  ;;  %7736 = vtanh.f32 %v3202_v60  ;;  %v3248_v41 = vmul.f32 %v3232_v30, %v3120_v28  ;;  %v3123_v36 = vmul.f32 0.5, %v9853_v0  ;;  %v3127_v44 = vmul.f32 0.5, %v3110_v34 }
 0x632   : > { %v3190_v9 = vadd.f32 %v3174_v2, %v3091_v13  ;;  %v3191_v39 = vadd.f32 %v3175_v62, %v3110_v34  ;;  %7738 = vtanh.f32 %v3203_v50  ;;  %v3233_v22 = vadd.f32 1.0, %v7731_v61 }
 0x634   : > { %v3206_v20 = vmul.f32 0.7978846, %v3190_v9  ;;  %v3207_v23 = vmul.f32 0.7978846, %v3191_v39  ;;  %v3249_v19 = vmul.f32 %v3233_v22, %v3121_v32 }
 0x635   : > { %v7733_v21 = vpop.eup %7732 }
 0x636   : > { %v7735_v15 = vpop.eup %7734  ;;  %v3236_v7 = vadd.f32 1.0, %v7733_v21  ;;  %7740 = vtanh.f32 %v3206_v20 }
 0x637   : > { %v3237_v35 = vadd.f32 1.0, %v7735_v15  ;;  %7742 = vtanh.f32 %v3207_v23  ;;  %v7737_v6 = vpop.eup %7736 }
 0x638   : > { %v3252_v11 = vmul.f32 %v3236_v7, %v3124_v29  ;;  %v7739_v4 = vpop.eup %7738  ;;  %v3234_v3 = vadd.f32 1.0, %v7737_v6 }
 0x639   : > { %v3253_v40 = vmul.f32 %v3237_v35, %v3125_v58  ;;  %v3235_v12 = vadd.f32 1.0, %v7739_v4 }
 0x63a   : > { %v3260_v14 = vpack.c.bf16 %v3252_v11, %v3248_v41  ;;  %v3250_v53 = vmul.f32 %v3234_v3, %v3122_v38 }
 0x63b   : > { %v3261_v16 = vpack.c.bf16 %v3253_v40, %v3249_v19  ;;  %v3251_v8 = vmul.f32 %v3235_v12, %v3123_v36 }
 0x63c   : > { %v7741_v37 = vpop.eup %7740  ;;  %3472 = vmatmul.bf16.gmra.mxu0 %v3260_v14 }
 0x63d   : > { %v7743_v43 = vpop.eup %7742  ;;  %3491 = vmatmul.bf16.gmra.mxu1 %v3261_v16  ;;  %v3238_v26 = vadd.f32 1.0, %v7741_v37 }
 0x63e   : > { %v3239_v51 = vadd.f32 1.0, %v7743_v43 }
 0x63f   : > { %v3254_v54 = vmul.f32 %v3238_v26, %v3126_v17 }
 0x640   : > { %v3255_v1 = vmul.f32 %v3239_v51, %v3127_v44  ;;  %v7356_v51 = vld [vmem:[%s11190_s29 + $0xb8] sm:$0xff] }
 0x641   : > { %v3262_v49 = vpack.c.bf16 %v3254_v54, %v3250_v53  ;;  %v7340_v53 = vld [vmem:[%s11190_s29 + $0x38] sm:$0xff]  ;;  %3938 = vmatpush.bf16.msra.mxu2 %v7356_v51 }
 0x642   : > { %v3263_v5 = vpack.c.bf16 %v3255_v1, %v3251_v8  ;;  %v7348_v54 = vld [vmem:[%s11190_s29 + $0x78] sm:$0xff]  ;;  %3804 = vmatpush.bf16.msra.mxu0 %v7340_v53  ;;  %v7355_v1 = vld [vmem:[%s11190_s29 + $0xb0] sm:$0xff]  ;;  %v7333_v53 = vld [vmem:[%s11190_s29] sm:$0xff] }
 0x643   : > { %3510 = vmatmul.bf16.gmra.mxu2 %v3262_v49  ;;  %v7364_v8 = vld [vmem:[%s11190_s29 + $0xf8] sm:$0xff]  ;;  %v7339_v49 = vld [vmem:[%s11190_s29 + $0x30] sm:$0xff]  ;;  %3871 = vmatpush.bf16.msra.mxu1 %v7348_v54 }
 0x644   : > { %3529 = vmatmul.bf16.gmra.mxu3 %v3263_v5 }
 0x645   : > { %4005 = vmatpush.bf16.msra.mxu3 %v7364_v8  ;;  %3939 = vmatpush.bf16.msra.mxu2 %v7355_v1 }
 0x646   : > { %3805 = vmatpush.bf16.msra.mxu0 %v7339_v49 }
 0x6a1   : > { %v3468_v57 = vpop.f32.mrf.mxu0 }
 0x6a2   : > { %v3469_v56 = vadd.f32 %v7623_v47, %v3468_v57  ;;  %v3487_v25 = vpop.f32.mrf.mxu1  ;;  %v7347_v57 = vld [vmem:[%s11190_s29 + $0x70] sm:$0xff] }
 0x6a3   : > { %3872 = vmatpush.bf16.msra.mxu1 %v7347_v57  ;;  %v7357_v57 = vld [vmem:[%s11190_s29 + $0xc0] sm:$0xff] }
 0x6a4   : > { %v3488_v59 = vadd.f32 %v3487_v25, %v3469_v56 }
 0x6a9   : > { %v3470_v45 = vpop.f32.mrf.mxu0 }
 0x6aa   : > { %v3471_v0 = vadd.f32 %v7623_v47, %v3470_v45  ;;  %v3489_v31 = vpop.f32.mrf.mxu1 }
 0x6ac   : > { %v3490_v52 = vadd.f32 %v3489_v31, %v3471_v0  ;;  %v7338_v0 = vld [vmem:[%s11190_s29 + $0x28] sm:$0xff] }
 0x6ad   : > { %v7362_v31 = vld [vmem:[%s11190_s29 + $0xe8] sm:$0xff]  ;;  %3806 = vmatpush.bf16.msra.mxu0 %v7338_v0 }
 0x6ae   : > { %v3506_v13 = vpop.f32.mrf.mxu2 }
 0x6af   : > { %v3507_v46 = vadd.f32 %v3506_v13, %v3488_v59  ;;  %v3525_v55 = vpop.f32.mrf.mxu3 }
 0x6b1   : > { %v3526_v34 = vadd.f32 %v3525_v55, %v3507_v46  ;;  %v7354_v55 = vld [vmem:[%s11190_s29 + $0xa8] sm:$0xff] }
 0x6b2   : > { %3940 = vmatpush.bf16.msra.mxu2 %v7354_v55 }
 0x6b3   : > { %v9891_v27 = vadd.f32 %v3526_v34, %v9384_v33  ;;  %v7346_v34 = vld [vmem:[%s11190_s29 + $0x68] sm:$0xff] }
 0x6b4   : > { %3873 = vmatpush.bf16.msra.mxu1 %v7346_v34 }
 0x6b5   : > { %3541 = vadd.xlane.f32.xlu0 %v9891_v27 }
 0x6b6   : > { %v3508_v60 = vpop.f32.mrf.mxu2 }
 0x6b7   : > { %v3509_v24 = vadd.f32 %v3508_v60, %v3490_v52  ;;  %v3527_v50 = vpop.f32.mrf.mxu3  ;;  %v7353_v60 = vld [vmem:[%s11190_s29 + $0xa0] sm:$0xff] }
 0x6b8   : > { %3941 = vmatpush.bf16.msra.mxu2 %v7353_v60 }
 0x6b9   : > { %v3528_v2 = vadd.f32 %v3527_v50, %v3509_v24  ;;  %v3473_v62 = vpop.f32.mrf.mxu0  ;;  %v7337_v24 = vld [vmem:[%s11190_s29 + $0x20] sm:$0xff] }
 0x6ba   : > { %v3474_v61 = vadd.f32 %v7623_v47, %v3473_v62  ;;  %v3492_v9 = vpop.f32.mrf.mxu1  ;;  %v7361_v62 = vld [vmem:[%s11190_s29 + $0xe0] sm:$0xff]  ;;  %3807 = vmatpush.bf16.msra.mxu0 %v7337_v24 }
 0x6bb   : > { %v9895_v63 = vadd.f32 %v3528_v2, %v9388_v18  ;;  %v7345_v2 = vld [vmem:[%s11190_s29 + $0x60] sm:$0xff] }
 0x6bc   : > { %v3493_v39 = vadd.f32 %v3492_v9, %v3474_v61  ;;  %3874 = vmatpush.bf16.msra.mxu1 %v7345_v2 }
 0x6bd   : > { %3543 = vadd.xlane.f32.xlu1 %v9895_v63 }
 0x6c1   : > { %v3475_v30 = vpop.f32.mrf.mxu0 }
 0x6c2   : > { %v3476_v22 = vadd.f32 %v7623_v47, %v3475_v30  ;;  %v3494_v28 = vpop.f32.mrf.mxu1  ;;  %v7363_v47 = vld [vmem:[%s11190_s29 + $0xf0] sm:$0xff] }
 0x6c3   : > { %4006 = vmatpush.bf16.msra.mxu3 %v7363_v47 }
 0x6c4   : > { %v3495_v29 = vadd.f32 %v3494_v28, %v3476_v22  ;;  %v7336_v28 = vld [vmem:[%s11190_s29 + $0x18] sm:$0xff] }
 0x6c5   : > { %3808 = vmatpush.bf16.msra.mxu0 %v7336_v28 }
 0x6c6   : > { %v3511_v33 = vpop.f32.mrf.mxu2 }
 0x6c7   : > { %v3512_v20 = vadd.f32 %v3511_v33, %v3493_v39  ;;  %v3530_v21 = vpop.f32.mrf.mxu3  ;;  %4007 = vmatpush.bf16.msra.mxu3 %v7362_v31  ;;  %v9983_v33 = vld [vmem:[%s11191_s28] ss:$0 sm:$0xff]  ;;  %s11192_s28 = sld [smem:[#allocation54_spill]] }
 0x6c9   : > { %v3531_v23 = vadd.f32 %v3530_v21, %v3512_v20 }
 0x6cb   : > { %v9899_v15 = vadd.f32 %v3531_v23, %v9392_v48  ;;  %4008 = vmatpush.bf16.msra.mxu3 %v7361_v62  ;;  %v7352_v23 = vld [vmem:[%s11190_s29 + $0x98] sm:$0xff] }
 0x6cc   : > { %3942 = vmatpush.bf16.msra.mxu2 %v7352_v23 }
 0x6cd   : > { %3545 = vadd.xlane.f32.xlu2 %v9899_v15 }
 0x6ce   : > { %v3513_v18 = vpop.f32.mrf.mxu2 }
 0x6cf   : > { %v3514_v7 = vadd.f32 %v3513_v18, %v3495_v29  ;;  %v3532_v32 = vpop.f32.mrf.mxu3  ;;  %v7344_v29 = vld [vmem:[%s11190_s29 + $0x58] sm:$0xff] }
 0x6d0   : > { %3875 = vmatpush.bf16.msra.mxu1 %v7344_v29 }
 0x6d1   : > { %v3533_v58 = vadd.f32 %v3532_v32, %v3514_v7  ;;  %v7360_v7 = vld [vmem:[%s11190_s29 + $0xd8] sm:$0xff] }
 0x6d2   : > { %4009 = vmatpush.bf16.msra.mxu3 %v7360_v7 }
 0x6d3   : > { %v9903_v35 = vadd.f32 %v3533_v58, %v9396_v42  ;;  %v7351_v58 = vld [vmem:[%s11190_s29 + $0x90] sm:$0xff] }
 0x6d4   : > { %3943 = vmatpush.bf16.msra.mxu2 %v7351_v58  ;;  %v7369_v58 = vld [vmem:[%s10046_s3 + $0x20] sm:$0xff] }
 0x6d5   : > { %3547 = vadd.xlane.f32.xlu0 %v9903_v35 }
 0x728   : > { %v3542_v6 = vpop.xlane.xlu0 %3541 }
 0x729   : > { %v3549_v41 = vmul.f32 %v3542_v6, %v8729_v10  ;;  %v7335_v6 = vld [vmem:[%s11190_s29 + $0x10] sm:$0xff] }
 0x72a   : > { %3809 = vmatpush.bf16.msra.mxu0 %v7335_v6  ;;  %v7367_v6 = vld [vmem:[%s10046_s3 + $0x10] sm:$0xff] }
 0x72b   : > { %v9908_v11 = vsub.f32 %v9891_v27, %v3549_v41  ;;  %v10008_v41 = vld [vmem:[%s11192_s28] ss:$0 sm:$0xff]  ;;  %s11261_s28 = sld [smem:[#allocation55_spill]] }
 0x72d   : > { %v3557_v48 = vmul.f32 %v9908_v11, %v9908_v11 }
 0x72f   : > { %3561 = vadd.xlane.f32.xlu1 %v3557_v48 }
 0x730   : > { %v3544_v4 = vpop.xlane.xlu1 %3543 }
 0x731   : > { %v3550_v19 = vmul.f32 %v3544_v4, %v8729_v10  ;;  %v7343_v4 = vld [vmem:[%s11190_s29 + $0x50] sm:$0xff] }
 0x732   : > { %3876 = vmatpush.bf16.msra.mxu1 %v7343_v4 }
 0x733   : > { %v9914_v40 = vsub.f32 %v9895_v63, %v3550_v19  ;;  %v7359_v19 = vld [vmem:[%s11190_s29 + $0xd0] sm:$0xff] }
 0x734   : > { %4010 = vmatpush.bf16.msra.mxu3 %v7359_v19 }
 0x735   : > { %v3558_v42 = vmul.f32 %v9914_v40, %v9914_v40 }
 0x737   : > { %3563 = vadd.xlane.f32.xlu2 %v3558_v42 }
 0x740   : > { %v3546_v14 = vpop.xlane.xlu2 %3545 }
 0x741   : > { %v3551_v16 = vmul.f32 %v3546_v14, %v8729_v10 }
 0x743   : > { %v9920_v3 = vsub.f32 %v9899_v15, %v3551_v16  ;;  %v7350_v16 = vld [vmem:[%s11190_s29 + $0x88] sm:$0xff] }
 0x744   : > { %3944 = vmatpush.bf16.msra.mxu2 %v7350_v16 }
 0x745   : > { %v3559_v37 = vmul.f32 %v9920_v3, %v9920_v3 }
 0x747   : > { %3565 = vadd.xlane.f32.xlu0 %v3559_v37  ;;  %v7334_v37 = vld [vmem:[%s11190_s29 + $0x8] sm:$0xff] }
 0x748   : > { %v3548_v12 = vpop.xlane.xlu0 %3547  ;;  %3810 = vmatpush.bf16.msra.mxu0 %v7334_v37 }
 0x749   : > { %v3552_v43 = vmul.f32 %v3548_v12, %v8729_v10 }
 0x74b   : > { %v9926_v38 = vsub.f32 %v9903_v35, %v3552_v43 }
 0x74c   : > { %3811 = vmatpush.bf16.msra.mxu0 %v7333_v53 }
 0x74d   : > { %v3560_v17 = vmul.f32 %v9926_v38, %v9926_v38 }
 0x74f   : > { %3567 = vadd.xlane.f32.xlu1 %v3560_v17  ;;  %v7342_v17 = vld [vmem:[%s11190_s29 + $0x48] sm:$0xff] }
 0x750   : > { %3877 = vmatpush.bf16.msra.mxu1 %v7342_v17 }
 0x7a2   : > { %v3562_v26 = vpop.xlane.xlu1 %3561 }
 0x7a3   : > { %v3569_v36 = vmul.f32 %v3562_v26, %v8729_v10  ;;  %v7358_v26 = vld [vmem:[%s11190_s29 + $0xc8] sm:$0xff] }
 0x7a4   : > { %4011 = vmatpush.bf16.msra.mxu3 %v7358_v26 }
 0x7a5   : > { %v3573_v44 = vadd.f32 1e-05, %v3569_v36 }
 0x7a7   : > { %7744 = vrsqrt.f32 %v3573_v44  ;;  %vm3583_vm1 = vweird.f32 %v3573_v44 }
 0x7a8   : > { %4012 = vmatpush.bf16.msra.mxu3 %v7357_v57 }
 0x7aa   : > { %v3564_v5 = vpop.xlane.xlu2 %3563 }
 0x7ab   : > { %v3570_v56 = vmul.f32 %v3564_v5, %v8729_v10  ;;  %v7341_v5 = vld [vmem:[%s11190_s29 + $0x40] sm:$0xff] }
 0x7ac   : > { %3878 = vmatpush.bf16.msra.mxu1 %v7341_v5 }
 0x7ad   : > { %v7745_v25 = vpop.eup %7744  ;;  %v3574_v59 = vadd.f32 1e-05, %v3570_v56  ;;  %v7370_v56 = vld [vmem:[%s10046_s3 + $0x28] sm:$0xff] }
 0x7ae   : > { %v3578_v45 = vmul.f32 %v7745_v25, %v3573_v44  ;;  %vm3584_vm0 = vweird.f32 %v7745_v25 }
 0x7af   : > { %7746 = vrsqrt.f32 %v3574_v59  ;;  %vm3585_vm13 = vmor %vm3583_vm1, %vm3584_vm0  ;;  %vm3593_vm3 = vweird.f32 %v3574_v59 }
 0x7b0   : > { %v3579_v13 = vmul.f32 %v7745_v25, %v3578_v45  ;;  %vm11198_vm0 = vmmov %vm11195_vm6 }
 0x7b1   : > { %vm11199_vm1 = vmmov %vm11198_vm0 }
 0x7b2   : > { %v3580_v46 = vmul.f32 0.5, %v3579_v13 }
 0x7b4   : > { %v3581_v52 = vsub.f32 1.5, %v3580_v46 }
 0x7b5   : > { %v7747_v50 = vpop.eup %7746 }
 0x7b6   : > { %v3582_v61 = vmul.f32 %v7745_v25, %v3581_v52  ;;  %v3588_v9 = vmul.f32 %v7747_v50, %v3574_v59  ;;  %vm3594_vm2 = vweird.f32 %v7747_v50 }
 0x7b7   : > { %vm3595_vm4 = vmor %vm3593_vm3, %vm3594_vm2  ;;  %vm4228_vm3 = vcmask 130048  }
 0x7b8   : > { %v3586_v39 = vsel %vm3585_vm13, %v7745_v25, %v3582_v61  ;;  %v3589_v30 = vmul.f32 %v7747_v50, %v3588_v9  ;;  %v7372_v25 = vld [vmem:[%s10046_s3 + $0x38] sm:$0xff]  ;;  %vm11200_vm13 = vmmov %vm11198_vm0 }
 0x7b9   : > { %v3617_v20 = vmul.f32 %v3586_v39, %v9908_v11  ;;  %4215 = vmatpush.bf16.msrb.mxu3 %v7372_v25  ;;  %vm11201_vm2 = vmmov %vm11198_vm0 }
 0x7ba   : > { %v3590_v21 = vmul.f32 0.5, %v3589_v30  ;;  %v3566_v22 = vpop.xlane.xlu0 %3565 }
 0x7bb   : > { %v3571_v18 = vmul.f32 %v3566_v22, %v8729_v10  ;;  %v3624_v11 = vmul.f32 %v9983_v33, %v3617_v20 }
 0x7bc   : > { %v3591_v32 = vsub.f32 1.5, %v3590_v21 }
 0x7bd   : > { %v10011_v48 = vadd.f32 1e-05, %v3571_v18  ;;  %v3631_v12 = vadd.f32 %v10008_v41, %v3624_v11 }
 0x7be   : > { %v3592_v42 = vmul.f32 %v7747_v50, %v3591_v32  ;;  %v7366_v32 = vld [vmem:[%s10046_s3 + $0x8] sm:$0xff] }
 0x7bf   : > { %7748 = vrsqrt.f32 %v10011_v48  ;;  %v3740_v8 = vpack.c.bf16 %v3631_v12, %v3631_v12  ;;  %vm3603_vm7 = vweird.f32 %v10011_v48  ;;  %4074 = vmatpush.bf16.msrb.mxu0 %v7366_v32 }
 0x7c0   : > { %v3596_v14 = vsel %vm3595_vm4, %v7747_v50, %v3592_v42 }
 0x7c1   : > { %v3618_v43 = vmul.f32 %v3596_v14, %v9914_v40  ;;  %v7349_v40 = vld [vmem:[%s11190_s29 + $0x80] sm:$0xff]  ;;  %v3748_v13 = vunpack.c.l.b16 %v3740_v8 }
 0x7c2   : > { %v3568_v36 = vpop.xlane.xlu1 %3567  ;;  %3945 = vmatpush.bf16.msra.mxu2 %v7349_v40 }
 0x7c3   : > { %v3625_v44 = vmul.f32 %v9983_v33, %v3618_v43  ;;  %v3572_v51 = vmul.f32 %v3568_v36, %v8729_v10 }
 0x7c5   : > { %v7749_v54 = vpop.eup %7748  ;;  %v3632_v1 = vadd.f32 %v10008_v41, %v3625_v44  ;;  %v3576_v49 = vadd.f32 1e-05, %v3572_v51 }
 0x7c6   : > { %v3598_v47 = vmul.f32 %v7749_v54, %v10011_v48  ;;  %4168 = vmatpush.bf16.msrb.mxu2 %v7370_v56  ;;  %vm3604_vm5 = vweird.f32 %v7749_v54 }
 0x7c7   : > { %v3741_v59 = vpack.c.bf16 %v3632_v1, %v3632_v1  ;;  %7750 = vrsqrt.f32 %v3576_v49  ;;  %vm3605_vm8 = vmor %vm3603_vm7, %vm3604_vm5  ;;  %vm3613_vm11 = vweird.f32 %v3576_v49 }
 0x7c8   : > { %v3599_v45 = vmul.f32 %v7749_v54, %v3598_v47 }
 0x7c9   : > { %v3749_v46 = vunpack.c.l.b16 %v3741_v59 }
 0x7ca   : > { %v3600_v55 = vmul.f32 0.5, %v3599_v45  ;;  %4169 = vmatpush.bf16.msrb.mxu2 %v7369_v58 }
 0x7cb   : > { %v3752_v0 = vpack.c.b16 %v3749_v46, %v3748_v13 }
 0x7cc   : > { %v3601_v34 = vsub.f32 1.5, %v3600_v55 }
 0x7cd   : > { %v7751_v31 = vpop.eup %7750  ;;  %3812 = vmatmul.bf16.vlgmr.msra.gmra.mxu0 %v3752_v0  ;;  %3879 = vmatmul.bf16.vlgmr.msra.gmra.mxu1 %v3752_v0 }
 0x7ce   : > { %v3602_v52 = vmul.f32 %v7749_v54, %v3601_v34  ;;  %v3608_v60 = vmul.f32 %v7751_v31, %v3576_v49  ;;  %3946 = vmatmul.bf16.vlgmr.msra.gmra.mxu2 %v3752_v0  ;;  %4013 = vmatmul.bf16.vlgmr.msra.gmra.mxu3 %v3752_v0  ;;  %vm3614_vm10 = vweird.f32 %v7751_v31 }
 0x7cf   : > { %vm3615_vm12 = vmor %vm3613_vm11, %vm3614_vm10 }
 0x7d0   : > { %v3606_v24 = vsel %vm3605_vm8, %v7749_v54, %v3602_v52  ;;  %v3609_v50 = vmul.f32 %v7751_v31, %v3608_v60 }
 0x7d1   : > { %v3619_v2 = vmul.f32 %v3606_v24, %v9920_v3 }
 0x7d2   : > { %v3610_v62 = vmul.f32 0.5, %v3609_v50 }
 0x7d3   : > { %v3626_v9 = vmul.f32 %v9983_v33, %v3619_v2 }
 0x7d4   : > { %v3611_v61 = vsub.f32 1.5, %v3610_v62 }
 0x7d5   : > { %v3633_v21 = vadd.f32 %v10008_v41, %v3626_v9 }
 0x7d6   : > { %v3612_v39 = vmul.f32 %v7751_v31, %v3611_v61 }
 0x7d7   : > { %v3742_v23 = vpack.c.bf16 %v3633_v21, %v3633_v21 }
 0x7d8   : > { %v3616_v30 = vsel %vm3615_vm12, %v7751_v31, %v3612_v39 }
 0x7d9   : > { %v3620_v20 = vmul.f32 %v3616_v30, %v9926_v38  ;;  %v3750_v29 = vunpack.c.l.b16 %v3742_v23  ;;  %v7368_v38 = vld [vmem:[%s10046_s3 + $0x18] sm:$0xff] }
 0x7da   : > { %4121 = vmatpush.bf16.msrb.mxu1 %v7368_v38 }
 0x7db   : > { %v3627_v22 = vmul.f32 %v9983_v33, %v3620_v20  ;;  %v7365_v33 = vld [vmem:[%s10046_s3] sm:$0xff] }
 0x7dc   : > { %4075 = vmatpush.bf16.msrb.mxu0 %v7365_v33 }
 0x7dd   : > { %v3634_v3 = vadd.f32 %v10008_v41, %v3627_v22  ;;  %v7371_v41 = vld [vmem:[%s10046_s3 + $0x30] sm:$0xff]  ;;  %s11265_s3 = sld [smem:[#allocation58_spill]] }
 0x7de   : > { %4122 = vmatpush.bf16.msrb.mxu1 %v7367_v6  ;;  %4216 = vmatpush.bf16.msrb.mxu3 %v7371_v41 }
 0x7df   : > { %v3743_v28 = vpack.c.bf16 %v3634_v3, %v3634_v3 }
 0x7e1   : > { %v3751_v18 = vunpack.c.l.b16 %v3743_v28 }
 0x7e3   : > { %v3753_v7 = vpack.c.b16 %v3751_v18, %v3750_v29 }
 0x7e5   : > { %3817 = vmatmul.bf16.gmra.mxu0 %v3753_v7  ;;  %3884 = vmatmul.bf16.gmra.mxu1 %v3753_v7 }
 0x7e6   : > { %3951 = vmatmul.bf16.gmra.mxu2 %v3753_v7  ;;  %4018 = vmatmul.bf16.gmra.mxu3 %v3753_v7 }
 0x84a   : > { %v3813_v11 = vpop.f32.mrf.mxu0  ;;  %v3880_v48 = vpop.f32.mrf.mxu1 }
 0x84b   : > { %v4024_v4 = vpack.c.bf16 %v3813_v11, %v3813_v11  ;;  %v4028_v19 = vpack.c.bf16 %v3880_v48, %v3880_v48 }
 0x84d   : > { %v4044_v17 = vunpack.c.l.b16 %v4024_v4  ;;  %v4091_v26 = vunpack.c.l.b16 %v4028_v19 }
 0x851   : > { %v3947_v42 = vpop.f32.mrf.mxu2  ;;  %v4014_v14 = vpop.f32.mrf.mxu3 }
 0x852   : > { %v3815_v16 = vpop.f32.mrf.mxu0  ;;  %v3882_v37 = vpop.f32.mrf.mxu1  ;;  %v4032_v53 = vpack.c.bf16 %v3947_v42, %v3947_v42  ;;  %v4036_v54 = vpack.c.bf16 %v4014_v14, %v4014_v14 }
 0x853   : > { %v4025_v12 = vpack.c.bf16 %v3815_v16, %v3815_v16  ;;  %v4029_v43 = vpack.c.bf16 %v3882_v37, %v3882_v37 }
 0x854   : > { %v4138_v57 = vunpack.c.l.b16 %v4032_v53  ;;  %v4185_v47 = vunpack.c.l.b16 %v4036_v54 }
 0x855   : > { %v4045_v36 = vunpack.c.l.b16 %v4025_v12  ;;  %v4092_v44 = vunpack.c.l.b16 %v4029_v43 }
 0x857   : > { %v4048_v51 = vpack.c.b16 %v4045_v36, %v4044_v17  ;;  %v4095_v40 = vpack.c.b16 %v4092_v44, %v4091_v26 }
 0x859   : > { %v3949_v8 = vpop.f32.mrf.mxu2  ;;  %v4016_v1 = vpop.f32.mrf.mxu3  ;;  %6851 = vmatmul.msk.bf16.vlgmr.msrb.gmra.mxu0 %vm11194_vm14, %v4048_v51  ;;  %6861 = vmatmul.msk.bf16.vlgmr.msrb.gmra.mxu1 %vm11195_vm6, %v4095_v40 }
 0x85a   : > { %v4033_v49 = vpack.c.bf16 %v3949_v8, %v3949_v8  ;;  %v4037_v5 = vpack.c.bf16 %v4016_v1, %v4016_v1 }
 0x85c   : > { %v4139_v56 = vunpack.c.l.b16 %v4033_v49  ;;  %v4186_v25 = vunpack.c.l.b16 %v4037_v5 }
 0x85e   : > { %v4142_v59 = vpack.c.b16 %v4139_v56, %v4138_v57  ;;  %v4189_v45 = vpack.c.b16 %v4186_v25, %v4185_v47 }
 0x860   : > { %6871 = vmatmul.msk.bf16.vlgmr.msrb.gmra.mxu2 %vm11196_vm9, %v4142_v59  ;;  %6881 = vmatmul.msk.bf16.vlgmr.msrb.gmra.mxu3 %vm11197_vm15, %v4189_v45 }
 0x862   : > { %v3818_v13 = vpop.f32.mrf.mxu0  ;;  %v3885_v46 = vpop.f32.mrf.mxu1 }
 0x863   : > { %v4026_v55 = vpack.c.bf16 %v3818_v13, %v3818_v13  ;;  %v4030_v0 = vpack.c.bf16 %v3885_v46, %v3885_v46  ;;  %v7375_v46 = vld [vmem:[%s8701_s1 + $0x10] sm:$0xff] }
 0x864   : > { %4500 = vmatpush.bf16.msra.mxu2 %v7375_v46 }
 0x865   : > { %v4046_v2 = vunpack.c.l.b16 %v4026_v55  ;;  %v4093_v62 = vunpack.c.l.b16 %v4030_v0  ;;  %v7376_v55 = vld [vmem:[%s8701_s1 + $0x18] sm:$0xff]  ;;  %v7373_v0 = vld [vmem:[%s8701_s1] sm:$0xff] }
 0x866   : > { %4541 = vmatpush.bf16.msra.mxu3 %v7376_v55  ;;  %4418 = vmatpush.bf16.msra.mxu0 %v7373_v0 }
 0x869   : > { %v3952_v34 = vpop.f32.mrf.mxu2  ;;  %v4019_v31 = vpop.f32.mrf.mxu3 }
 0x86a   : > { %v3820_v52 = vpop.f32.mrf.mxu0  ;;  %v3887_v60 = vpop.f32.mrf.mxu1  ;;  %v4034_v20 = vpack.c.bf16 %v3952_v34, %v3952_v34  ;;  %v4038_v21 = vpack.c.bf16 %v4019_v31, %v4019_v31  ;;  %v7374_v34 = vld [vmem:[%s8701_s1 + $0x8] sm:$0xff] }
 0x86b   : > { %v4027_v24 = vpack.c.bf16 %v3820_v52, %v3820_v52  ;;  %v4031_v50 = vpack.c.bf16 %v3887_v60, %v3887_v60  ;;  %4459 = vmatpush.bf16.msra.mxu1 %v7374_v34 }
 0x86c   : > { %v4140_v29 = vunpack.c.l.b16 %v4034_v20  ;;  %v4187_v18 = vunpack.c.l.b16 %v4038_v21 }
 0x86d   : > { %v4047_v61 = vunpack.c.l.b16 %v4027_v24  ;;  %v4094_v9 = vunpack.c.l.b16 %v4031_v50 }
 0x86f   : > { %v4049_v39 = vpack.c.b16 %v4047_v61, %v4046_v2  ;;  %v4096_v30 = vpack.c.b16 %v4094_v9, %v4093_v62 }
 0x871   : > { %v3954_v22 = vpop.f32.mrf.mxu2  ;;  %v4021_v3 = vpop.f32.mrf.mxu3  ;;  %6852 = vmatmul.msk.bf16.gmra.mxu0 %vm11198_vm0, %v4049_v39  ;;  %6862 = vmatmul.msk.bf16.gmra.mxu1 %vm11199_vm1, %v4096_v30 }
 0x872   : > { %v4035_v23 = vpack.c.bf16 %v3954_v22, %v3954_v22  ;;  %v4039_v28 = vpack.c.bf16 %v4021_v3, %v4021_v3 }
 0x874   : > { %v4141_v7 = vunpack.c.l.b16 %v4035_v23  ;;  %v4188_v32 = vunpack.c.l.b16 %v4039_v28 }
 0x876   : > { %v4143_v38 = vpack.c.b16 %v4141_v7, %v4140_v29  ;;  %v4190_v58 = vpack.c.b16 %v4188_v32, %v4187_v18 }
 0x878   : > { %6872 = vmatmul.msk.bf16.gmra.mxu2 %vm11200_vm13, %v4143_v38  ;;  %6882 = vmatmul.msk.bf16.gmra.mxu3 %vm11201_vm2, %v4190_v58 }
 0x8d6   : > { %v10079_v33 = vpop.f32.mrf.mxu0  ;;  %v4124_v4 = vpop.f32.mrf.mxu1 }
 0x8d7   : > { %v4241_v16 = vsel %vm4228_vm3, %v4124_v4, -inf  ;;  %v4229_v17 = vsel %vm4228_vm3, %v10079_v33, -inf }
 0x8de   : > { %v4079_v19 = vpop.f32.mrf.mxu0  ;;  %v10095_v26 = vpop.f32.mrf.mxu1 }
 0x8df   : > { %v4232_v37 = vsel %vm4228_vm3, %v4079_v19, -inf  ;;  %v4244_v40 = vsel %vm4228_vm3, %v10095_v26, -inf }
 0x8e3   : > { %v4171_v6 = vpop.f32.mrf.mxu2  ;;  %v10081_v41 = vpop.f32.mrf.mxu3 }
 0x8e4   : > { %v4265_v11 = vsel %vm4228_vm3, %v10081_v41, -inf  ;;  %v4253_v48 = vsel %vm4228_vm3, %v4171_v6, -inf }
 0x8e5   : > { %4266 = vmax.xlane.f32.xlu1 %v4265_v11  ;;  %4254 = vmax.xlane.f32.xlu2 %v4253_v48 }
 0x8eb   : > { %v4173_v42 = vpop.f32.mrf.mxu2  ;;  %v10089_v12 = vpop.f32.mrf.mxu3 }
 0x8ec   : > { %v4256_v14 = vsel %vm4228_vm3, %v4173_v42, -inf  ;;  %v4268_v43 = vsel %vm4228_vm3, %v10089_v12, -inf }
 0x8ed   : > { %4257 = vmax.xlane.f32.xlu0 %v4256_v14  ;;  %4242 = vmax.xlane.f32.xlu2 %v4241_v16 }
 0x8ee   : > { %4233 = vmax.xlane.f32.xlu1 %v4232_v37  ;;  %v10105_v53 = vpop.f32.mrf.mxu0  ;;  %v10117_v57 = vpop.f32.mrf.mxu1 }
 0x8ef   : > { %v4247_v56 = vsel %vm4228_vm3, %v10117_v57, -inf  ;;  %v4235_v25 = vsel %vm4228_vm3, %v10105_v53, -inf }
 0x8f5   : > { %4269 = vmax.xlane.f32.xlu2 %v4268_v43  ;;  %4230 = vmax.xlane.f32.xlu0 %v4229_v17 }
 0x8f6   : > { %v10119_v47 = vpop.f32.mrf.mxu0  ;;  %v10127_v45 = vpop.f32.mrf.mxu1 }
 0x8f7   : > { %v4238_v59 = vsel %vm4228_vm3, %v10119_v47, -inf  ;;  %v4250_v13 = vsel %vm4228_vm3, %v10127_v45, -inf }
 0x8fb   : > { %v10097_v36 = vpop.f32.mrf.mxu2  ;;  %v10099_v44 = vpop.f32.mrf.mxu3 }
 0x8fc   : > { %v4259_v51 = vsel %vm4228_vm3, %v10097_v36, -inf  ;;  %v4271_v5 = vsel %vm4228_vm3, %v10099_v44, -inf }
 0x8fd   : > { %4260 = vmax.xlane.f32.xlu1 %v4259_v51  ;;  %4245 = vmax.xlane.f32.xlu0 %v4244_v40 }
 0x903   : > { %v10107_v54 = vpop.f32.mrf.mxu2  ;;  %v10109_v8 = vpop.f32.mrf.mxu3 }
 0x904   : > { %v4262_v1 = vsel %vm4228_vm3, %v10107_v54, -inf  ;;  %v4274_v49 = vsel %vm4228_vm3, %v10109_v8, -inf }
 0x905   : > { %4263 = vmax.xlane.f32.xlu2 %v4262_v1  ;;  %4275 = vmax.xlane.f32.xlu1 %v4274_v49 }
 0x906   : > { %4272 = vmax.xlane.f32.xlu0 %v4271_v5 }
 0x90d   : > { %4248 = vmax.xlane.f32.xlu1 %v4247_v56  ;;  %4236 = vmax.xlane.f32.xlu2 %v4235_v25 }
 0x90e   : > { %4239 = vmax.xlane.f32.xlu0 %v4238_v59 }
 0x915   : > { %4251 = vmax.xlane.f32.xlu2 %v4250_v13 }
 0x958   : > { %v4267_v31 = vpop.xlane.xlu1 %4266  ;;  %v4255_v52 = vpop.xlane.xlu2 %4254 }
 0x959   : > { %v4285_v60 = vsub.f32 %v4171_v6, %v4255_v52  ;;  %v4289_v62 = vsub.f32 %v10081_v41, %v4267_v31 }
 0x95b   : > { %v4309_v24 = vmul.f32 1.442695, %v4285_v60  ;;  %v4317_v3 = vmul.f32 1.442695, %v4289_v62 }
 0x95d   : > { %7752 = vpow2.f32 %v4309_v24 }
 0x960   : > { %v4258_v50 = vpop.xlane.xlu0 %4257  ;;  %v4243_v2 = vpop.xlane.xlu2 %4242 }
 0x961   : > { %v4286_v61 = vsub.f32 %v4173_v42, %v4258_v50  ;;  %v4281_v9 = vsub.f32 %v4124_v4, %v4243_v2  ;;  %v4234_v39 = vpop.xlane.xlu1 %4233 }
 0x962   : > { %v4278_v30 = vsub.f32 %v4079_v19, %v4234_v39 }
 0x963   : > { %v4311_v20 = vmul.f32 1.442695, %v4286_v61  ;;  %v4301_v21 = vmul.f32 1.442695, %v4281_v9  ;;  %v7753_v23 = vpop.eup %7752 }
 0x964   : > { %v4295_v22 = vmul.f32 1.442695, %v4278_v30  ;;  %v4381_v32 = vpack.c.bf16 %v7753_v23, %v7753_v23  ;;  %v4349_v46 = vsel %vm4228_vm3, %v7753_v23, 0.0 }
 0x965   : > { %7754 = vpow2.f32 %v4311_v20 }
 0x966   : > { %7756 = vpow2.f32 %v4301_v21  ;;  %v4475_v19 = vunpack.c.l.b16 %v4381_v32 }
 0x967   : > { %7758 = vpow2.f32 %v4295_v22 }
 0x968   : > { %v4270_v28 = vpop.xlane.xlu2 %4269  ;;  %v4231_v29 = vpop.xlane.xlu0 %4230  ;;  %7760 = vpow2.f32 %v4317_v3 }
 0x969   : > { %v4290_v18 = vsub.f32 %v10089_v12, %v4270_v28  ;;  %v4277_v7 = vsub.f32 %v10079_v33, %v4231_v29 }
 0x96b   : > { %v7755_v38 = vpop.eup %7754  ;;  %v4319_v58 = vmul.f32 1.442695, %v4290_v18  ;;  %v4293_v6 = vmul.f32 1.442695, %v4277_v7 }
 0x96c   : > { %v7757_v41 = vpop.eup %7756  ;;  %v4382_v11 = vpack.c.bf16 %v7755_v38, %v7755_v38  ;;  %v4352_v23 = vsel %vm4228_vm3, %v7755_v38, 0.0 }
 0x96d   : > { %v7759_v48 = vpop.eup %7758  ;;  %7762 = vpow2.f32 %v4319_v58  ;;  %v4337_v4 = vsel %vm4228_vm3, %v7757_v41, 0.0  ;;  %v4377_v39 = vpack.c.bf16 %v7757_v41, %v7757_v41 }
 0x96e   : > { %v4476_v42 = vunpack.c.l.b16 %v4382_v11  ;;  %7764 = vpow2.f32 %v4293_v6  ;;  %v4328_v14 = vsel %vm4228_vm3, %v7759_v48, 0.0  ;;  %4338 = vadd.xlane.f32.xlu0 %v4337_v4  ;;  %v7761_v16 = vpop.eup %7760  ;;  %v4374_v1 = vpack.c.bf16 %v7759_v48, %v7759_v48 }
 0x96f   : > { %4329 = vadd.xlane.f32.xlu2 %v4328_v14  ;;  %v4385_v51 = vpack.c.bf16 %v7761_v16, %v7761_v16 }
 0x970   : > { %v4479_v37 = vpack.c.b16 %v4476_v42, %v4475_v19  ;;  %v4261_v33 = vpop.xlane.xlu1 %4260  ;;  %v4246_v12 = vpop.xlane.xlu0 %4245 }
 0x971   : > { %v4287_v43 = vsub.f32 %v10097_v36, %v4261_v33  ;;  %v4282_v17 = vsub.f32 %v10095_v26, %v4246_v12  ;;  %v4516_v55 = vunpack.c.l.b16 %v4385_v51  ;;  %v4361_v26 = vsel %vm4228_vm3, %v7761_v16, 0.0 }
 0x972   : > { %6899 = vmatmul.msk.bf16.vlgmr.msra.gmra.mxu2 %vm4228_vm3, %v4479_v37  ;;  %v4394_v36 = vunpack.c.l.b16 %v4374_v1 }
 0x973   : > { %v7763_v40 = vpop.eup %7762  ;;  %v4313_v49 = vmul.f32 1.442695, %v4287_v43  ;;  %v4303_v5 = vmul.f32 1.442695, %v4282_v17 }
 0x974   : > { %v7765_v56 = vpop.eup %7764  ;;  %v4386_v25 = vpack.c.bf16 %v7763_v40, %v7763_v40 }
 0x975   : > { %v4373_v59 = vpack.c.bf16 %v7765_v56, %v7765_v56  ;;  %7766 = vpow2.f32 %v4313_v49  ;;  %v4325_v13 = vsel %vm4228_vm3, %v7765_v56, 0.0 }
 0x976   : > { %v4517_v0 = vunpack.c.l.b16 %v4386_v25  ;;  %7768 = vpow2.f32 %v4303_v5  ;;  %4326 = vadd.xlane.f32.xlu1 %v4325_v13  ;;  %4350 = vadd.xlane.f32.xlu0 %v4349_v46 }
 0x977   : > { %v4393_v34 = vunpack.c.l.b16 %v4373_v59  ;;  %4362 = vadd.xlane.f32.xlu2 %v4361_v26 }
 0x978   : > { %v4520_v31 = vpack.c.b16 %v4517_v0, %v4516_v55  ;;  %v4264_v52 = vpop.xlane.xlu2 %4263  ;;  %v4276_v60 = vpop.xlane.xlu1 %4275 }
 0x979   : > { %v4397_v24 = vpack.c.b16 %v4394_v36, %v4393_v34  ;;  %v4288_v50 = vsub.f32 %v10107_v54, %v4264_v52  ;;  %v4292_v2 = vsub.f32 %v10109_v8, %v4276_v60  ;;  %v4273_v62 = vpop.xlane.xlu0 %4272  ;;  %v4364_v54 = vsel %vm4228_vm3, %v7763_v40, 0.0 }
 0x97a   : > { %v4291_v61 = vsub.f32 %v10099_v44, %v4273_v62  ;;  %6905 = vmatmul.msk.bf16.vlgmr.msra.gmra.mxu3 %vm4228_vm3, %v4520_v31  ;;  %v4434_v8 = vunpack.c.l.b16 %v4377_v39  ;;  %v7382_v39 = vld [vmem:[#allocation19 + $0x28] sm:$0xff] }
 0x97b   : > { %v7767_v9 = vpop.eup %7766  ;;  %v4315_v30 = vmul.f32 1.442695, %v4288_v50  ;;  %v4323_v20 = vmul.f32 1.442695, %v4292_v2  ;;  %6887 = vmatmul.msk.bf16.vlgmr.msra.gmra.mxu0 %vm4228_vm3, %v4397_v24  ;;  %4953 = vmatpush.bf16.msrb.mxu2 %v7382_v39 }
 0x97c   : > { %v7769_v21 = vpop.eup %7768  ;;  %v4321_v22 = vmul.f32 1.442695, %v4291_v61  ;;  %v4355_v44 = vsel %vm4228_vm3, %v7767_v9, 0.0  ;;  %v4383_v7 = vpack.c.bf16 %v7767_v9, %v7767_v9 }
 0x97d   : > { %7770 = vpow2.f32 %v4315_v30  ;;  %v4378_v3 = vpack.c.bf16 %v7769_v21, %v7769_v21  ;;  %v4340_v12 = vsel %vm4228_vm3, %v7769_v21, 0.0  ;;  %v7384_v30 = vld [vmem:[#allocation19 + $0x38] sm:$0xff] }
 0x97e   : > { %7772 = vpow2.f32 %v4323_v20  ;;  %4353 = vadd.xlane.f32.xlu1 %v4352_v23  ;;  %4365 = vadd.xlane.f32.xlu0 %v4364_v54  ;;  %v4477_v37 = vunpack.c.l.b16 %v4383_v7  ;;  %v7378_v20 = vld [vmem:[#allocation19 + $0x8] sm:$0xff]  ;;  %v7380_v21 = vld [vmem:[#allocation19 + $0x18] sm:$0xff]  ;;  %v7381_v7 = vld [vmem:[#allocation19 + $0x20] sm:$0xff] }
 0x97f   : > { %v4435_v28 = vunpack.c.l.b16 %v4378_v3  ;;  %7774 = vpow2.f32 %v4321_v22  ;;  %4356 = vadd.xlane.f32.xlu2 %v4355_v44  ;;  %5000 = vmatpush.bf16.msrb.mxu3 %v7384_v30 }
 0x980   : > { %v4249_v29 = vpop.xlane.xlu1 %4248  ;;  %v4237_v18 = vpop.xlane.xlu2 %4236  ;;  %4859 = vmatpush.bf16.msrb.mxu0 %v7378_v20  ;;  %4906 = vmatpush.bf16.msrb.mxu1 %v7380_v21 }
 0x981   : > { %v4438_v32 = vpack.c.b16 %v4435_v28, %v4434_v8  ;;  %v4283_v58 = vsub.f32 %v10117_v57, %v4249_v29  ;;  %v4279_v6 = vsub.f32 %v10105_v53, %v4237_v18  ;;  %v4240_v38 = vpop.xlane.xlu0 %4239  ;;  %4954 = vmatpush.bf16.msrb.mxu2 %v7381_v7 }
 0x982   : > { %v4280_v41 = vsub.f32 %v10119_v47, %v4240_v38 }
 0x983   : > { %v7771_v11 = vpop.eup %7770  ;;  %v4305_v48 = vmul.f32 1.442695, %v4283_v58  ;;  %v4297_v4 = vmul.f32 1.442695, %v4279_v6  ;;  %6893 = vmatmul.msk.bf16.vlgmr.msra.gmra.mxu1 %vm4228_vm3, %v4438_v32  ;;  %v7383_v58 = vld [vmem:[#allocation19 + $0x30] sm:$0xff] }
 0x984   : > { %v7773_v19 = vpop.eup %7772  ;;  %v4384_v42 = vpack.c.bf16 %v7771_v11, %v7771_v11  ;;  %v4299_v14 = vmul.f32 1.442695, %v4280_v41  ;;  %v4358_v24 = vsel %vm4228_vm3, %v7771_v11, 0.0  ;;  %5001 = vmatpush.bf16.msrb.mxu3 %v7383_v58 }
 0x985   : > { %v7775_v16 = vpop.eup %7774  ;;  %v4388_v33 = vpack.c.bf16 %v7773_v19, %v7773_v19  ;;  %7776 = vpow2.f32 %v4305_v48  ;;  %v4370_v53 = vsel %vm4228_vm3, %v7773_v19, 0.0 }
 0x986   : > { %v4478_v57 = vunpack.c.l.b16 %v4384_v42  ;;  %v4387_v43 = vpack.c.bf16 %v7775_v16, %v7775_v16  ;;  %7778 = vpow2.f32 %v4297_v4  ;;  %4341 = vadd.xlane.f32.xlu1 %v4340_v12  ;;  %v4367_v55 = vsel %vm4228_vm3, %v7775_v16, 0.0 }
 0x987   : > { %7780 = vpow2.f32 %v4299_v14  ;;  %4371 = vadd.xlane.f32.xlu2 %v4370_v53  ;;  %v4519_v47 = vunpack.c.l.b16 %v4388_v33 }
 0x988   : > { %v4518_v17 = vunpack.c.l.b16 %v4387_v43  ;;  %v4252_v51 = vpop.xlane.xlu2 %4251  ;;  %v4480_v40 = vpack.c.b16 %v4478_v57, %v4477_v37 }
 0x989   : > { %v4284_v1 = vsub.f32 %v10127_v45, %v4252_v51 }
 0x98a   : > { %6900 = vmatmul.msk.bf16.gmra.mxu2 %vm4228_vm3, %v4480_v40  ;;  %v4521_v49 = vpack.c.b16 %v4519_v47, %v4518_v17 }
 0x98b   : > { %v7777_v5 = vpop.eup %7776  ;;  %v4307_v56 = vmul.f32 1.442695, %v4284_v1 }
 0x98c   : > { %v7779_v25 = vpop.eup %7778  ;;  %6906 = vmatmul.msk.bf16.gmra.mxu3 %vm4228_vm3, %v4521_v49  ;;  %v4343_v45 = vsel %vm4228_vm3, %v7777_v5, 0.0  ;;  %v4379_v34 = vpack.c.bf16 %v7777_v5, %v7777_v5 }
 0x98d   : > { %v7781_v59 = vpop.eup %7780  ;;  %v4375_v13 = vpack.c.bf16 %v7779_v25, %v7779_v25  ;;  %7782 = vpow2.f32 %v4307_v56  ;;  %v4331_v46 = vsel %vm4228_vm3, %v7779_v25, 0.0 }
 0x98e   : > { %v4376_v0 = vpack.c.bf16 %v7781_v59, %v7781_v59  ;;  %4332 = vadd.xlane.f32.xlu0 %v4331_v46  ;;  %4368 = vadd.xlane.f32.xlu1 %v4367_v55  ;;  %v4334_v50 = vsel %vm4228_vm3, %v7781_v59, 0.0  ;;  %v4436_v2 = vunpack.c.l.b16 %v4379_v34  ;;  %v7377_v55 = vld [vmem:[#allocation19] sm:$0xff] }
 0x98f   : > { %4344 = vadd.xlane.f32.xlu2 %v4343_v45  ;;  %v4395_v26 = vunpack.c.l.b16 %v4375_v13  ;;  %4860 = vmatpush.bf16.msrb.mxu0 %v7377_v55 }
 0x990   : > { %v4396_v36 = vunpack.c.l.b16 %v4376_v0  ;;  %v7379_v0 = vld [vmem:[#allocation19 + $0x10] sm:$0xff] }
 0x991   : > { %4907 = vmatpush.bf16.msrb.mxu1 %v7379_v0 }
 0x992   : > { %v4398_v31 = vpack.c.b16 %v4396_v36, %v4395_v26 }
 0x993   : > { %v7783_v52 = vpop.eup %7782 }
 0x994   : > { %v4380_v60 = vpack.c.bf16 %v7783_v52, %v7783_v52  ;;  %6888 = vmatmul.msk.bf16.gmra.mxu0 %vm4228_vm3, %v4398_v31  ;;  %v4346_v9 = vsel %vm4228_vm3, %v7783_v52, 0.0 }
 0x996   : > { %v4437_v62 = vunpack.c.l.b16 %v4380_v60  ;;  %4359 = vadd.xlane.f32.xlu0 %v4358_v24  ;;  %4335 = vadd.xlane.f32.xlu1 %v4334_v50 }
 0x998   : > { %v4439_v61 = vpack.c.b16 %v4437_v62, %v4436_v2 }
 0x99a   : > { %6894 = vmatmul.msk.bf16.gmra.mxu1 %vm4228_vm3, %v4439_v61 }
 0x99e   : > { %4347 = vadd.xlane.f32.xlu0 %v4346_v9 }
 0x9e1   : > { %v10171_v22 = vpop.xlane.xlu0 %4338 }
 0x9e2   : > { %v10173_v3 = vpop.xlane.xlu2 %4329  ;;  %7784 = vrcp.f32 %v10171_v22  ;;  %v4624_v32 = vand.u32 2147483648, %v10171_v22  ;;  %v4622_v4 = vand.u32 2147483647, %v10171_v22  ;;  %vm4618_vm7 = vweird.f32 %v10171_v22 }
 0x9e3   : > { %7786 = vrcp.f32 %v10173_v3  ;;  %v4579_v38 = vand.u32 2147483648, %v10173_v3  ;;  %vm4573_vm4 = vweird.f32 %v10173_v3  ;;  %v4577_v42 = vand.u32 2147483647, %v10173_v3 }
 0x9e4   : > { %v10202_v14 = vor.u32 1.1754944e-38, %v4624_v32  ;;  %vm10256_vm0 = vcmp.eq.f32.partialorder %v4622_v4, 8.507059e+37 }
 0x9e5   : > { %v10208_v33 = vor.u32 1.1754944e-38, %v4579_v38  ;;  %vm10252_vm15 = vcmp.eq.f32.partialorder %v4577_v42, 8.507059e+37 }
 0x9e8   : > { %v10177_v23 = vpop.eup %7784 }
 0x9e9   : > { %v10179_v54 = vpop.eup %7786  ;;  %v10181_v44 = vpop.xlane.xlu1 %4326  ;;  %v4614_v29 = vmul.f32 %v10177_v23, %v10171_v22  ;;  %vm4619_vm8 = vweird.f32 %v10177_v23 }
 0x9ea   : > { %v10183_v8 = vpop.xlane.xlu0 %4350  ;;  %v4569_v28 = vmul.f32 %v10179_v54, %v10173_v3  ;;  %7788 = vrcp.f32 %v10181_v44  ;;  %v10190_v18 = vpop.xlane.xlu2 %4362  ;;  %v4562_v48 = vand.u32 2147483647, %v10181_v44  ;;  %vm4558_vm5 = vweird.f32 %v10181_v44 }
 0x9eb   : > { %7790 = vrcp.f32 %v10190_v18  ;;  %v4684_v41 = vand.u32 2147483648, %v10183_v8  ;;  %v4615_v11 = vsub.f32 1.0, %v4614_v29  ;;  %v4682_v19 = vand.u32 2147483647, %v10183_v8 }
 0x9ec   : > { %v4570_v6 = vsub.f32 1.0, %v4569_v28  ;;  %7792 = vrcp.f32 %v10183_v8  ;;  %vm4678_vm10 = vweird.f32 %v10183_v8  ;;  %v4564_v17 = vand.u32 2147483648, %v10181_v44 }
 0x9ed   : > { %v10221_v47 = vor.u32 1.1754944e-38, %v4684_v41  ;;  %v4742_v51 = vand.u32 2147483647, %v10190_v18  ;;  %vm10232_vm11 = vcmp.eq.f32.partialorder %v4562_v48, 8.507059e+37  ;;  %v4616_v56 = vmul.f32 %v10177_v23, %v4615_v11 }
 0x9ee   : > { %v4571_v37 = vmul.f32 %v10179_v54, %v4570_v6  ;;  %vm10241_vm14 = vcmp.eq.f32.partialorder %v4682_v19, 8.507059e+37  ;;  %v4744_v46 = vand.u32 2147483648, %v10190_v18  ;;  %vm4574_vm6 = vweird.f32 %v10179_v54 }
 0x9ef   : > { %v4565_v24 = vor.u32 1.1754944e-38, %v4564_v17  ;;  %vm10261_vm1 = vcmp.eq.f32.partialorder %v4742_v51, 8.507059e+37  ;;  %v4617_v62 = vadd.f32 %v10177_v23, %v4616_v56  ;;  %vm10273_vm2 = vmor %vm4573_vm4, %vm4574_vm6 }
 0x9f0   : > { %v10204_v16 = vpop.eup %7788  ;;  %v4572_v26 = vadd.f32 %v10179_v54, %v4571_v37  ;;  %v4745_v39 = vor.u32 1.1754944e-38, %v4744_v46  ;;  %vm10312_vm6 = vmor %vm4618_vm7, %vm4619_vm8  ;;  %vm11220_vm7 = vweird.f32 %v10190_v18 }
 0x9f1   : > { %v10212_v12 = vpop.eup %7790  ;;  %v4554_v57 = vmul.f32 %v10204_v16, %v10181_v44  ;;  %v10216_v43 = vpop.xlane.xlu1 %4353  ;;  %vm4559_vm9 = vweird.f32 %v10204_v16  ;;  %v4621_v42 = vsel %vm10312_vm6, %v10177_v23, %v4617_v62 }
 0x9f2   : > { %v10218_v53 = vpop.xlane.xlu0 %4365  ;;  %v10225_v40 = vpop.eup %7792  ;;  %v4734_v1 = vmul.f32 %v10212_v12, %v10190_v18  ;;  %7794 = vrcp.f32 %v10216_v43  ;;  %v4697_v31 = vand.u32 2147483647, %v10216_v43  ;;  %vm10283_vm3 = vmor %vm4558_vm5, %vm4559_vm9  ;;  %vm4693_vm12 = vweird.f32 %v10216_v43 }
 0x9f3   : > { %v10230_v49 = vpop.xlane.xlu2 %4356  ;;  %v4555_v25 = vsub.f32 1.0, %v4554_v57  ;;  %v4674_v59 = vmul.f32 %v10225_v40, %v10183_v8  ;;  %vm4679_vm13 = vweird.f32 %v10225_v40  ;;  %v4699_v3 = vand.u32 2147483648, %v10216_v43 }
 0x9f4   : > { %7796 = vrcp.f32 %v10230_v49  ;;  %v4735_v45 = vsub.f32 1.0, %v4734_v1  ;;  %vm4739_vm4 = vweird.f32 %v10212_v12  ;;  %vm10301_vm5 = vcmp.eq.f32.partialorder %v4697_v31, 8.507059e+37  ;;  %vm4680_vm9 = vmor %vm4678_vm10, %vm4679_vm13 }
 0x9f5   : > { %7798 = vrcp.f32 %v10218_v53  ;;  %v4675_v36 = vsub.f32 1.0, %v4674_v59  ;;  %v4556_v34 = vmul.f32 %v10204_v16, %v4555_v25  ;;  %v4502_v21 = vpop.f32.mrf.mxu2  ;;  %v4576_v11 = vsel %vm10273_vm2, %v10179_v54, %v4572_v26  ;;  %vm10339_vm8 = vmor %vm11220_vm7, %vm4739_vm4 }
 0x9f6   : > { %v4736_v50 = vmul.f32 %v10212_v12, %v4735_v45  ;;  %v4700_v1 = vor.u32 1.1754944e-38, %v4699_v3  ;;  %v4581_v13 = vsel %vm10252_vm15, %v10208_v33, %v4576_v11  ;;  %v4712_v55 = vand.u32 2147483647, %v10230_v49 }
 0x9f7   : > { %v4676_v61 = vmul.f32 %v10225_v40, %v4675_v36  ;;  %v4557_v9 = vadd.f32 %v10204_v16, %v4556_v34  ;;  %v4714_v0 = vand.u32 2147483648, %v10230_v49  ;;  %vm4753_vm15 = vweird.f32 %v10218_v53 }
 0x9f8   : > { %v10277_v20 = vpop.eup %7794  ;;  %v4420_v28 = vpop.f32.mrf.mxu0  ;;  %v4737_v7 = vadd.f32 %v10212_v12, %v4736_v50 }
 0x9f9   : > { %v4689_v58 = vmul.f32 %v10277_v20, %v10216_v43  ;;  %v4677_v6 = vadd.f32 %v10225_v40, %v4676_v61  ;;  %v4561_v44 = vsel %vm10283_vm3, %v10204_v16, %v4557_v9  ;;  %v10299_v38 = vpop.xlane.xlu1 %4341  ;;  %vm4694_vm10 = vweird.f32 %v10277_v20 }
 0x9fa   : > { %v10291_v32 = vpop.eup %7796  ;;  %v4566_v54 = vsel %vm10232_vm11, %v4565_v24, %v4561_v44  ;;  %7800 = vrcp.f32 %v10299_v38  ;;  %v4741_v5 = vsel %vm10339_vm8, %v10212_v12, %v4737_v7  ;;  %vm10367_vm11 = vmor %vm4693_vm12, %vm4694_vm10  ;;  %v4715_v29 = vor.u32 1.1754944e-38, %v4714_v0 }
 0x9fb   : > { %v10316_v4 = vpop.eup %7798  ;;  %v4704_v19 = vmul.f32 %v10291_v32, %v10230_v49  ;;  %v10327_v22 = vpop.xlane.xlu2 %4371  ;;  %v4690_v16 = vsub.f32 1.0, %v4689_v58  ;;  %v4681_v57 = vsel %vm4680_vm9, %v10225_v40, %v4677_v6  ;;  %v4793_v17 = vmul.f32 %v4566_v54, %v4420_v28 }
 0x9fc   : > { %v4749_v37 = vmul.f32 %v10316_v4, %v10218_v53  ;;  %v4686_v23 = vsel %vm10241_vm14, %v10221_v47, %v4681_v57  ;;  %7802 = vrcp.f32 %v10327_v22  ;;  %v4626_v47 = vsel %vm10256_vm0, %v10202_v14, %v4621_v42 }
 0x9fd   : > { %v4705_v51 = vsub.f32 1.0, %v4704_v19  ;;  %v4691_v56 = vmul.f32 %v10277_v20, %v4690_v16  ;;  %v4543_v18 = vpop.f32.mrf.mxu3  ;;  %v4801_v25 = vmul.f32 %v4686_v23, %v4502_v21  ;;  %v4809_v59 = vpack.c.bf16 %v4793_v17, %v4793_v17  ;;  %v4504_v61 = vpop.f32.mrf.mxu2 }
 0x9fe   : > { %v4750_v40 = vsub.f32 1.0, %v4749_v37  ;;  %v4746_v46 = vsel %vm10261_vm1, %v4745_v39, %v4741_v5  ;;  %vm4708_vm14 = vweird.f32 %v10230_v49  ;;  %vm4709_vm12 = vweird.f32 %v10291_v32 }
 0x9ff   : > { %v4692_v12 = vadd.f32 %v10277_v20, %v4691_v56  ;;  %v10371_v33 = vmul.f32 %v4746_v46, %v4543_v18  ;;  %v4706_v34 = vmul.f32 %v10291_v32, %v4705_v51  ;;  %v4817_v2 = vpack.c.bf16 %v4801_v25, %v4801_v25  ;;  %vm10431_vm4 = vmor %vm4708_vm14, %vm4709_vm12 }
 0xa00   : > { %v10363_v45 = vpop.eup %7800  ;;  %v4422_v14 = vpop.f32.mrf.mxu0  ;;  %v4751_v31 = vmul.f32 %v10316_v4, %v4750_v40  ;;  %v4829_v62 = vunpack.c.l.b16 %v4809_v59  ;;  %vm4754_vm0 = vweird.f32 %v10316_v4  ;;  %vm10400_vm1 = vcmp.eq.f32.partialorder %v4712_v55, 8.507059e+37 }
 0xa01   : > { %v4461_v36 = vpop.f32.mrf.mxu1  ;;  %v4629_v52 = vmul.f32 %v10363_v45, %v10299_v38  ;;  %v10379_v43 = vpop.xlane.xlu0 %4332  ;;  %v4696_v60 = vsel %vm10367_vm11, %v10277_v20, %v4692_v12  ;;  %v4794_v24 = vmul.f32 %v4581_v13, %v4422_v14  ;;  %v4821_v6 = vpack.c.bf16 %v10371_v33, %v10371_v33  ;;  %vm10412_vm13 = vmor %vm4753_vm15, %vm4754_vm0 }
 0xa02   : > { %v10384_v50 = vpop.xlane.xlu1 %4368  ;;  %7804 = vrcp.f32 %v10379_v43  ;;  %v4701_v9 = vsel %vm10301_vm5, %v4700_v1, %v4696_v60  ;;  %v10392_v30 = vpop.eup %7802  ;;  %v4797_v3 = vmul.f32 %v4626_v47, %v4461_v36  ;;  %v4752_v7 = vadd.f32 %v10316_v4, %v4751_v31 }
 0xa03   : > { %v10390_v39 = vpop.xlane.xlu2 %4344  ;;  %v4630_v21 = vsub.f32 1.0, %v4629_v52  ;;  %v4802_v28 = vmul.f32 %v4701_v9, %v4504_v61  ;;  %v4810_v20 = vpack.c.bf16 %v4794_v24, %v4794_v24  ;;  %7806 = vrcp.f32 %v10384_v50 }
 0xa04   : > { %7808 = vrcp.f32 %v10390_v39  ;;  %v4923_v11 = vunpack.c.l.b16 %v4817_v2  ;;  %v10406_v48 = vmul.f32 %v10392_v30, %v10327_v22  ;;  %v4707_v19 = vadd.f32 %v10291_v32, %v4706_v34 }
 0xa05   : > { %v4818_v58 = vpack.c.bf16 %v4802_v28, %v4802_v28  ;;  %v4830_v44 = vunpack.c.l.b16 %v4810_v20  ;;  %v4757_v54 = vand.u32 2147483647, %v10218_v53  ;;  %v4759_v57 = vand.u32 2147483648, %v10218_v53  ;;  %v4545_v23 = vpop.f32.mrf.mxu3 }
 0xa06   : > { %v4631_v17 = vmul.f32 %v10363_v45, %v4630_v21  ;;  %v4813_v51 = vpack.c.bf16 %v4797_v3, %v4797_v3  ;;  %v4756_v1 = vsel %vm10412_vm13, %v10316_v4, %v4752_v7  ;;  %vm4633_vm2 = vweird.f32 %v10299_v38 }
 0xa07   : > { %v4924_v42 = vunpack.c.l.b16 %v4818_v58  ;;  %v4833_v16 = vpack.c.b16 %v4830_v44, %v4829_v62  ;;  %vm4634_vm3 = vweird.f32 %v10363_v45  ;;  %v4760_v56 = vor.u32 1.1754944e-38, %v4759_v57 }
 0xa08   : > { %v10418_v8 = vpop.eup %7804  ;;  %v4632_v18 = vadd.f32 %v10363_v45, %v4631_v17  ;;  %v4637_v4 = vand.u32 2147483647, %v10299_v38  ;;  %vm11231_vm5 = vcmask 261120   ;;  %v4711_v49 = vsel %vm10431_vm4, %v10291_v32, %v4707_v19  ;;  %vm10446_vm9 = vmor %vm4633_vm2, %vm4634_vm3 }
 0xa09   : > { %v4927_v5 = vpack.c.b16 %v4924_v42, %v4923_v11  ;;  %v10425_v40 = vpop.xlane.xlu0 %4359  ;;  %6915 = vmatmul.msk.bf16.vlgmr.msrb.gmra.mxu0 %vm11231_vm5, %v4833_v16  ;;  %v10440_v59 = vpop.eup %7806  ;;  %vm4758_vm6 = vcmp.eq.f32.partialorder %v4757_v54, 8.507059e+37  ;;  %v4639_v47 = vand.u32 2147483648, %v10299_v38  ;;  %v4584_v46 = vmul.f32 %v10418_v8, %v10379_v43  ;;  %vm11234_vm7 = vmmov %vm11231_vm5 }
 0xa0a   : > { %v10438_v25 = vpop.xlane.xlu1 %4335  ;;  %7810 = vrcp.f32 %v10425_v40  ;;  %v10451_v12 = vpop.eup %7808  ;;  %v4764_v55 = vmul.f32 %v10440_v59, %v10384_v50  ;;  %v4761_v0 = vsel %vm4758_vm6, %v4760_v56, %v4756_v1  ;;  %v4636_v32 = vsel %vm10446_vm9, %v10363_v45, %v4632_v18  ;;  %vm11237_vm0 = vmmov %vm11231_vm5 }
 0xa0b   : > { %6935 = vmatmul.msk.bf16.vlgmr.msrb.gmra.mxu2 %vm11234_vm7, %v4927_v5  ;;  %v4970_v26 = vunpack.c.l.b16 %v4821_v6  ;;  %v4806_v33 = vmul.f32 %v4761_v0, %v4545_v23  ;;  %v4640_v14 = vor.u32 1.1754944e-38, %v4639_v47  ;;  %7812 = vrcp.f32 %v10438_v25  ;;  %v4463_v45 = vpop.f32.mrf.mxu1  ;;  %vm11242_vm5 = vmmov %vm11237_vm0 }
 0xa0c   : > { %v4780_v38 = vsub.f32 1.0, %v10406_v48  ;;  %v4876_v36 = vunpack.c.l.b16 %v4813_v51  ;;  %v4765_v34 = vsub.f32 1.0, %v4764_v55  ;;  %vm4638_vm8 = vcmp.eq.f32.partialorder %v4637_v4, 8.507059e+37 }
 0xa0d   : > { %v4644_v31 = vmul.f32 %v10451_v12, %v10390_v39  ;;  %v4716_v52 = vsel %vm10400_vm1, %v4715_v29, %v4711_v49  ;;  %v4822_v60 = vpack.c.bf16 %v4806_v33, %v4806_v33  ;;  %v4641_v24 = vsel %vm4638_vm8, %v4640_v14, %v4636_v32  ;;  %v4507_v62 = vpop.f32.mrf.mxu2 }
 0xa0e   : > { %v4585_v2 = vsub.f32 1.0, %v4584_v46  ;;  %v4798_v61 = vmul.f32 %v4641_v24, %v4463_v45  ;;  %vm4723_vm10 = vweird.f32 %v10425_v40  ;;  %v4766_v9 = vmul.f32 %v10440_v59, %v4765_v34 }
 0xa0f   : > { %v4971_v28 = vunpack.c.l.b16 %v4822_v60  ;;  %v4727_v20 = vand.u32 2147483647, %v10425_v40  ;;  %v4729_v3 = vand.u32 2147483648, %v10425_v40  ;;  %vm4769_vm11 = vweird.f32 %v10440_v59  ;;  %v4548_v56 = vpop.f32.mrf.mxu3 }
 0xa10   : > { %v7811_v21 = vpop.eup %7810  ;;  %v4814_v7 = vpack.c.bf16 %v4798_v61, %v4798_v61  ;;  %v4767_v6 = vadd.f32 %v10440_v59, %v4766_v9  ;;  %vm4768_vm14 = vweird.f32 %v10384_v50  ;;  %v4645_v41 = vsub.f32 1.0, %v4644_v31 }
 0xa11   : > { %v4719_v29 = vmul.f32 %v7811_v21, %v10425_v40  ;;  %v10473_v58 = vpop.xlane.xlu0 %4347  ;;  %v10477_v44 = vpop.eup %7812  ;;  %v4803_v11 = vmul.f32 %v4716_v52, %v4507_v62  ;;  %v4974_v19 = vpack.c.b16 %v4971_v28, %v4970_v26  ;;  %vm4724_vm15 = vweird.f32 %v7811_v21  ;;  %vm10480_vm12 = vmor %vm4768_vm14, %vm4769_vm11 }
 0xa12   : > { %7814 = vrcp.f32 %v10473_v58  ;;  %v4877_v42 = vunpack.c.l.b16 %v4814_v7  ;;  %v4772_v37 = vand.u32 2147483647, %v10384_v50  ;;  %v4599_v57 = vmul.f32 %v10477_v44, %v10438_v25  ;;  %vm10501_vm13 = vmor %vm4723_vm10, %vm4724_vm15  ;;  %v4425_v62 = vpop.f32.mrf.mxu0 }
 0xa13   : > { %v4720_v54 = vsub.f32 1.0, %v4719_v29  ;;  %v4771_v17 = vsel %vm10480_vm12, %v10440_v59, %v4767_v6  ;;  %v4774_v51 = vand.u32 2147483648, %v10384_v50  ;;  %6945 = vmatmul.msk.bf16.vlgmr.msrb.gmra.mxu3 %vm11237_vm0, %v4974_v19  ;;  %v4586_v23 = vmul.f32 %v10418_v8, %v4585_v2 }
 0xa14   : > { %v4880_v1 = vpack.c.b16 %v4877_v42, %v4876_v36  ;;  %vm4589_vm1 = vweird.f32 %v10418_v8  ;;  %v4592_v53 = vand.u32 2147483647, %v10379_v43  ;;  %v4594_v49 = vand.u32 2147483648, %v10379_v43 }
 0xa15   : > { %v4721_v5 = vmul.f32 %v7811_v21, %v4720_v54  ;;  %v4775_v18 = vor.u32 1.1754944e-38, %v4774_v51  ;;  %v4587_v4 = vadd.f32 %v10418_v8, %v4586_v23  ;;  %v4646_v59 = vmul.f32 %v10451_v12, %v4645_v41  ;;  %v4509_v34 = vpop.f32.mrf.mxu2 }
 0xa16   : > { %vm10505_vm2 = vcmp.eq.f32.partialorder %v4727_v20, 8.507059e+37  ;;  %vm4773_vm3 = vcmp.eq.f32.partialorder %v4772_v37, 8.507059e+37  ;;  %vm4588_vm4 = vweird.f32 %v10379_v43  ;;  %6925 = vmatmul.msk.bf16.vlgmr.msrb.gmra.mxu1 %vm11242_vm5, %v4880_v1  ;;  %v4819_v55 = vpack.c.bf16 %v4803_v11, %v4803_v11 }
 0xa17   : > { %v4722_v13 = vadd.f32 %v7811_v21, %v4721_v5  ;;  %v4730_v0 = vor.u32 1.1754944e-38, %v4729_v3  ;;  %v4776_v32 = vsel %vm4773_vm3, %v4775_v18, %v4771_v17  ;;  %vm10515_vm6 = vmor %vm4588_vm4, %vm4589_vm1  ;;  %vm4649_vm9 = vweird.f32 %v10451_v12  ;;  %v4466_v41 = vpop.f32.mrf.mxu1  ;;  %v4550_v19 = vpop.f32.mrf.mxu3 }
 0xa18   : > { %v10511_v46 = vpop.eup %7814  ;;  %v4591_v33 = vsel %vm10515_vm6, %v10418_v8, %v4587_v4  ;;  %v4647_v14 = vadd.f32 %v10451_v12, %v4646_v59  ;;  %v4600_v36 = vsub.f32 1.0, %v4599_v57  ;;  %vm4593_vm7 = vcmp.eq.f32.partialorder %v4592_v53, 8.507059e+37  ;;  %vm11251_vm3 = vmmov %vm11242_vm5 }
 0xa19   : > { %v4659_v26 = vmul.f32 %v10511_v46, %v10473_v58  ;;  %v4726_v43 = vsel %vm10501_vm13, %v7811_v21, %v4722_v13  ;;  %v4595_v52 = vor.u32 1.1754944e-38, %v4594_v49  ;;  %v4807_v45 = vmul.f32 %v4776_v32, %v4548_v56 }
 0xa1a   : > { %v4731_v31 = vsel %vm10505_vm2, %v4730_v0, %v4726_v43  ;;  %vm4648_vm8 = vweird.f32 %v10390_v39  ;;  %v4652_v24 = vand.u32 2147483647, %v10390_v39  ;;  %v4925_v2 = vunpack.c.l.b16 %v4819_v55  ;;  %v4427_v50 = vpop.f32.mrf.mxu0 }
 0xa1b   : > { %v4804_v60 = vmul.f32 %v4731_v31, %v4509_v34  ;;  %v4596_v61 = vsel %vm4593_vm7, %v4595_v52, %v4591_v33  ;;  %vm10534_vm10 = vmor %vm4648_vm8, %vm4649_vm9  ;;  %v4654_v9 = vand.u32 2147483648, %v10390_v39  ;;  %v4781_v21 = vmul.f32 %v10392_v30, %v4780_v38 }
 0xa1c   : > { %v4660_v28 = vsub.f32 1.0, %v4659_v26  ;;  %v4651_v3 = vsel %vm10534_vm10, %v10451_v12, %v4647_v14  ;;  %vm4784_vm11 = vweird.f32 %v10392_v30  ;;  %vm4783_vm14 = vweird.f32 %v10327_v22  ;;  %vm11254_vm8 = vmmov %vm11251_vm3 }
 0xa1d   : > { %v4820_v20 = vpack.c.bf16 %v4804_v60, %v4804_v60  ;;  %v4782_v29 = vadd.f32 %v10392_v30, %v4781_v21  ;;  %v4787_v7 = vand.u32 2147483647, %v10327_v22  ;;  %v4789_v39 = vand.u32 2147483648, %v10327_v22  ;;  %vm4785_vm12 = vmor %vm4783_vm14, %vm4784_vm11 }
 0xa1e   : > { %v4823_v48 = vpack.c.bf16 %v4807_v45, %v4807_v45  ;;  %vm10550_vm15 = vcmp.eq.f32.partialorder %v4652_v24, 8.507059e+37  ;;  %v4601_v12 = vmul.f32 %v10477_v44, %v4600_v36  ;;  %v4655_v11 = vor.u32 1.1754944e-38, %v4654_v9  ;;  %vm11255_vm10 = vmmov %vm11251_vm3 }
 0xa1f   : > { %v4926_v6 = vunpack.c.l.b16 %v4820_v20  ;;  %v4786_v54 = vsel %vm4785_vm12, %v10392_v30, %v4782_v29  ;;  %vm4788_vm0 = vcmp.eq.f32.partialorder %v4787_v7, 8.507059e+37  ;;  %v4790_v42 = vor.u32 1.1754944e-38, %v4789_v39  ;;  %v4468_v14 = vpop.f32.mrf.mxu1  ;;  %vm11256_vm11 = vmmov %vm11251_vm3  ;;  %v7626_v20 = vld [vmem:[%s11257_s16] ss:$0 sm:$0xff]  ;;  %s11267_s16 = sld [smem:[#allocation61_spill]] }
 0xa20   : > { %v4602_v37 = vadd.f32 %v10477_v44, %v4601_v12  ;;  %vm4603_vm1 = vweird.f32 %v10438_v25  ;;  %vm4604_vm13 = vweird.f32 %v10477_v44  ;;  %v4607_v17 = vand.u32 2147483647, %v10438_v25 }
 0xa21   : > { %v4928_v16 = vpack.c.b16 %v4926_v6, %v4925_v2  ;;  %v4791_v22 = vsel %vm4788_vm0, %v4790_v42, %v4786_v54  ;;  %vm10559_vm2 = vmor %vm4603_vm1, %vm4604_vm13  ;;  %v4609_v51 = vand.u32 2147483648, %v10438_v25  ;;  %v4661_v30 = vmul.f32 %v10511_v46, %v4660_v28 }
 0xa22   : > { %v4795_v23 = vmul.f32 %v4596_v61, %v4425_v62  ;;  %v4656_v1 = vsel %vm10550_vm15, %v4655_v11, %v4651_v3  ;;  %v4808_v5 = vmul.f32 %v4791_v22, %v4550_v19  ;;  %v4606_v53 = vsel %vm10559_vm2, %v10477_v44, %v4602_v37 }
 0xa23   : > { %6936 = vmatmul.msk.bf16.gmra.mxu2 %vm11251_vm3, %v4928_v16  ;;  %v4610_v56 = vor.u32 1.1754944e-38, %v4609_v51  ;;  %v4662_v18 = vadd.f32 %v10511_v46, %v4661_v30  ;;  %vm4663_vm4 = vweird.f32 %v10473_v58  ;;  %vm4664_vm5 = vweird.f32 %v10511_v46 }
 0xa24   : > { %v4824_v25 = vpack.c.bf16 %v4808_v5, %v4808_v5  ;;  %vm4608_vm6 = vcmp.eq.f32.partialorder %v4607_v17, 8.507059e+37  ;;  %vm10575_vm9 = vmor %vm4663_vm4, %vm4664_vm5  ;;  %v4667_v49 = vand.u32 2147483647, %v10473_v58  ;;  %v4669_v59 = vand.u32 2147483648, %v10473_v58 }
 0xa25   : > { %v4972_v44 = vunpack.c.l.b16 %v4823_v48  ;;  %v4799_v13 = vmul.f32 %v4656_v1, %v4466_v41  ;;  %v4611_v47 = vsel %vm4608_vm6, %v4610_v56, %v4606_v53  ;;  %v4666_v55 = vsel %vm10575_vm9, %v10511_v46, %v4662_v18  ;;  %s5922_s2 = scalar_lea.hbm %s11267_s16, %s7449_s20  ;;  %s8240_s11 = scalar_lea.hbm %s11267_s16, 64 }
 0xa26   : > { %v4811_v0 = vpack.c.bf16 %v4795_v23, %v4795_v23  ;;  %v4973_v32 = vunpack.c.l.b16 %v4824_v25  ;;  %v4796_v40 = vmul.f32 %v4611_v47, %v4427_v50  ;;  %v4670_v26 = vor.u32 1.1754944e-38, %v4669_v59 }
 0xa27   : > { %vm4668_vm7 = vcmp.eq.f32.partialorder %v4667_v49, 8.507059e+37  ;;  %v4815_v34 = vpack.c.bf16 %v4799_v13, %v4799_v13 }
 0xa28   : > { %v4975_v43 = vpack.c.b16 %v4973_v32, %v4972_v44  ;;  %v4812_v33 = vpack.c.bf16 %v4796_v40, %v4796_v40  ;;  %v4671_v36 = vsel %vm4668_vm7, %v4670_v26, %v4666_v55  ;;  %v4831_v58 = vunpack.c.l.b16 %v4811_v0 }
 0xa29   : > { %v4800_v31 = vmul.f32 %v4671_v36, %v4468_v14  ;;  %v4878_v24 = vunpack.c.l.b16 %v4815_v34  ;;  %v7069_v36 = vld [vmem:[%s11258_s17 + $0xe8] sm:$0xf]  ;;  %v7416_v34 = vld [vmem:[%s11258_s17 + $0xf4] sm:$0xf0] }
 0xa2a   : > { %v4832_v52 = vunpack.c.l.b16 %v4812_v33  ;;  %6946 = vmatmul.msk.bf16.gmra.mxu3 %vm11254_vm8, %v4975_v43 }
 0xa2b   : > { %v4816_v60 = vpack.c.bf16 %v4800_v31, %v4800_v31  ;;  %v7061_v31 = vld [vmem:[%s11258_s17 + $0xe0] sm:$0xf] }
 0xa2c   : > { %v4834_v45 = vpack.c.b16 %v4832_v52, %v4831_v58  ;;  %v7070_v58 = vor.u32 %v7416_v34, %v7069_v36  ;;  %v7415_v52 = vld [vmem:[%s11258_s17 + $0xec] sm:$0xf0]  ;;  %v7015_v36 = vld [vmem:[%s11258_s17 + $0x90] sm:$0xf0]  ;;  %v7402_v34 = vld [vmem:[%s11258_s17 + $0x8c] sm:$0xf] }
 0xa2d   : > { %v4879_v2 = vunpack.c.l.b16 %v4816_v60  ;;  %v7413_v60 = vld [vmem:[%s11258_s17 + $0xe4] sm:$0xf] }
 0xa2e   : > { %6916 = vmatmul.msk.bf16.gmra.mxu0 %vm11255_vm10, %v4834_v45  ;;  %v7063_v45 = vld [vmem:[%s11258_s17 + $0xf0] sm:$0xf0]  ;;  %5439 = vmatpush.bf16.msra.mxu2 %v7070_v58 }
 0xa2f   : > { %v4881_v46 = vpack.c.b16 %v4879_v2, %v4878_v24  ;;  %v7062_v24 = vor.u32 %v7415_v52, %v7061_v31  ;;  %v7066_v2 = vor.u32 %v7413_v60, %v7063_v45  ;;  %v7023_v31 = vld [vmem:[%s11258_s17 + $0x98] sm:$0xf0]  ;;  %v7005_v45 = vld [vmem:[%s11258_s17 + $0x68] sm:$0xf] }
 0xa31   : > { %6926 = vmatmul.msk.bf16.gmra.mxu1 %vm11256_vm11, %v4881_v46  ;;  %v7414_v46 = vld [vmem:[%s11258_s17 + $0xec] sm:$0xf]  ;;  %5401 = vmatpush.bf16.msra.mxu0 %v7062_v24  ;;  %v7400_v24 = vld [vmem:[%s11258_s17 + $0x74] sm:$0xf0] }
 0xa32   : > { %5420 = vmatpush.bf16.msra.mxu1 %v7066_v2  ;;  %v6997_v2 = vld [vmem:[%s11258_s17 + $0x60] sm:$0xf] }
 0xa86   : > { %v4862_v62 = vpop.f32.mrf.mxu0 }
 0xa8e   : > { %v4956_v61 = vpop.f32.mrf.mxu2  ;;  %v4864_v7 = vpop.f32.mrf.mxu0 }
 0xa93   : > { %v4909_v8 = vpop.f32.mrf.mxu1 }
 0xa94   : > { %v5013_v9 = vadd.f32 %v4909_v8, %v4862_v62  ;;  %v7071_v62 = vld [vmem:[%s11258_s17 + $0xf8] sm:$0xf0] }
 0xa96   : > { %v5003_v21 = vpop.f32.mrf.mxu3  ;;  %v5014_v28 = vadd.f32 %v5013_v9, %v4956_v61  ;;  %v4958_v41 = vpop.f32.mrf.mxu2  ;;  %v7074_v61 = vor.u32 %v7414_v46, %v7071_v62  ;;  %v7026_v46 = vor.u32 %v7402_v34, %v7023_v31  ;;  %v7006_v62 = vor.u32 %v7400_v24, %v7005_v45  ;;  %v7385_v24 = vld [vmem:[%s11258_s17 + $0x4] sm:$0xf] }
 0xa98   : > { %v5015_v3 = vadd.f32 %v5014_v28, %v5003_v21  ;;  %5458 = vmatpush.bf16.msra.mxu3 %v7074_v61  ;;  %v7053_v28 = vld [vmem:[%s11258_s17 + $0xc8] sm:$0xf]  ;;  %v7399_v61 = vld [vmem:[%s11258_s17 + $0x6c] sm:$0xf0] }
 0xa9a   : > { %v5028_v29 = vadd.f32 %v7626_v20, %v5015_v3 }
 0xa9b   : > { %v4911_v39 = vpop.f32.mrf.mxu1 }
 0xa9c   : > { %v5016_v6 = vadd.f32 %v4911_v39, %v4864_v7  ;;  %v10591_v48 = vadd.f32 %v5028_v29, %v9891_v27  ;;  %v7045_v29 = vld [vmem:[%s11258_s17 + $0xc0] sm:$0xf]  ;;  %v7411_v7 = vld [vmem:[%s11258_s17 + $0xcc] sm:$0xf0]  ;;  %v7409_v39 = vld [vmem:[%s11258_s17 + $0xc4] sm:$0xf] }
 0xa9e   : > { %v5017_v38 = vadd.f32 %v5016_v6, %v4958_v41  ;;  %5038 = vadd.xlane.f32.xlu1 %v10591_v48  ;;  %v5005_v12 = vpop.f32.mrf.mxu3  ;;  %v7046_v6 = vor.u32 %v7411_v7, %v7045_v29  ;;  %v7047_v41 = vld [vmem:[%s11258_s17 + $0xd0] sm:$0xf0]  ;;  %v7007_v29 = vld [vmem:[%s11258_s17 + $0x78] sm:$0xf0] }
 0xaa0   : > { %v5018_v11 = vadd.f32 %v5017_v38, %v5005_v12  ;;  %v7410_v38 = vld [vmem:[%s11258_s17 + $0xcc] sm:$0xf]  ;;  %v7055_v12 = vld [vmem:[%s11258_s17 + $0xd8] sm:$0xf0]  ;;  %5402 = vmatpush.bf16.msra.mxu0 %v7046_v6 }
 0xaa2   : > { %v5029_v19 = vadd.f32 %v7626_v20, %v5018_v11  ;;  %v7050_v11 = vor.u32 %v7409_v39, %v7047_v41 }
 0xaa4   : > { %v10595_v54 = vadd.f32 %v5029_v19, %v9895_v63  ;;  %v7058_v19 = vor.u32 %v7410_v38, %v7055_v12  ;;  %5421 = vmatpush.bf16.msra.mxu1 %v7050_v11  ;;  %v10772_v38 = vld [vmem:[%s11261_s28] ss:$0 sm:$0xff]  ;;  %v6989_v12 = vld [vmem:[%s11258_s17 + $0x48] sm:$0xf]  ;;  %v7396_v11 = vld [vmem:[%s11258_s17 + $0x54] sm:$0xf0] }
 0xaa5   : > { %s5925_s28 = sshll.u32 %s5922_s2, 4  ;;  %s5926_s28 = int_to_ptr.hbm [resolvable:$true] %s5925_s28 }
 0xaa6   : > { %5040 = vadd.xlane.f32.xlu2 %v10595_v54  ;;  %v4961_v16 = vpop.f32.mrf.mxu2  ;;  %5459 = vmatpush.bf16.msra.mxu3 %v7058_v19  ;;  %v6981_v19 = vld [vmem:[%s11258_s17 + $0x40] sm:$0xf]  ;;  %s8234_s25 = sshra.s32 %s5926_s28, 4  ;;  %s8235_s25 = int_to_ptr.hbm [resolvable:$true] %s8234_s25 }
 0xaa7   : > { %s8236_s26 = scalar_lea.hbm %s8235_s25, 32  ;;  %p8241_p11 = scmp.lt.s32.totalorder %s8235_s25, %s11267_s16 }
 0xaa8   : > { %p8237_p1 = scmp.ne.s32.totalorder %s8235_s25, %s8236_s26  ;;  %p8242_p12 = scmp.lt.s32.totalorder %s8240_s11, %s8236_s26 }
 0xaaa   : > { %p8238_p9 = pnand %p8237_p1, %p8616_p4  ;;  %p8243_p13 = por %p8242_p12, %p8241_p11 }
 0xaab   : > { %v4867_v42 = vpop.f32.mrf.mxu0 }
 0xaac   : > { %p8239_p10 = pneg %p8238_p9 }
 0xaad   : > { %v5008_v57 = vpop.f32.mrf.mxu3 }
 0xaae   : > { %v4914_v37 = vpop.f32.mrf.mxu1  ;;  %v4963_v53 = vpop.f32.mrf.mxu2  ;;  %p8244_p0 = pnand %p8243_p13, %p8239_p10 }
 0xaaf   : > { %v5019_v22 = vadd.f32 %v4914_v37, %v4867_v42  ;;  %v7037_v42 = vld [vmem:[%s11258_s17 + $0xa8] sm:$0xf]  ;;  %v7029_v37 = vld [vmem:[%s11258_s17 + $0xa0] sm:$0xf] }
 0xab1   : > { %v5020_v17 = vadd.f32 %v5019_v22, %v4961_v16  ;;  %v7408_v16 = vld [vmem:[%s11258_s17 + $0xb4] sm:$0xf0] }
 0xab2   : > { %v7038_v22 = vor.u32 %v7408_v16, %v7037_v42 }
 0xab3   : > { %v5021_v27 = vadd.f32 %v5020_v17, %v5008_v57  ;;  %v4869_v51 = vpop.f32.mrf.mxu0  ;;  %v7407_v57 = vld [vmem:[%s11258_s17 + $0xac] sm:$0xf0]  ;;  %v7405_v17 = vld [vmem:[%s11258_s17 + $0xa4] sm:$0xf] }
 0xab5   : > { %v5030_v30 = vadd.f32 %v7626_v20, %v5021_v27  ;;  %v5010_v63 = vpop.f32.mrf.mxu3  ;;  %v7031_v27 = vld [vmem:[%s11258_s17 + $0xb0] sm:$0xf0] }
 0xab6   : > { %v4916_v23 = vpop.f32.mrf.mxu1 }
 0xab7   : > { %v5022_v1 = vadd.f32 %v4916_v23, %v4869_v51  ;;  %v10599_v5 = vadd.f32 %v5030_v30, %v9899_v15  ;;  %v7030_v30 = vor.u32 %v7407_v57, %v7029_v37  ;;  %v7034_v23 = vor.u32 %v7405_v17, %v7031_v27  ;;  %v7393_v57 = vld [vmem:[%s11258_s17 + $0x44] sm:$0xf] }
 0xab8   : > { %v6990_v37 = vor.u32 %v7396_v11, %v6989_v12 }
 0xab9   : > { %v5023_v56 = vadd.f32 %v5022_v1, %v4963_v53  ;;  %5042 = vadd.xlane.f32.xlu0 %v10599_v5  ;;  %v7406_v1 = vld [vmem:[%s11258_s17 + $0xac] sm:$0xf]  ;;  %v7039_v53 = vld [vmem:[%s11258_s17 + $0xb8] sm:$0xf0]  ;;  %5403 = vmatpush.bf16.msra.mxu0 %v7030_v30  ;;  %v6983_v30 = vld [vmem:[%s11258_s17 + $0x50] sm:$0xf0] }
 0xaba   : > { %5422 = vmatpush.bf16.msra.mxu1 %v7034_v23  ;;  %v7394_v23 = vld [vmem:[%s11258_s17 + $0x4c] sm:$0xf] }
 0xabb   : > { %v5024_v18 = vadd.f32 %v5023_v56, %v5010_v63  ;;  %v7042_v63 = vor.u32 %v7406_v1, %v7039_v53  ;;  %v6991_v1 = vld [vmem:[%s11258_s17 + $0x58] sm:$0xf0] }
 0xabd   : > { %v5031_v25 = vadd.f32 %v7626_v20, %v5024_v18  ;;  %v7412_v20 = vld [vmem:[%s11258_s17 + $0xd4] sm:$0xf0]  ;;  %5460 = vmatpush.bf16.msra.mxu3 %v7042_v63  ;;  %v6994_v63 = vor.u32 %v7394_v23, %v6991_v1 }
 0xabe   : > { %v7054_v3 = vor.u32 %v7412_v20, %v7053_v28  ;;  %v6998_v28 = vor.u32 %v7399_v61, %v6997_v2  ;;  %v6999_v20 = vld [vmem:[%s11258_s17 + $0x70] sm:$0xf0]  ;;  %v7386_v61 = vld [vmem:[%s11258_s17 + $0xc] sm:$0xf] }
 0xabf   : > { %v10603_v4 = vadd.f32 %v5031_v25, %v9903_v35  ;;  %v6951_v2 = vld [vmem:[%s11258_s17 + $0x10] sm:$0xf0] }
 0xac0   : > { %5440 = vmatpush.bf16.msra.mxu2 %v7054_v3  ;;  %v7398_v3 = vld [vmem:[%s11258_s17 + $0x6c] sm:$0xf] }
 0xac1   : > { %5044 = vadd.xlane.f32.xlu1 %v10603_v4  ;;  %5461 = vmatpush.bf16.msra.mxu3 %v7026_v46  ;;  %v7010_v39 = vor.u32 %v7398_v3, %v7007_v29 }
 0xac4   : > { %5441 = vmatpush.bf16.msra.mxu2 %v7038_v22  ;;  %v7395_v22 = vld [vmem:[%s11258_s17 + $0x4c] sm:$0xf0] }
 0xac5   : > { %5462 = vmatpush.bf16.msra.mxu3 %v7010_v39 }
 0xac9   : > { %5463 = vmatpush.bf16.msra.mxu3 %v6994_v63 }
 0xb11   : > { %v5039_v49 = vpop.xlane.xlu1 %5038 }
 0xb12   : > { %v5046_v59 = vmul.f32 %v5039_v49, %v8729_v10 }
 0xb14   : > { %v10608_v44 = vsub.f32 %v10591_v48, %v5046_v59 }
 0xb16   : > { %v5054_v15 = vmul.f32 %v10608_v44, %v10608_v44 }
 0xb18   : > { %5058 = vadd.xlane.f32.xlu2 %v5054_v15 }
 0xb19   : > { %v5041_v13 = vpop.xlane.xlu2 %5040 }
 0xb1a   : > { %v5047_v50 = vmul.f32 %v5041_v13, %v8729_v10  ;;  %v7021_v13 = vld [vmem:[%s11258_s17 + $0x88] sm:$0xf] }
 0xb1c   : > { %v10614_v47 = vsub.f32 %v10595_v54, %v5047_v50  ;;  %v7404_v50 = vld [vmem:[%s11258_s17 + $0x94] sm:$0xf0] }
 0xb1e   : > { %v5055_v35 = vmul.f32 %v10614_v47, %v10614_v47 }
 0xb20   : > { %5060 = vadd.xlane.f32.xlu0 %v5055_v35  ;;  %v7013_v35 = vld [vmem:[%s11258_s17 + $0x80] sm:$0xf] }
 0xb2c   : > { %v5043_v55 = vpop.xlane.xlu0 %5042 }
 0xb2d   : > { %v5048_v0 = vmul.f32 %v5043_v55, %v8729_v10 }
 0xb2f   : > { %v10620_v32 = vsub.f32 %v10599_v5, %v5048_v0  ;;  %v7022_v0 = vor.u32 %v7404_v50, %v7021_v13  ;;  %v7391_v13 = vld [vmem:[%s11258_s17 + $0x2c] sm:$0xf0]  ;;  %v7389_v50 = vld [vmem:[%s11258_s17 + $0x24] sm:$0xf] }
 0xb31   : > { %v5056_v40 = vmul.f32 %v10620_v32, %v10620_v32  ;;  %5442 = vmatpush.bf16.msra.mxu2 %v7022_v0 }
 0xb33   : > { %5062 = vadd.xlane.f32.xlu1 %v5056_v40  ;;  %v7403_v40 = vld [vmem:[%s11258_s17 + $0x8c] sm:$0xf0] }
 0xb34   : > { %v5045_v26 = vpop.xlane.xlu1 %5044 }
 0xb35   : > { %v5049_v43 = vmul.f32 %v5045_v26, %v8729_v10  ;;  %v7401_v26 = vld [vmem:[%s11258_s17 + $0x84] sm:$0xf]  ;;  %5443 = vmatpush.bf16.msra.mxu2 %v7006_v62 }
 0xb36   : > { %v7018_v60 = vor.u32 %v7401_v26, %v7015_v36  ;;  %v6975_v36 = vld [vmem:[%s11258_s17 + $0x38] sm:$0xf0] }
 0xb37   : > { %v10626_v33 = vsub.f32 %v10603_v4, %v5049_v43 }
 0xb38   : > { %5423 = vmatpush.bf16.msra.mxu1 %v7018_v60  ;;  %v6949_v60 = vld [vmem:[%s11258_s17] sm:$0xf] }
 0xb39   : > { %v5057_v14 = vmul.f32 %v10626_v33, %v10626_v33  ;;  %5444 = vmatpush.bf16.msra.mxu2 %v6990_v37 }
 0xb3b   : > { %5064 = vadd.xlane.f32.xlu2 %v5057_v14  ;;  %v7014_v14 = vor.u32 %v7403_v40, %v7013_v35  ;;  %v6967_v35 = vld [vmem:[%s11258_s17 + $0x30] sm:$0xf0] }
 0xb3c   : > { %v6970_v26 = vor.u32 %v7389_v50, %v6967_v35  ;;  %v7422_v50 = vld [vmem:[#allocation20 + $0x28] sm:$0xff] }
 0xb3d   : > { %5404 = vmatpush.bf16.msra.mxu0 %v7014_v14  ;;  %v7390_v14 = vld [vmem:[%s11258_s17 + $0x2c] sm:$0xf]  ;;  %v7430_v35 = vld [vmem:[#allocation20 + $0x68] sm:$0xff] }
 0xb41   : > { %5405 = vmatpush.bf16.msra.mxu0 %v6998_v28 }
 0xb8b   : > { %v5059_v8 = vpop.xlane.xlu2 %5058 }
 0xb8c   : > { %v5066_v9 = vmul.f32 %v5059_v8, %v8729_v10  ;;  %v7397_v8 = vld [vmem:[%s11258_s17 + $0x64] sm:$0xf] }
 0xb8e   : > { %v10655_v21 = vadd.f32 1e-05, %v5066_v9 }
 0xb90   : > { %7816 = vrsqrt.f32 %v10655_v21  ;;  %vm5080_vm15 = vweird.f32 %v10655_v21 }
 0xb93   : > { %v5061_v51 = vpop.xlane.xlu0 %5060 }
 0xb94   : > { %v5067_v56 = vmul.f32 %v5061_v51, %v8729_v10  ;;  %v6982_v51 = vor.u32 %v7395_v22, %v6981_v19 }
 0xb96   : > { %v7817_v18 = vpop.eup %7816  ;;  %v5071_v25 = vadd.f32 1e-05, %v5067_v56  ;;  %5406 = vmatpush.bf16.msra.mxu0 %v6982_v51 }
 0xb97   : > { %v5075_v49 = vmul.f32 %v7817_v18, %v10655_v21  ;;  %vm5081_vm14 = vweird.f32 %v7817_v18  ;;  %v7002_v21 = vor.u32 %v7397_v8, %v6999_v20  ;;  %v6959_v8 = vld [vmem:[%s11258_s17 + $0x18] sm:$0xf0] }
 0xb98   : > { %7818 = vrsqrt.f32 %v5071_v25  ;;  %vm10762_vm12 = vmor %vm5080_vm15, %vm5081_vm14  ;;  %vm5090_vm1 = vweird.f32 %v5071_v25  ;;  %v6962_v29 = vor.u32 %v7386_v61, %v6959_v8  ;;  %v7420_v61 = vld [vmem:[#allocation20 + $0x18] sm:$0xff] }
 0xb99   : > { %v5076_v59 = vmul.f32 %v7817_v18, %v5075_v49  ;;  %5424 = vmatpush.bf16.msra.mxu1 %v7002_v21  ;;  %v6965_v49 = vld [vmem:[%s11258_s17 + $0x20] sm:$0xf]  ;;  %v7428_v8 = vld [vmem:[#allocation20 + $0x58] sm:$0xff] }
 0xb9a   : > { %v6966_v40 = vor.u32 %v7391_v13, %v6965_v49  ;;  %v7431_v49 = vld [vmem:[#allocation20 + $0x70] sm:$0xff]  ;;  %v7448_v13 = vld [vmem:[#allocation20 + $0xf8] sm:$0xff] }
 0xb9b   : > { %v5077_v15 = vmul.f32 0.5, %v5076_v59  ;;  %v10817_v59 = vld [vmem:[%s11264_s14] ss:$0 sm:$0xff]  ;;  %s11266_s14 = sld [smem:[#allocation60_spill]] }
 0xb9c   : > { %5407 = vmatpush.bf16.msra.mxu0 %v6966_v40  ;;  %v7447_v40 = vld [vmem:[#allocation20 + $0xf0] sm:$0xff] }
 0xb9d   : > { %v5078_v55 = vsub.f32 1.5, %v5077_v15 }
 0xb9e   : > { %v10723_v43 = vpop.eup %7818 }
 0xb9f   : > { %v5079_v58 = vmul.f32 %v7817_v18, %v5078_v55  ;;  %v5085_v52 = vmul.f32 %v10723_v43, %v5071_v25  ;;  %vm5091_vm0 = vweird.f32 %v10723_v43  ;;  %v7392_v25 = vld [vmem:[%s11258_s17 + $0x34] sm:$0xf0] }
 0xba0   : > { %vm10783_vm13 = vmor %vm5090_vm1, %vm5091_vm0 }
 0xba1   : > { %v5086_v9 = vmul.f32 %v10723_v43, %v5085_v52  ;;  %v5083_v6 = vsel %vm10762_vm12, %v7817_v18, %v5079_v58  ;;  %v6973_v18 = vld [vmem:[%s11258_s17 + $0x28] sm:$0xf]  ;;  %v6978_v58 = vor.u32 %v7390_v14, %v6975_v36  ;;  %v7388_v52 = vld [vmem:[%s11258_s17 + $0x14] sm:$0xf0] }
 0xba2   : > { %v5114_v17 = vmul.f32 %v5083_v6, %v10608_v44  ;;  %v6986_v44 = vor.u32 %v7393_v57, %v6983_v30  ;;  %v6974_v15 = vor.u32 %v7392_v25, %v6973_v18  ;;  %v7432_v18 = vld [vmem:[#allocation20 + $0x78] sm:$0xff]  ;;  %v7423_v25 = vld [vmem:[#allocation20 + $0x30] sm:$0xff] }
 0xba3   : > { %v5087_v41 = vmul.f32 0.5, %v5086_v9  ;;  %v6954_v9 = vor.u32 %v7385_v24, %v6951_v2  ;;  %5464 = vmatpush.bf16.msra.mxu3 %v6978_v58  ;;  %v7446_v2 = vld [vmem:[#allocation20 + $0xe8] sm:$0xff] }
 0xba4   : > { %5425 = vmatpush.bf16.msra.mxu1 %v6986_v44  ;;  %v5121_v34 = vmul.f32 %v10772_v38, %v5114_v17  ;;  %5445 = vmatpush.bf16.msra.mxu2 %v6974_v15 }
 0xba5   : > { %v5088_v42 = vsub.f32 1.5, %v5087_v41 }
 0xba6   : > { %v5063_v27 = vpop.xlane.xlu1 %5062  ;;  %v5128_v28 = vadd.f32 %v10817_v59, %v5121_v34 }
 0xba7   : > { %v5089_v53 = vmul.f32 %v10723_v43, %v5088_v42  ;;  %v5068_v56 = vmul.f32 %v5063_v27, %v8729_v10  ;;  %5465 = vmatpush.bf16.msra.mxu3 %v6962_v29 }
 0xba8   : > { %5426 = vmatpush.bf16.msra.mxu1 %v6970_v26 }
 0xba9   : > { %v5093_v55 = vsel %vm10783_vm13, %v10723_v43, %v5089_v53  ;;  %v5072_v0 = vadd.f32 1e-05, %v5068_v56  ;;  %v6957_v43 = vld [vmem:[%s11258_s17 + $0x8] sm:$0xf] }
 0xbaa   : > { %v5115_v31 = vmul.f32 %v5093_v55, %v10614_v47  ;;  %v6958_v45 = vor.u32 %v7388_v52, %v6957_v43  ;;  %v7387_v47 = vld [vmem:[%s11258_s17 + $0xc] sm:$0xf0] }
 0xbab   : > { %7820 = vrsqrt.f32 %v5072_v0  ;;  %v6950_v62 = vor.u32 %v7387_v47, %v6949_v60  ;;  %vm5100_vm3 = vweird.f32 %v5072_v0  ;;  %5881 = vmatpush.bf16.msrb.mxu3 %v7448_v13  ;;  %v7421_v43 = vld [vmem:[#allocation20 + $0x20] sm:$0xff]  ;;  %v7438_v60 = vld [vmem:[#allocation20 + $0xa8] sm:$0xff] }
 0xbac   : > { %v5122_v46 = vmul.f32 %v10772_v38, %v5115_v31  ;;  %5446 = vmatpush.bf16.msra.mxu2 %v6958_v45  ;;  %5427 = vmatpush.bf16.msra.mxu1 %v6954_v9  ;;  %v7429_v52 = vld [vmem:[#allocation20 + $0x60] sm:$0xff] }
 0xbad   : > { %5408 = vmatpush.bf16.msra.mxu0 %v6950_v62 }
 0xbae   : > { %v5129_v20 = vadd.f32 %v10817_v59, %v5122_v46  ;;  %v5065_v3 = vpop.xlane.xlu2 %5064 }
 0xbaf   : > { %v5069_v7 = vmul.f32 %v5065_v3, %v8729_v10  ;;  %5882 = vmatpush.bf16.msrb.mxu3 %v7447_v40 }
 0xbb0   : > { %v5230_v21 = vpack.c.bf16 %v5129_v20, %v5128_v28  ;;  %5843 = vmatpush.bf16.msrb.mxu1 %v7432_v18  ;;  %v7426_v18 = vld [vmem:[#allocation20 + $0x48] sm:$0xff] }
 0xbb1   : > { %v7821_v39 = vpop.eup %7820  ;;  %v5073_v6 = vadd.f32 1e-05, %v5069_v7  ;;  %v7437_v7 = vld [vmem:[#allocation20 + $0xa0] sm:$0xff] }
 0xbb2   : > { %v5095_v41 = vmul.f32 %v7821_v39, %v5072_v0  ;;  %5447 = vmatmul.bf16.vlgmr.msra.gmra.mxu2 %v5230_v21  ;;  %5409 = vmatmul.bf16.vlgmr.msra.gmra.mxu0 %v5230_v21  ;;  %vm5101_vm2 = vweird.f32 %v7821_v39  ;;  %v7439_v0 = vld [vmem:[#allocation20 + $0xb0] sm:$0xff] }
 0xbb3   : > { %7822 = vrsqrt.f32 %v5073_v6  ;;  %5428 = vmatmul.bf16.vlgmr.msra.gmra.mxu1 %v5230_v21  ;;  %5466 = vmatmul.bf16.vlgmr.msra.gmra.mxu3 %v5230_v21  ;;  %vm5102_vm4 = vmor %vm5100_vm3, %vm5101_vm2  ;;  %vm5110_vm6 = vweird.f32 %v5073_v6  ;;  %v7445_v21 = vld [vmem:[#allocation20 + $0xe0] sm:$0xff] }
 0xbb4   : > { %v5096_v12 = vmul.f32 %v7821_v39, %v5095_v41  ;;  %5844 = vmatpush.bf16.msrb.mxu1 %v7431_v49  ;;  %5883 = vmatpush.bf16.msrb.mxu3 %v7446_v2 }
 0xbb6   : > { %v5097_v11 = vmul.f32 0.5, %v5096_v12 }
 0xbb8   : > { %v5098_v19 = vsub.f32 1.5, %v5097_v11  ;;  %5845 = vmatpush.bf16.msrb.mxu1 %v7430_v35  ;;  %5884 = vmatpush.bf16.msrb.mxu3 %v7445_v21  ;;  %v7435_v35 = vld [vmem:[#allocation20 + $0x90] sm:$0xff] }
 0xbb9   : > { %v7823_v42 = vpop.eup %7822 }
 0xbba   : > { %v5099_v16 = vmul.f32 %v7821_v39, %v5098_v19  ;;  %v5105_v10 = vmul.f32 %v7823_v42, %v5073_v6  ;;  %vm5111_vm5 = vweird.f32 %v7823_v42 }
 0xbbb   : > { %vm5112_vm9 = vmor %vm5110_vm6, %vm5111_vm5 }
 0xbbc   : > { %v5106_v37 = vmul.f32 %v7823_v42, %v5105_v10  ;;  %v5103_v22 = vsel %vm5102_vm4, %v7821_v39, %v5099_v16  ;;  %5846 = vmatpush.bf16.msrb.mxu1 %v7429_v52  ;;  %v7419_v16 = vld [vmem:[#allocation20 + $0x10] sm:$0xff]  ;;  %v7425_v52 = vld [vmem:[#allocation20 + $0x40] sm:$0xff] }
 0xbbd   : > { %v5116_v27 = vmul.f32 %v5103_v22, %v10620_v32  ;;  %v7424_v32 = vld [vmem:[#allocation20 + $0x38] sm:$0xff]  ;;  %v7427_v10 = vld [vmem:[#allocation20 + $0x50] sm:$0xff] }
 0xbbe   : > { %v5107_v57 = vmul.f32 0.5, %v5106_v37  ;;  %5824 = vmatpush.bf16.msrb.mxu0 %v7424_v32  ;;  %v7418_v32 = vld [vmem:[#allocation20 + $0x8] sm:$0xff] }
 0xbbf   : > { %v5123_v1 = vmul.f32 %v10772_v38, %v5116_v27  ;;  %v7444_v27 = vld [vmem:[#allocation20 + $0xd8] sm:$0xff] }
 0xbc0   : > { %v5108_v17 = vsub.f32 1.5, %v5107_v57  ;;  %5847 = vmatpush.bf16.msrb.mxu1 %v7428_v8  ;;  %5885 = vmatpush.bf16.msrb.mxu3 %v7444_v27 }
 0xbc1   : > { %v5130_v56 = vadd.f32 %v10817_v59, %v5123_v1 }
 0xbc2   : > { %v5109_v51 = vmul.f32 %v7823_v42, %v5108_v17  ;;  %5825 = vmatpush.bf16.msrb.mxu0 %v7423_v25  ;;  %v7436_v17 = vld [vmem:[#allocation20 + $0x98] sm:$0xff] }
 0xbc4   : > { %v5113_v30 = vsel %vm5112_vm9, %v7823_v42, %v5109_v51  ;;  %5848 = vmatpush.bf16.msrb.mxu1 %v7427_v10 }
 0xbc5   : > { %v5117_v23 = vmul.f32 %v5113_v30, %v10626_v33  ;;  %v5164_v33 = vld [vmem:[%s11265_s3] sm:$0xf] }
 0xbc6   : > { %v10878_v15 = vperm.slane %v5164_v33, 1  ;;  %v10886_v34 = vperm.slane %v5164_v33, 2  ;;  %5826 = vmatpush.bf16.msrb.mxu0 %v7422_v50  ;;  %v10891_v24 = vperm.slane %v5164_v33, 3 }
 0xbc7   : > { %v5124_v53 = vmul.f32 %v10772_v38, %v5117_v23  ;;  %v10876_v38 = vperm.slane %v5164_v33, 0 }
 0xbc8   : > { %5849 = vmatpush.bf16.msrb.mxu1 %v7426_v18 }
 0xbc9   : > { %v5131_v44 = vadd.f32 %v10817_v59, %v5124_v53  ;;  %v7440_v59 = vld [vmem:[#allocation20 + $0xb8] sm:$0xff] }
 0xbca   : > { %5862 = vmatpush.bf16.msrb.mxu2 %v7440_v59  ;;  %5827 = vmatpush.bf16.msrb.mxu0 %v7421_v43  ;;  %v7417_v43 = vld [vmem:[#allocation20] sm:$0xff] }
 0xbcb   : > { %v5231_v63 = vpack.c.bf16 %v5131_v44, %v5130_v56 }
 0xbcc   : > { %5850 = vmatpush.bf16.msrb.mxu1 %v7425_v52 }
 0xbcd   : > { %5414 = vmatmul.bf16.gmra.mxu0 %v5231_v63  ;;  %5433 = vmatmul.bf16.gmra.mxu1 %v5231_v63 }
 0xbce   : > { %5452 = vmatmul.bf16.gmra.mxu2 %v5231_v63  ;;  %5471 = vmatmul.bf16.gmra.mxu3 %v5231_v63 }
 0xbcf   : > { %5863 = vmatpush.bf16.msrb.mxu2 %v7439_v0  ;;  %5828 = vmatpush.bf16.msrb.mxu0 %v7420_v61  ;;  %v7442_v61 = vld [vmem:[#allocation20 + $0xc8] sm:$0xff] }
 0xbd3   : > { %5864 = vmatpush.bf16.msrb.mxu2 %v7438_v60  ;;  %5829 = vmatpush.bf16.msrb.mxu0 %v7419_v16 }
 0xbd7   : > { %5865 = vmatpush.bf16.msrb.mxu2 %v7437_v7  ;;  %5830 = vmatpush.bf16.msrb.mxu0 %v7418_v32 }
 0xbdb   : > { %5866 = vmatpush.bf16.msrb.mxu2 %v7436_v17  ;;  %5831 = vmatpush.bf16.msrb.mxu0 %v7417_v43 }
 0xbdf   : > { %5867 = vmatpush.bf16.msrb.mxu2 %v7435_v35 }
 0xc2f   : > { %v5410_v55 = vpop.f32.mrf.mxu0 }
 0xc30   : > { %v10881_v26 = vadd.f32 %v5410_v55, %v10876_v38  ;;  %v5429_v14 = vpop.f32.mrf.mxu1  ;;  %v7443_v55 = vld [vmem:[#allocation20 + $0xd0] sm:$0xff] }
 0xc31   : > { %v10884_v36 = vadd.f32 %v5429_v14, %v10878_v15  ;;  %5886 = vmatpush.bf16.msrb.mxu3 %v7443_v55 }
 0xc32   : > { %v5493_v31 = vmul.f32 0.044715, %v10881_v26  ;;  %v5477_v16 = vmul.f32 0.5, %v10881_v26 }
 0xc33   : > { %v5494_v58 = vmul.f32 0.044715, %v10884_v36  ;;  %v5478_v10 = vmul.f32 0.5, %v10884_v36 }
 0xc34   : > { %v5509_v45 = vmul.f32 %v5493_v31, %v10881_v26 }
 0xc35   : > { %v5448_v47 = vpop.f32.mrf.mxu2  ;;  %v5510_v46 = vmul.f32 %v5494_v58, %v10884_v36  ;;  %5887 = vmatpush.bf16.msrb.mxu3 %v7442_v61 }
 0xc36   : > { %v10895_v62 = vadd.f32 %v5448_v47, %v10886_v34  ;;  %v5525_v9 = vmul.f32 %v5509_v45, %v10881_v26  ;;  %v5467_v3 = vpop.f32.mrf.mxu3 }
 0xc37   : > { %v5526_v28 = vmul.f32 %v5510_v46, %v10884_v36  ;;  %v5412_v29 = vpop.f32.mrf.mxu0  ;;  %v10902_v6 = vadd.f32 %v5467_v3, %v10891_v24  ;;  %v7434_v46 = vld [vmem:[#allocation20 + $0x88] sm:$0xff] }
 0xc38   : > { %v5495_v20 = vmul.f32 0.044715, %v10895_v62  ;;  %v5541_v39 = vadd.f32 %v5525_v9, %v10881_v26  ;;  %v10905_v41 = vadd.f32 %v5412_v29, %v10876_v38  ;;  %v5431_v12 = vpop.f32.mrf.mxu1  ;;  %5868 = vmatpush.bf16.msrb.mxu2 %v7434_v46 }
 0xc39   : > { %v5542_v11 = vadd.f32 %v5526_v28, %v10884_v36  ;;  %v10910_v42 = vadd.f32 %v5431_v12, %v10878_v15  ;;  %v5496_v37 = vmul.f32 0.044715, %v10902_v6  ;;  %v7441_v12 = vld [vmem:[#allocation20 + $0xc0] sm:$0xff]  ;;  %v5480_v18 = vmul.f32 0.5, %v10902_v6 }
 0xc3a   : > { %v5511_v19 = vmul.f32 %v5495_v20, %v10895_v62  ;;  %v5497_v57 = vmul.f32 0.044715, %v10905_v41  ;;  %v5557_v51 = vmul.f32 0.7978846, %v5541_v39  ;;  %v7433_v39 = vld [vmem:[#allocation20 + $0x80] sm:$0xff]  ;;  %v5481_v26 = vmul.f32 0.5, %v10905_v41  ;;  %5888 = vmatpush.bf16.msrb.mxu3 %v7441_v12 }
 0xc3b   : > { %v5512_v30 = vmul.f32 %v5496_v37, %v10902_v6  ;;  %v5498_v23 = vmul.f32 0.044715, %v10910_v42  ;;  %v5558_v53 = vmul.f32 0.7978846, %v5542_v11 }
 0xc3c   : > { %v5527_v22 = vmul.f32 %v5511_v19, %v10895_v62  ;;  %v5513_v44 = vmul.f32 %v5497_v57, %v10905_v41  ;;  %7824 = vtanh.f32 %v5557_v51  ;;  %5869 = vmatpush.bf16.msrb.mxu2 %v7433_v39 }
 0xc3d   : > { %v5450_v1 = vpop.f32.mrf.mxu2  ;;  %v5528_v33 = vmul.f32 %v5512_v30, %v10902_v6  ;;  %v5514_v25 = vmul.f32 %v5498_v23, %v10910_v42  ;;  %7826 = vtanh.f32 %v5558_v53 }
 0xc3e   : > { %v5543_v56 = vadd.f32 %v5527_v22, %v10895_v62  ;;  %v10920_v63 = vadd.f32 %v5450_v1, %v10886_v34  ;;  %v5529_v59 = vmul.f32 %v5513_v44, %v10905_v41  ;;  %v5469_v50 = vpop.f32.mrf.mxu3  ;;  %v5479_v1 = vmul.f32 0.5, %v10895_v62 }
 0xc3f   : > { %v5544_v0 = vadd.f32 %v5528_v33, %v10902_v6  ;;  %v5530_v40 = vmul.f32 %v5514_v25, %v10910_v42  ;;  %v10929_v14 = vadd.f32 %v5469_v50, %v10891_v24  ;;  %v5482_v33 = vmul.f32 0.5, %v10910_v42 }
 0xc40   : > { %v5559_v49 = vmul.f32 0.7978846, %v5543_v56  ;;  %v5499_v13 = vmul.f32 0.044715, %v10920_v63  ;;  %v5545_v31 = vadd.f32 %v5529_v59, %v10905_v41 }
 0xc41   : > { %v5546_v60 = vadd.f32 %v5530_v40, %v10910_v42  ;;  %v5500_v45 = vmul.f32 0.044715, %v10929_v14  ;;  %v5560_v8 = vmul.f32 0.7978846, %v5544_v0  ;;  %v5484_v55 = vmul.f32 0.5, %v10929_v14 }
 0xc42   : > { %v5515_v58 = vmul.f32 %v5499_v13, %v10920_v63  ;;  %7828 = vtanh.f32 %v5559_v49  ;;  %v5561_v47 = vmul.f32 0.7978846, %v5545_v31  ;;  %v7825_v3 = vpop.eup %7824  ;;  %v5483_v49 = vmul.f32 0.5, %v10920_v63 }
 0xc43   : > { %v5562_v9 = vmul.f32 0.7978846, %v5546_v60  ;;  %v5516_v28 = vmul.f32 %v5500_v45, %v10929_v14  ;;  %v7827_v7 = vpop.eup %7826  ;;  %v5589_v57 = vadd.f32 1.0, %v7825_v3 }
 0xc44   : > { %v5531_v2 = vmul.f32 %v5515_v58, %v10920_v63  ;;  %7830 = vtanh.f32 %v5561_v47  ;;  %v5590_v23 = vadd.f32 1.0, %v7827_v7 }
 0xc45   : > { %7832 = vtanh.f32 %v5562_v9  ;;  %v5532_v29 = vmul.f32 %v5516_v28, %v10929_v14  ;;  %v5605_v13 = vmul.f32 %v5589_v57, %v5477_v16 }
 0xc46   : > { %v5547_v20 = vadd.f32 %v5531_v2, %v10920_v63  ;;  %7834 = vtanh.f32 %v5560_v8  ;;  %v5606_v0 = vmul.f32 %v5590_v23, %v5478_v10 }
 0xc47   : > { %v5548_v19 = vadd.f32 %v5532_v29, %v10929_v14 }
 0xc48   : > { %v5563_v21 = vmul.f32 0.7978846, %v5547_v20  ;;  %v7829_v11 = vpop.eup %7828 }
 0xc49   : > { %v5564_v17 = vmul.f32 0.7978846, %v5548_v19  ;;  %v5591_v53 = vadd.f32 1.0, %v7829_v11 }
 0xc4a   : > { %7836 = vtanh.f32 %v5563_v21  ;;  %v5415_v37 = vpop.f32.mrf.mxu0  ;;  %v5434_v22 = vpop.f32.mrf.mxu1 }
 0xc4b   : > { %v10943_v27 = vadd.f32 %v5415_v37, %v10876_v38  ;;  %v10946_v51 = vadd.f32 %v5434_v22, %v10878_v15  ;;  %v7831_v30 = vpop.eup %7830  ;;  %7838 = vtanh.f32 %v5564_v17  ;;  %v5607_v31 = vmul.f32 %v5591_v53, %v5479_v1 }
 0xc4c   : > { %v7833_v36 = vpop.eup %7832  ;;  %v5593_v56 = vadd.f32 1.0, %v7831_v30 }
 0xc4d   : > { %v5501_v44 = vmul.f32 0.044715, %v10943_v27  ;;  %v5502_v32 = vmul.f32 0.044715, %v10946_v51  ;;  %v5594_v25 = vadd.f32 1.0, %v7833_v36  ;;  %v7835_v62 = vpop.eup %7834 }
 0xc4e   : > { %v5609_v50 = vmul.f32 %v5593_v56, %v5481_v26  ;;  %v5592_v60 = vadd.f32 1.0, %v7835_v62 }
 0xc4f   : > { %v5517_v59 = vmul.f32 %v5501_v44, %v10943_v27  ;;  %v5518_v41 = vmul.f32 %v5502_v32, %v10946_v51  ;;  %v5610_v40 = vmul.f32 %v5594_v25, %v5482_v33 }
 0xc50   : > { %v7837_v35 = vpop.eup %7836  ;;  %v5621_v42 = vpack.c.bf16 %v5609_v50, %v5605_v13  ;;  %v5608_v19 = vmul.f32 %v5592_v60, %v5480_v18 }
 0xc51   : > { %v5595_v58 = vadd.f32 1.0, %v7837_v35  ;;  %v5453_v6 = vpop.f32.mrf.mxu2  ;;  %v5472_v43 = vpop.f32.mrf.mxu3  ;;  %v5533_v52 = vmul.f32 %v5517_v59, %v10943_v27  ;;  %v5534_v63 = vmul.f32 %v5518_v41, %v10946_v51  ;;  %v5622_v46 = vpack.c.bf16 %v5610_v40, %v5606_v0 }
 0xc52   : > { %v10961_v45 = vadd.f32 %v5453_v6, %v10886_v34  ;;  %v10964_v47 = vadd.f32 %v5472_v43, %v10891_v24  ;;  %v5417_v2 = vpop.f32.mrf.mxu0  ;;  %v5436_v14 = vpop.f32.mrf.mxu1  ;;  %5832 = vmatmul.bf16.vlgmr.msrb.gmra.mxu0 %v5621_v42 }
 0xc53   : > { %v7839_v61 = vpop.eup %7838  ;;  %v5418_v8 = vadd.f32 %v5417_v2, %v10876_v38  ;;  %v10968_v9 = vadd.f32 %v5436_v14, %v10878_v15  ;;  %v5611_v28 = vmul.f32 %v5595_v58, %v5483_v49  ;;  %v5549_v20 = vadd.f32 %v5533_v52, %v10943_v27  ;;  %5851 = vmatmul.bf16.vlgmr.msrb.gmra.mxu1 %v5622_v46 }
 0xc54   : > { %v5596_v3 = vadd.f32 1.0, %v7839_v61  ;;  %v5503_v29 = vmul.f32 0.044715, %v10961_v45  ;;  %v5504_v7 = vmul.f32 0.044715, %v10964_v47  ;;  %v5550_v21 = vadd.f32 %v5534_v63, %v10946_v51 }
 0xc55   : > { %v5505_v39 = vmul.f32 0.044715, %v5418_v8  ;;  %v5506_v12 = vmul.f32 0.044715, %v10968_v9  ;;  %v5623_v11 = vpack.c.bf16 %v5611_v28, %v5607_v31  ;;  %v5565_v22 = vmul.f32 0.7978846, %v5549_v20 }
 0xc56   : > { %v5519_v38 = vmul.f32 %v5503_v29, %v10961_v45  ;;  %v5520_v15 = vmul.f32 %v5504_v7, %v10964_v47  ;;  %v5612_v16 = vmul.f32 %v5596_v3, %v5484_v55  ;;  %v5566_v17 = vmul.f32 0.7978846, %v5550_v21 }
 0xc57   : > { %v5521_v10 = vmul.f32 %v5505_v39, %v5418_v8  ;;  %v5522_v37 = vmul.f32 %v5506_v12, %v10968_v9  ;;  %5870 = vmatmul.bf16.vlgmr.msrb.gmra.mxu2 %v5623_v11  ;;  %7840 = vtanh.f32 %v5565_v22  ;;  %v5485_v2 = vmul.f32 0.5, %v10943_v27 }
 0xc58   : > { %v5624_v57 = vpack.c.bf16 %v5612_v16, %v5608_v19  ;;  %v5535_v30 = vmul.f32 %v5519_v38, %v10961_v45  ;;  %v5536_v32 = vmul.f32 %v5520_v15, %v10964_v47  ;;  %7842 = vtanh.f32 %v5566_v17 }
 0xc59   : > { %v5455_v23 = vpop.f32.mrf.mxu2  ;;  %v5474_v1 = vpop.f32.mrf.mxu3  ;;  %v5537_v53 = vmul.f32 %v5521_v10, %v5418_v8  ;;  %v5538_v26 = vmul.f32 %v5522_v37, %v10968_v9  ;;  %v5489_v14 = vmul.f32 0.5, %v5418_v8  ;;  %v5486_v61 = vmul.f32 0.5, %v10946_v51 }
 0xc5a   : > { %v5456_v36 = vadd.f32 %v5455_v23, %v10886_v34  ;;  %v5475_v56 = vadd.f32 %v5474_v1, %v10891_v24  ;;  %5889 = vmatmul.bf16.vlgmr.msrb.gmra.mxu3 %v5624_v57  ;;  %v5551_v44 = vadd.f32 %v5535_v30, %v10961_v45  ;;  %v5552_v41 = vadd.f32 %v5536_v32, %v10964_v47 }
 0xc5b   : > { %v5553_v18 = vadd.f32 %v5537_v53, %v5418_v8  ;;  %v5554_v33 = vadd.f32 %v5538_v26, %v10968_v9  ;;  %v5490_v28 = vmul.f32 0.5, %v10968_v9  ;;  %v5487_v51 = vmul.f32 0.5, %v10961_v45  ;;  %v7629_v45 = vld [vmem:[%s11266_s14] ss:$0 sm:$0xff] }
 0xc5c   : > { %v5507_v25 = vmul.f32 0.044715, %v5456_v36  ;;  %v5508_v49 = vmul.f32 0.044715, %v5475_v56  ;;  %v5567_v50 = vmul.f32 0.7978846, %v5551_v44 }
 0xc5d   : > { %v5569_v62 = vmul.f32 0.7978846, %v5553_v18  ;;  %v5570_v59 = vmul.f32 0.7978846, %v5554_v33  ;;  %v5568_v24 = vmul.f32 0.7978846, %v5552_v41  ;;  %v7841_v0 = vpop.eup %7840 }
 0xc5e   : > { %v5523_v13 = vmul.f32 %v5507_v25, %v5456_v36  ;;  %v5524_v34 = vmul.f32 %v5508_v49, %v5475_v56  ;;  %v7843_v40 = vpop.eup %7842  ;;  %v5597_v6 = vadd.f32 1.0, %v7841_v0  ;;  %v5491_v16 = vmul.f32 0.5, %v5456_v36 }
 0xc5f   : > { %7844 = vtanh.f32 %v5569_v62  ;;  %v5598_v63 = vadd.f32 1.0, %v7843_v40  ;;  %v5488_v10 = vmul.f32 0.5, %v10964_v47  ;;  %v5492_v37 = vmul.f32 0.5, %v5475_v56 }
 0xc60   : > { %7846 = vtanh.f32 %v5570_v59  ;;  %v5539_v35 = vmul.f32 %v5523_v13, %v5456_v36  ;;  %v5540_v55 = vmul.f32 %v5524_v34, %v5475_v56  ;;  %v5613_v29 = vmul.f32 %v5597_v6, %v5485_v2 }
 0xc61   : > { %7848 = vtanh.f32 %v5567_v50  ;;  %v5614_v39 = vmul.f32 %v5598_v63, %v5486_v61 }
 0xc62   : > { %v5555_v31 = vadd.f32 %v5539_v35, %v5456_v36  ;;  %v5556_v58 = vadd.f32 %v5540_v55, %v5475_v56  ;;  %7850 = vtanh.f32 %v5568_v24 }
 0xc64   : > { %v5571_v43 = vmul.f32 0.7978846, %v5555_v31  ;;  %v5572_v42 = vmul.f32 0.7978846, %v5556_v58 }
 0xc65   : > { %v7845_v52 = vpop.eup %7844 }
 0xc66   : > { %v7847_v60 = vpop.eup %7846  ;;  %v5601_v46 = vadd.f32 1.0, %v7845_v52  ;;  %7852 = vtanh.f32 %v5571_v43 }
 0xc67   : > { %v5602_v20 = vadd.f32 1.0, %v7847_v60  ;;  %7854 = vtanh.f32 %v5572_v42  ;;  %v7849_v3 = vpop.eup %7848 }
 0xc68   : > { %v5617_v7 = vmul.f32 %v5601_v46, %v5489_v14  ;;  %v7851_v21 = vpop.eup %7850  ;;  %v5599_v15 = vadd.f32 1.0, %v7849_v3 }
 0xc69   : > { %v5618_v12 = vmul.f32 %v5602_v20, %v5490_v28  ;;  %v5600_v27 = vadd.f32 1.0, %v7851_v21 }
 0xc6a   : > { %v5625_v11 = vpack.c.bf16 %v5617_v7, %v5613_v29  ;;  %v5615_v57 = vmul.f32 %v5599_v15, %v5487_v51 }
 0xc6b   : > { %v5626_v38 = vpack.c.bf16 %v5618_v12, %v5614_v39  ;;  %v5616_v30 = vmul.f32 %v5600_v27, %v5488_v10 }
 0xc6c   : > { %v7853_v19 = vpop.eup %7852  ;;  %5837 = vmatmul.bf16.gmra.mxu0 %v5625_v11 }
 0xc6d   : > { %v7855_v8 = vpop.eup %7854  ;;  %5856 = vmatmul.bf16.gmra.mxu1 %v5626_v38  ;;  %v5603_v9 = vadd.f32 1.0, %v7853_v19 }
 0xc6e   : > { %v5604_v22 = vadd.f32 1.0, %v7855_v8 }
 0xc6f   : > { %v5619_v17 = vmul.f32 %v5603_v9, %v5491_v16 }
 0xc70   : > { %v5620_v23 = vmul.f32 %v5604_v22, %v5492_v37 }
 0xc71   : > { %v5627_v1 = vpack.c.bf16 %v5619_v17, %v5615_v57 }
 0xc72   : > { %v5628_v53 = vpack.c.bf16 %v5620_v23, %v5616_v30 }
 0xc73   : > { %5875 = vmatmul.bf16.gmra.mxu2 %v5627_v1 }
 0xc74   : > { %5894 = vmatmul.bf16.gmra.mxu3 %v5628_v53 }
 0xccf   : > { %v5833_v26 = vpop.f32.mrf.mxu0 }
 0xcd0   : > { %v5834_v36 = vadd.f32 %v7629_v45, %v5833_v26  ;;  %v5852_v44 = vpop.f32.mrf.mxu1 }
 0xcd2   : > { %v5853_v32 = vadd.f32 %v5852_v44, %v5834_v36 }
 0xcd7   : > { %v5835_v47 = vpop.f32.mrf.mxu0 }
 0xcd8   : > { %v5836_v33 = vadd.f32 %v7629_v45, %v5835_v47  ;;  %v5854_v62 = vpop.f32.mrf.mxu1 }
 0xcda   : > { %v5871_v56 = vpop.f32.mrf.mxu2  ;;  %v5855_v41 = vadd.f32 %v5854_v62, %v5836_v33 }
 0xcdb   : > { %v5872_v18 = vadd.f32 %v5871_v56, %v5853_v32 }
 0xcdd   : > { %v5890_v25 = vpop.f32.mrf.mxu3 }
 0xcde   : > { %v5891_v49 = vadd.f32 %v5890_v25, %v5872_v18 }
 0xce0   : > { %v5900_v59 = vadd.f32 %v5891_v49, %v10591_v48 }
 0xce2   : > { %5904 = vst [vmem:[%s10997_s21] sm:$0xff] %v5900_v59  ;;  %v5873_v13 = vpop.f32.mrf.mxu2 }
 0xce3   : > { %v5874_v34 = vadd.f32 %v5873_v13, %v5855_v41 }
 0xce5   : > { %v5892_v50 = vpop.f32.mrf.mxu3 }
 0xce6   : > { %v5893_v24 = vadd.f32 %v5892_v50, %v5874_v34 }
 0xce8   : > { %v5901_v35 = vadd.f32 %v5893_v24, %v10595_v54 }
 0xce9   : > { %v5838_v55 = vpop.f32.mrf.mxu0 }
 0xcea   : > { %5905 = vst [vmem:[%s10997_s21 + $0x8] sm:$0xff] %v5901_v35  ;;  %v5839_v0 = vadd.f32 %v7629_v45, %v5838_v55  ;;  %v5857_v48 = vpop.f32.mrf.mxu1 }
 0xcec   : > { %v5858_v40 = vadd.f32 %v5857_v48, %v5839_v0 }
 0xcf1   : > { %v5840_v31 = vpop.f32.mrf.mxu0 }
 0xcf2   : > { %v5841_v42 = vadd.f32 %v7629_v45, %v5840_v31  ;;  %v5859_v60 = vpop.f32.mrf.mxu1 }
 0xcf4   : > { %v5860_v54 = vadd.f32 %v5859_v60, %v5841_v42 }
 0xcf6   : > { %v5876_v58 = vpop.f32.mrf.mxu2 }
 0xcf7   : > { %v5877_v6 = vadd.f32 %v5876_v58, %v5858_v40  ;;  %v5895_v43 = vpop.f32.mrf.mxu3 }
 0xcf9   : > { %v5896_v52 = vadd.f32 %v5895_v43, %v5877_v6 }
 0xcfb   : > { %v5902_v63 = vadd.f32 %v5896_v52, %v10599_v5 }
 0xcfd   : > { %5906 = vst [vmem:[%s10997_s21 + $0x10] sm:$0xff] %v5902_v63 }
 0xcfe   : > { %v5878_v2 = vpop.f32.mrf.mxu2 }
 0xcff   : > { %v5879_v14 = vadd.f32 %v5878_v2, %v5860_v54  ;;  %v5897_v46 = vpop.f32.mrf.mxu3 }
 0xd01   : > { %v5898_v61 = vadd.f32 %v5897_v46, %v5879_v14 }
 0xd03   : > { %v5903_v28 = vadd.f32 %v5898_v61, %v10603_v4 }
 0xd05   : > { %5907 = vst [vmem:[%s10997_s21 + $0x18] sm:$0xff] %v5903_v28 }
 0xd06   : > { %8247 = shalt.err (!%p8244_p0)
}
 0xd07   : > { %s8348_s27 = smov 128   ;;  %s8349_s8 = smov 8  }
 0xd08   : > { %7492 = dma.vmem_to_hbm [thread:$0]  (%p8616_p4), %s5924_s13, 512, %s5926_s28, %s5909_s30, %s8348_s27, %s8348_s27, %s8349_s8  }
 0xd09 PF: > { %s5940_s14 = sand.u32 1, %s8314_s7   ;;  %p7533_p2 = pnand %p6183_p6, %p8624_p7 }
 0xd0a   : > { %s5941_s21 = scalar_lea.sflag [#allocation4], %s5940_s14 }
 0xd0b   : > { %p7534_p5 = pneg %p7533_p2 }
 0xd0d   : > { %8309 = dma.done.wait (%p7534_p5), %s5941_s21, 512  }
 0xd0e   : > { %8311 = vsyncadd (%p7534_p5), %s5941_s21, 4294966784  ;;  %s53_s5 = sadd.s32 1, %s8334_s5   ;;  %s11268_s20 = sld [smem:[#allocation33_spill]] }
 0xd0f   : > { %p50_p8 = scmp.ge.s32.totalorder %s53_s5, 4   ;;  %s11269_s8 = sld [smem:[#allocation35_spill]] }
 0xd10   : > { %s11270_s22 = sld [smem:[#allocation34_spill]]  ;;  %s11271_s7 = smov %s8318_s4 }
 0xd11   : > { %s11273_s30 = smov %s8330_s9 }
 0xd12   :  { %52 = sbr.rel (!%p50_p8) target bundleno = 41 (0x29), region = 241 }
 0xd14   : > { %s11272_s4 = smov %s11268_s20 }
 0xd16   : > { %s11274_s9 = smov %s11270_s22 }
 0xd17   :  { %5947 = vsyncpa [#allocation3], 1 }
 0xd18   :  { %5949 = vsyncpa [#allocation3 + $0x1], 1 }
 0xd19   :  { %5950 = vsyncpa [#allocation6], 1 }
 0xd1a   :  { %5952 = vsyncpa [#allocation6 + $0x1], 1 }
 0xd1b   :  { %5953 = vsyncpa [#allocation9], 1 }
 0xd1c   :  { %5954 = vsyncpa [#allocation12], 1 }
 0xd1d   :  { %5955 = vsyncpa [#allocation15], 1 }
 0xd1e   :  { %5956 = vsyncpa [#allocation18], 1 }
 0xd1f   :  { %5958 = vsyncpa [#allocation18 + $0x1], 1 }
 0xd20   :  { %5959 = vsyncpa [#allocation21], 1 }
 0xd21   :  { %5960 = vsyncpa [#allocation4], 1 }
 0xd22   :  { %5962 = vsyncpa [#allocation4 + $0x1], 1 }

</bundles_post_ra>
